<compile_context>
chip_gen: v7x
topology: tpu7x:2x2x1
jax: 0.10.0
libtpu: 0.0.40
codegen_flags: <defaults>
</compile_context>

<pallas_src>
import jax
import jax.numpy as jnp
from jax import lax
from jax.experimental import pallas as pl
from jax.experimental.pallas import tpu as pltpu


# Conservative "table fits in VMEM" budget that is safe on v5e/v6e (128 MiB
# physical) as well as v7x (64 MiB physical).
_VMEM_TABLE_BUDGET_BYTES = 32 * 1024 * 1024


# ----------------------------------------------------------------------------
# Fast path: embedding table resident in VMEM, gather via VMEM loads.
# ----------------------------------------------------------------------------
def _resident_kernel(idx_i_ref, idx_j_ref,   # scalar-prefetch indices (SMEM)
                     emb_ref,                # (U, D) table, whole in VMEM
                     out_ref,                # (TB, 1) f32 scores
                     ebuf_i, ebuf_j):        # (TB, D) VMEM scratch
    tile_b, _ = ebuf_i.shape
    base = pl.program_id(0) * tile_b

    # Fully unrolled gather: dynamic row load from the resident table,
    # static-offset store into the tile buffers.  No DMAs at all.
    for r in range(tile_b):
        ebuf_i[pl.ds(r, 1), :] = emb_ref[pl.ds(idx_i_ref[base + r], 1), :]
        ebuf_j[pl.ds(r, 1), :] = emb_ref[pl.ds(idx_j_ref[base + r], 1), :]

    prod = ebuf_i[...].astype(jnp.float32) * ebuf_j[...].astype(jnp.float32)
    out_ref[...] = jnp.sum(prod, axis=-1, keepdims=True)


# ----------------------------------------------------------------------------
# Large-table path: table in HBM, per-row DMA gather, double-buffered across
# grid steps, aggregate semaphore waits, unrolled issue loop.
# ----------------------------------------------------------------------------
def _hbm_kernel(idx_i_ref, idx_j_ref,        # scalar-prefetch indices (SMEM)
                emb_hbm,                     # (U, D) table in HBM (pl.ANY)
                out_ref,                     # (TB, 1) f32 scores
                ebuf_i, ebuf_j, sem):        # (2, TB, D) scratch, DMA sems (2,2)
    tile_b = ebuf_i.shape[1]
    t = pl.program_id(0)
    nt = pl.num_programs(0)

    def issue(tile_idx, slot):
        base = tile_idx * tile_b

        def body(r, carry):
            pltpu.make_async_copy(
                emb_hbm.at[pl.ds(idx_i_ref[base + r], 1), :],
                ebuf_i.at[slot, pl.ds(r, 1), :],
                sem.at[0, slot]).start()
            pltpu.make_async_copy(
                emb_hbm.at[pl.ds(idx_j_ref[base + r], 1), :],
                ebuf_j.at[slot, pl.ds(r, 1), :],
                sem.at[1, slot]).start()
            return carry

        # Partial unroll so the LLO scheduler can pack the descriptor setups.
        lax.fori_loop(0, tile_b, body, 0, unroll=8)

    # Prime slot 0 on the first grid step.
    @pl.when(t == 0)
    def _():
        issue(0, 0)

    # Prefetch the NEXT tile's rows into the other slot (indices are already
    # in SMEM), overlapping with this tile's wait + compute.
    @pl.when(t + 1 < nt)
    def _():
        issue(t + 1, (t + 1) % 2)

    slot = t % 2
    # ONE aggregate wait per buffer: the descriptor covers the whole
    # (tile_b, D) buffer, i.e. exactly the tile_b * D * esize bytes signalled
    # by the tile_b row copies issued onto that semaphore.
    pltpu.make_async_copy(ebuf_i.at[slot], ebuf_i.at[slot], sem.at[0, slot]).wait()
    pltpu.make_async_copy(ebuf_j.at[slot], ebuf_j.at[slot], sem.at[1, slot]).wait()

    prod = ebuf_i[slot].astype(jnp.float32) * ebuf_j[slot].astype(jnp.float32)
    out_ref[...] = jnp.sum(prod, axis=-1, keepdims=True)


# ----------------------------------------------------------------------------
# Wrapper
# ----------------------------------------------------------------------------
def interaction_score(user_index_i, user_index_j, embedding, *,
                      tile_b=256, force_hbm=False,
                      vmem_table_budget_bytes=_VMEM_TABLE_BUDGET_BYTES):
    """Returns (B,) f32 scores, matching the PyTorch module's forward."""
    B = user_index_i.shape[0]
    U, D = embedding.shape

    # Tile size: multiple of 128, no larger than needed for this batch.
    tile_b = ((int(tile_b) + 127) // 128) * 128
    tile_b = max(128, min(tile_b, ((B + 127) // 128) * 128))
    num_tiles = pl.cdiv(B, tile_b)
    b_pad = num_tiles * tile_b

    # Clamp (guards against OOB gathers; nn.Embedding would raise instead) and
    # pad with index 0.  Padded rows are sliced off below.
    idx_i = jnp.zeros((b_pad,), jnp.int32).at[:B].set(
        jnp.clip(user_index_i.astype(jnp.int32), 0, U - 1))
    idx_j = jnp.zeros((b_pad,), jnp.int32).at[:B].set(
        jnp.clip(user_index_j.astype(jnp.int32), 0, U - 1))

    table_bytes = U * D * embedding.dtype.itemsize
    resident = (not force_hbm) and (table_bytes <= vmem_table_budget_bytes)

    if resident:
        out = pl.pallas_call(
            _resident_kernel,
            out_shape=jax.ShapeDtypeStruct((b_pad, 1), jnp.float32),
            grid_spec=pltpu.PrefetchScalarGridSpec(
                num_scalar_prefetch=2,
                grid=(num_tiles,),
                in_specs=[
                    # Whole table lives in VMEM for the duration of the call.
                    pl.BlockSpec(memory_space=pltpu.MemorySpace.VMEM),
                ],
                out_specs=pl.BlockSpec((tile_b, 1), lambda b, *_: (b, 0)),
                scratch_shapes=[
                    pltpu.VMEM((tile_b, D), embedding.dtype),
                    pltpu.VMEM((tile_b, D), embedding.dtype),
                ],
            ),
            compiler_params=pltpu.CompilerParams(
                dimension_semantics=("parallel",),
                vmem_limit_bytes=48 * 1024 * 1024,
            ),
        )(idx_i, idx_j, embedding)
    else:
        out = pl.pallas_call(
            _hbm_kernel,
            out_shape=jax.ShapeDtypeStruct((b_pad, 1), jnp.float32),
            grid_spec=pltpu.PrefetchScalarGridSpec(
                num_scalar_prefetch=2,
                grid=(num_tiles,),
                in_specs=[
                    pl.BlockSpec(memory_space=pl.ANY),   # table stays in HBM
                ],
                out_specs=pl.BlockSpec((tile_b, 1), lambda b, *_: (b, 0)),
                scratch_shapes=[
                    pltpu.VMEM((2, tile_b, D), embedding.dtype),  # E[idx_i]
                    pltpu.VMEM((2, tile_b, D), embedding.dtype),  # E[idx_j]
                    pltpu.SemaphoreType.DMA((2, 2)),
                ],
            ),
            # Cross-grid-step DMA carry (double buffering) => "arbitrary".
            compiler_params=pltpu.CompilerParams(
                dimension_semantics=("arbitrary",)),
        )(idx_i, idx_j, embedding)

    return out[:B, 0]


def make_embedding(num_users, embedding_dim, key):
    """Deterministic Xavier-uniform init, matching nn.init.xavier_uniform_."""
    bound = (6.0 / (num_users + embedding_dim)) ** 0.5
    return jax.random.uniform(
        key, (num_users, embedding_dim), dtype=jnp.float32,
        minval=-bound, maxval=bound)


if __name__ == "__main__":
    num_users, embedding_dim, batch = 32, 16, 8

    key = jax.random.PRNGKey(0)
    k_emb, k_i, k_j = jax.random.split(key, 3)

    embedding = make_embedding(num_users, embedding_dim, k_emb)
    user_i = jax.random.randint(k_i, (batch,), 0, num_users, dtype=jnp.int32)
    user_j = jax.random.randint(k_j, (batch,), 0, num_users, dtype=jnp.int32)

    # Pure-JAX reference.
    ref = jnp.sum(embedding[user_i] * embedding[user_j], axis=-1)

    # Fast path (table resident in VMEM) -- the natural path at these shapes.
    score = interaction_score(user_i, user_j, embedding)
    score = jax.block_until_ready(score)
    assert score.shape == (batch,)
    assert jnp.allclose(score, ref, atol=1e-5, rtol=1e-5)

    # Large-table path (HBM-resident table, DMA gather) -- exercised explicitly
    # to validate it at small shapes too.
    score_hbm = interaction_score(user_i, user_j, embedding, force_hbm=True)
    score_hbm = jax.block_until_ready(score_hbm)
    assert score_hbm.shape == (batch,)
    assert jnp.allclose(score_hbm, ref, atol=1e-5, rtol=1e-5)

    print("KERNEL_OK")
</pallas_src>

<mosaic_0001>
module attributes {stable_mosaic.version = 11 : i64} {
  func.func @_resident_kernel(%arg0: i32, %arg1: memref<128xi32, #tpu.memory_space<smem>>, %arg2: memref<128xi32, #tpu.memory_space<smem>>, %arg3: memref<32x16xf32, #tpu.memory_space<vmem>>, %arg4: memref<128x1xf32, #tpu.memory_space<vmem>>, %arg5: memref<128x16xf32, #tpu.memory_space<vmem>>, %arg6: memref<128x16xf32, #tpu.memory_space<vmem>>) attributes {dimension_semantics = [#tpu.dimension_semantics<parallel>], iteration_bounds = array<i64: 1>, scalar_prefetch = 2 : i64, scratch_operands = 2 : i64, tpu.core_type = #tpu.core_type<tc>, window_params = [{pipeline_mode = #tpu.pipeline_mode<synchronous>, transform_indices = @transform_0, window_bounds = array<i64: 32, 16>}, {transform_indices = @transform_1, window_bounds = array<i64: 128, 1>}]} {
    %c128_i32 = arith.constant 128 : i32
    %0 = arith.muli %arg0, %c128_i32 : i32
    %c0_i32 = arith.constant 0 : i32
    %1 = arith.addi %0, %c0_i32 : i32
    %2 = arith.index_cast %1 : i32 to index
    %3 = memref.load %arg1[%2] : memref<128xi32, #tpu.memory_space<smem>>
    %4 = arith.index_cast %3 : i32 to index
    %c0 = arith.constant 0 : index
    %5 = vector.load %arg3[%4, %c0] : memref<32x16xf32, #tpu.memory_space<vmem>>, vector<1x16xf32>
    %c0_0 = arith.constant 0 : index
    %c0_1 = arith.constant 0 : index
    %6 = vector.load %arg5[%c0_0, %c0_1] : memref<128x16xf32, #tpu.memory_space<vmem>>, vector<1x16xf32>
    tpu.vector_store %arg5[%c0_0, %c0_1], %5 {strides = array<i32>} : memref<128x16xf32, #tpu.memory_space<vmem>>, vector<1x16xf32>,
    %c0_i32_2 = arith.constant 0 : i32
    %7 = arith.addi %0, %c0_i32_2 : i32
    %8 = arith.index_cast %7 : i32 to index
    %9 = memref.load %arg2[%8] : memref<128xi32, #tpu.memory_space<smem>>
    %10 = arith.index_cast %9 : i32 to index
    %c0_3 = arith.constant 0 : index
    %11 = vector.load %arg3[%10, %c0_3] : memref<32x16xf32, #tpu.memory_space<vmem>>, vector<1x16xf32>
    %c0_4 = arith.constant 0 : index
    %c0_5 = arith.constant 0 : index
    %12 = vector.load %arg6[%c0_4, %c0_5] : memref<128x16xf32, #tpu.memory_space<vmem>>, vector<1x16xf32>
    tpu.vector_store %arg6[%c0_4, %c0_5], %11 {strides = array<i32>} : memref<128x16xf32, #tpu.memory_space<vmem>>, vector<1x16xf32>,
    %c1_i32 = arith.constant 1 : i32
    %13 = arith.addi %0, %c1_i32 : i32
    %14 = arith.index_cast %13 : i32 to index
    %15 = memref.load %arg1[%14] : memref<128xi32, #tpu.memory_space<smem>>
    %16 = arith.index_cast %15 : i32 to index
    %c0_6 = arith.constant 0 : index
    %17 = vector.load %arg3[%16, %c0_6] : memref<32x16xf32, #tpu.memory_space<vmem>>, vector<1x16xf32>
    %c1 = arith.constant 1 : index
    %c0_7 = arith.constant 0 : index
    %18 = vector.load %arg5[%c1, %c0_7] : memref<128x16xf32, #tpu.memory_space<vmem>>, vector<1x16xf32>
    tpu.vector_store %arg5[%c1, %c0_7], %17 {strides = array<i32>} : memref<128x16xf32, #tpu.memory_space<vmem>>, vector<1x16xf32>,
    %c1_i32_8 = arith.constant 1 : i32
    %19 = arith.addi %0, %c1_i32_8 : i32
    %20 = arith.index_cast %19 : i32 to index
    %21 = memref.load %arg2[%20] : memref<128xi32, #tpu.memory_space<smem>>
    %22 = arith.index_cast %21 : i32 to index
    %c0_9 = arith.constant 0 : index
    %23 = vector.load %arg3[%22, %c0_9] : memref<32x16xf32, #tpu.memory_space<vmem>>, vector<1x16xf32>
    %c1_10 = arith.constant 1 : index
    %c0_11 = arith.constant 0 : index
    %24 = vector.load %arg6[%c1_10, %c0_11] : memref<128x16xf32, #tpu.memory_space<vmem>>, vector<1x16xf32>
    tpu.vector_store %arg6[%c1_10, %c0_11], %23 {strides = array<i32>} : memref<128x16xf32, #tpu.memory_space<vmem>>, vector<1x16xf32>,
    %c2_i32 = arith.constant 2 : i32
    %25 = arith.addi %0, %c2_i32 : i32
    %26 = arith.index_cast %25 : i32 to index
    %27 = memref.load %arg1[%26] : memref<128xi32, #tpu.memory_space<smem>>
    %28 = arith.index_cast %27 : i32 to index
    %c0_12 = arith.constant 0 : index
    %29 = vector.load %arg3[%28, %c0_12] : memref<32x16xf32, #tpu.memory_space<vmem>>, vector<1x16xf32>
    %c2 = arith.constant 2 : index
    %c0_13 = arith.constant 0 : index
    %30 = vector.load %arg5[%c2, %c0_13] : memref<128x16xf32, #tpu.memory_space<vmem>>, vector<1x16xf32>
    tpu.vector_store %arg5[%c2, %c0_13], %29 {strides = array<i32>} : memref<128x16xf32, #tpu.memory_space<vmem>>, vector<1x16xf32>,
    %c2_i32_14 = arith.constant 2 : i32
    %31 = arith.addi %0, %c2_i32_14 : i32
    %32 = arith.index_cast %31 : i32 to index
    %33 = memref.load %arg2[%32] : memref<128xi32, #tpu.memory_space<smem>>
    %34 = arith.index_cast %33 : i32 to index
    %c0_15 = arith.constant 0 : index
    %35 = vector.load %arg3[%34, %c0_15] : memref<32x16xf32, #tpu.memory_space<vmem>>, vector<1x16xf32>
    %c2_16 = arith.constant 2 : index
    %c0_17 = arith.constant 0 : index
    %36 = vector.load %arg6[%c2_16, %c0_17] : memref<128x16xf32, #tpu.memory_space<vmem>>, vector<1x16xf32>
    tpu.vector_store %arg6[%c2_16, %c0_17], %35 {strides = array<i32>} : memref<128x16xf32, #tpu.memory_space<vmem>>, vector<1x16xf32>,
    %c3_i32 = arith.constant 3 : i32
    %37 = arith.addi %0, %c3_i32 : i32
    %38 = arith.index_cast %37 : i32 to index
    %39 = memref.load %arg1[%38] : memref<128xi32, #tpu.memory_space<smem>>
    %40 = arith.index_cast %39 : i32 to index
    %c0_18 = arith.constant 0 : index
    %41 = vector.load %arg3[%40, %c0_18] : memref<32x16xf32, #tpu.memory_space<vmem>>, vector<1x16xf32>
    %c3 = arith.constant 3 : index
    %c0_19 = arith.constant 0 : index
    %42 = vector.load %arg5[%c3, %c0_19] : memref<128x16xf32, #tpu.memory_space<vmem>>, vector<1x16xf32>
    tpu.vector_store %arg5[%c3, %c0_19], %41 {strides = array<i32>} : memref<128x16xf32, #tpu.memory_space<vmem>>, vector<1x16xf32>,
    %c3_i32_20 = arith.constant 3 : i32
    %43 = arith.addi %0, %c3_i32_20 : i32
    %44 = arith.index_cast %43 : i32 to index
    %45 = memref.load %arg2[%44] : memref<128xi32, #tpu.memory_space<smem>>
    %46 = arith.index_cast %45 : i32 to index
    %c0_21 = arith.constant 0 : index
    %47 = vector.load %arg3[%46, %c0_21] : memref<32x16xf32, #tpu.memory_space<vmem>>, vector<1x16xf32>
    %c3_22 = arith.constant 3 : index
    %c0_23 = arith.constant 0 : index
    %48 = vector.load %arg6[%c3_22, %c0_23] : memref<128x16xf32, #tpu.memory_space<vmem>>, vector<1x16xf32>
    tpu.vector_store %arg6[%c3_22, %c0_23], %47 {strides = array<i32>} : memref<128x16xf32, #tpu.memory_space<vmem>>, vector<1x16xf32>,
    %c4_i32 = arith.constant 4 : i32
    %49 = arith.addi %0, %c4_i32 : i32
    %50 = arith.index_cast %49 : i32 to index
    %51 = memref.load %arg1[%50] : memref<128xi32, #tpu.memory_space<smem>>
    %52 = arith.index_cast %51 : i32 to index
    %c0_24 = arith.constant 0 : index
    %53 = vector.load %arg3[%52, %c0_24] : memref<32x16xf32, #tpu.memory_space<vmem>>, vector<1x16xf32>
    %c4 = arith.constant 4 : index
    %c0_25 = arith.constant 0 : index
    %54 = vector.load %arg5[%c4, %c0_25] : memref<128x16xf32, #tpu.memory_space<vmem>>, vector<1x16xf32>
    tpu.vector_store %arg5[%c4, %c0_25], %53 {strides = array<i32>} : memref<128x16xf32, #tpu.memory_space<vmem>>, vector<1x16xf32>,
    %c4_i32_26 = arith.constant 4 : i32
    %55 = arith.addi %0, %c4_i32_26 : i32
    %56 = arith.index_cast %55 : i32 to index
    %57 = memref.load %arg2[%56] : memref<128xi32, #tpu.memory_space<smem>>
    %58 = arith.index_cast %57 : i32 to index
    %c0_27 = arith.constant 0 : index
    %59 = vector.load %arg3[%58, %c0_27] : memref<32x16xf32, #tpu.memory_space<vmem>>, vector<1x16xf32>
    %c4_28 = arith.constant 4 : index
    %c0_29 = arith.constant 0 : index
    %60 = vector.load %arg6[%c4_28, %c0_29] : memref<128x16xf32, #tpu.memory_space<vmem>>, vector<1x16xf32>
    tpu.vector_store %arg6[%c4_28, %c0_29], %59 {strides = array<i32>} : memref<128x16xf32, #tpu.memory_space<vmem>>, vector<1x16xf32>,
    %c5_i32 = arith.constant 5 : i32
    %61 = arith.addi %0, %c5_i32 : i32
    %62 = arith.index_cast %61 : i32 to index
    %63 = memref.load %arg1[%62] : memref<128xi32, #tpu.memory_space<smem>>
    %64 = arith.index_cast %63 : i32 to index
    %c0_30 = arith.constant 0 : index
    %65 = vector.load %arg3[%64, %c0_30] : memref<32x16xf32, #tpu.memory_space<vmem>>, vector<1x16xf32>
    %c5 = arith.constant 5 : index
    %c0_31 = arith.constant 0 : index
    %66 = vector.load %arg5[%c5, %c0_31] : memref<128x16xf32, #tpu.memory_space<vmem>>, vector<1x16xf32>
    tpu.vector_store %arg5[%c5, %c0_31], %65 {strides = array<i32>} : memref<128x16xf32, #tpu.memory_space<vmem>>, vector<1x16xf32>,
    %c5_i32_32 = arith.constant 5 : i32
    %67 = arith.addi %0, %c5_i32_32 : i32
    %68 = arith.index_cast %67 : i32 to index
    %69 = memref.load %arg2[%68] : memref<128xi32, #tpu.memory_space<smem>>
    %70 = arith.index_cast %69 : i32 to index
    %c0_33 = arith.constant 0 : index
    %71 = vector.load %arg3[%70, %c0_33] : memref<32x16xf32, #tpu.memory_space<vmem>>, vector<1x16xf32>
    %c5_34 = arith.constant 5 : index
    %c0_35 = arith.constant 0 : index
    %72 = vector.load %arg6[%c5_34, %c0_35] : memref<128x16xf32, #tpu.memory_space<vmem>>, vector<1x16xf32>
    tpu.vector_store %arg6[%c5_34, %c0_35], %71 {strides = array<i32>} : memref<128x16xf32, #tpu.memory_space<vmem>>, vector<1x16xf32>,
    %c6_i32 = arith.constant 6 : i32
    %73 = arith.addi %0, %c6_i32 : i32
    %74 = arith.index_cast %73 : i32 to index
    %75 = memref.load %arg1[%74] : memref<128xi32, #tpu.memory_space<smem>>
    %76 = arith.index_cast %75 : i32 to index
    %c0_36 = arith.constant 0 : index
    %77 = vector.load %arg3[%76, %c0_36] : memref<32x16xf32, #tpu.memory_space<vmem>>, vector<1x16xf32>
    %c6 = arith.constant 6 : index
    %c0_37 = arith.constant 0 : index
    %78 = vector.load %arg5[%c6, %c0_37] : memref<128x16xf32, #tpu.memory_space<vmem>>, vector<1x16xf32>
    tpu.vector_store %arg5[%c6, %c0_37], %77 {strides = array<i32>} : memref<128x16xf32, #tpu.memory_space<vmem>>, vector<1x16xf32>,
    %c6_i32_38 = arith.constant 6 : i32
    %79 = arith.addi %0, %c6_i32_38 : i32
    %80 = arith.index_cast %79 : i32 to index
    %81 = memref.load %arg2[%80] : memref<128xi32, #tpu.memory_space<smem>>
    %82 = arith.index_cast %81 : i32 to index
    %c0_39 = arith.constant 0 : index
    %83 = vector.load %arg3[%82, %c0_39] : memref<32x16xf32, #tpu.memory_space<vmem>>, vector<1x16xf32>
    %c6_40 = arith.constant 6 : index
    %c0_41 = arith.constant 0 : index
    %84 = vector.load %arg6[%c6_40, %c0_41] : memref<128x16xf32, #tpu.memory_space<vmem>>, vector<1x16xf32>
    tpu.vector_store %arg6[%c6_40, %c0_41], %83 {strides = array<i32>} : memref<128x16xf32, #tpu.memory_space<vmem>>, vector<1x16xf32>,
    %c7_i32 = arith.constant 7 : i32
    %85 = arith.addi %0, %c7_i32 : i32
    %86 = arith.index_cast %85 : i32 to index
    %87 = memref.load %arg1[%86] : memref<128xi32, #tpu.memory_space<smem>>
    %88 = arith.index_cast %87 : i32 to index
    %c0_42 = arith.constant 0 : index
    %89 = vector.load %arg3[%88, %c0_42] : memref<32x16xf32, #tpu.memory_space<vmem>>, vector<1x16xf32>
    %c7 = arith.constant 7 : index
    %c0_43 = arith.constant 0 : index
    %90 = vector.load %arg5[%c7, %c0_43] : memref<128x16xf32, #tpu.memory_space<vmem>>, vector<1x16xf32>
    tpu.vector_store %arg5[%c7, %c0_43], %89 {strides = array<i32>} : memref<128x16xf32, #tpu.memory_space<vmem>>, vector<1x16xf32>,
    %c7_i32_44 = arith.constant 7 : i32
    %91 = arith.addi %0, %c7_i32_44 : i32
    %92 = arith.index_cast %91 : i32 to index
    %93 = memref.load %arg2[%92] : memref<128xi32, #tpu.memory_space<smem>>
    %94 = arith.index_cast %93 : i32 to index
    %c0_45 = arith.constant 0 : index
    %95 = vector.load %arg3[%94, %c0_45] : memref<32x16xf32, #tpu.memory_space<vmem>>, vector<1x16xf32>
    %c7_46 = arith.constant 7 : index
    %c0_47 = arith.constant 0 : index
    %96 = vector.load %arg6[%c7_46, %c0_47] : memref<128x16xf32, #tpu.memory_space<vmem>>, vector<1x16xf32>
    tpu.vector_store %arg6[%c7_46, %c0_47], %95 {strides = array<i32>} : memref<128x16xf32, #tpu.memory_space<vmem>>, vector<1x16xf32>,
    %c8_i32 = arith.constant 8 : i32
    %97 = arith.addi %0, %c8_i32 : i32
    %98 = arith.index_cast %97 : i32 to index
    %99 = memref.load %arg1[%98] : memref<128xi32, #tpu.memory_space<smem>>
    %100 = arith.index_cast %99 : i32 to index
    %c0_48 = arith.constant 0 : index
    %101 = vector.load %arg3[%100, %c0_48] : memref<32x16xf32, #tpu.memory_space<vmem>>, vector<1x16xf32>
    %c8 = arith.constant 8 : index
    %c0_49 = arith.constant 0 : index
    %102 = vector.load %arg5[%c8, %c0_49] : memref<128x16xf32, #tpu.memory_space<vmem>>, vector<1x16xf32>
    tpu.vector_store %arg5[%c8, %c0_49], %101 {strides = array<i32>} : memref<128x16xf32, #tpu.memory_space<vmem>>, vector<1x16xf32>,
    %c8_i32_50 = arith.constant 8 : i32
    %103 = arith.addi %0, %c8_i32_50 : i32
    %104 = arith.index_cast %103 : i32 to index
    %105 = memref.load %arg2[%104] : memref<128xi32, #tpu.memory_space<smem>>
    %106 = arith.index_cast %105 : i32 to index
    %c0_51 = arith.constant 0 : index
    %107 = vector.load %arg3[%106, %c0_51] : memref<32x16xf32, #tpu.memory_space<vmem>>, vector<1x16xf32>
    %c8_52 = arith.constant 8 : index
    %c0_53 = arith.constant 0 : index
    %108 = vector.load %arg6[%c8_52, %c0_53] : memref<128x16xf32, #tpu.memory_space<vmem>>, vector<1x16xf32>
    tpu.vector_store %arg6[%c8_52, %c0_53], %107 {strides = array<i32>} : memref<128x16xf32, #tpu.memory_space<vmem>>, vector<1x16xf32>,
    %c9_i32 = arith.constant 9 : i32
    %109 = arith.addi %0, %c9_i32 : i32
    %110 = arith.index_cast %109 : i32 to index
    %111 = memref.load %arg1[%110] : memref<128xi32, #tpu.memory_space<smem>>
    %112 = arith.index_cast %111 : i32 to index
    %c0_54 = arith.constant 0 : index
    %113 = vector.load %arg3[%112, %c0_54] : memref<32x16xf32, #tpu.memory_space<vmem>>, vector<1x16xf32>
    %c9 = arith.constant 9 : index
    %c0_55 = arith.constant 0 : index
    %114 = vector.load %arg5[%c9, %c0_55] : memref<128x16xf32, #tpu.memory_space<vmem>>, vector<1x16xf32>
    tpu.vector_store %arg5[%c9, %c0_55], %113 {strides = array<i32>} : memref<128x16xf32, #tpu.memory_space<vmem>>, vector<1x16xf32>,
    %c9_i32_56 = arith.constant 9 : i32
    %115 = arith.addi %0, %c9_i32_56 : i32
    %116 = arith.index_cast %115 : i32 to index
    %117 = memref.load %arg2[%116] : memref<128xi32, #tpu.memory_space<smem>>
    %118 = arith.index_cast %117 : i32 to index
    %c0_57 = arith.constant 0 : index
    %119 = vector.load %arg3[%118, %c0_57] : memref<32x16xf32, #tpu.memory_space<vmem>>, vector<1x16xf32>
    %c9_58 = arith.constant 9 : index
    %c0_59 = arith.constant 0 : index
    %120 = vector.load %arg6[%c9_58, %c0_59] : memref<128x16xf32, #tpu.memory_space<vmem>>, vector<1x16xf32>
    tpu.vector_store %arg6[%c9_58, %c0_59], %119 {strides = array<i32>} : memref<128x16xf32, #tpu.memory_space<vmem>>, vector<1x16xf32>,
    %c10_i32 = arith.constant 10 : i32
    %121 = arith.addi %0, %c10_i32 : i32
    %122 = arith.index_cast %121 : i32 to index
    %123 = memref.load %arg1[%122] : memref<128xi32, #tpu.memory_space<smem>>
    %124 = arith.index_cast %123 : i32 to index
    %c0_60 = arith.constant 0 : index
    %125 = vector.load %arg3[%124, %c0_60] : memref<32x16xf32, #tpu.memory_space<vmem>>, vector<1x16xf32>
    %c10 = arith.constant 10 : index
    %c0_61 = arith.constant 0 : index
    %126 = vector.load %arg5[%c10, %c0_61] : memref<128x16xf32, #tpu.memory_space<vmem>>, vector<1x16xf32>
    tpu.vector_store %arg5[%c10, %c0_61], %125 {strides = array<i32>} : memref<128x16xf32, #tpu.memory_space<vmem>>, vector<1x16xf32>,
    %c10_i32_62 = arith.constant 10 : i32
    %127 = arith.addi %0, %c10_i32_62 : i32
    %128 = arith.index_cast %127 : i32 to index
    %129 = memref.load %arg2[%128] : memref<128xi32, #tpu.memory_space<smem>>
    %130 = arith.index_cast %129 : i32 to index
    %c0_63 = arith.constant 0 : index
    %131 = vector.load %arg3[%130, %c0_63] : memref<32x16xf32, #tpu.memory_space<vmem>>, vector<1x16xf32>
    %c10_64 = arith.constant 10 : index
    %c0_65 = arith.constant 0 : index
    %132 = vector.load %arg6[%c10_64, %c0_65] : memref<128x16xf32, #tpu.memory_space<vmem>>, vector<1x16xf32>
    tpu.vector_store %arg6[%c10_64, %c0_65], %131 {strides = array<i32>} : memref<128x16xf32, #tpu.memory_space<vmem>>, vector<1x16xf32>,
    %c11_i32 = arith.constant 11 : i32
    %133 = arith.addi %0, %c11_i32 : i32
    %134 = arith.index_cast %133 : i32 to index
    %135 = memref.load %arg1[%134] : memref<128xi32, #tpu.memory_space<smem>>
    %136 = arith.index_cast %135 : i32 to index
    %c0_66 = arith.constant 0 : index
    %137 = vector.load %arg3[%136, %c0_66] : memref<32x16xf32, #tpu.memory_space<vmem>>, vector<1x16xf32>
    %c11 = arith.constant 11 : index
    %c0_67 = arith.constant 0 : index
    %138 = vector.load %arg5[%c11, %c0_67] : memref<128x16xf32, #tpu.memory_space<vmem>>, vector<1x16xf32>
    tpu.vector_store %arg5[%c11, %c0_67], %137 {strides = array<i32>} : memref<128x16xf32, #tpu.memory_space<vmem>>, vector<1x16xf32>,
    %c11_i32_68 = arith.constant 11 : i32
    %139 = arith.addi %0, %c11_i32_68 : i32
    %140 = arith.index_cast %139 : i32 to index
    %141 = memref.load %arg2[%140] : memref<128xi32, #tpu.memory_space<smem>>
    %142 = arith.index_cast %141 : i32 to index
    %c0_69 = arith.constant 0 : index
    %143 = vector.load %arg3[%142, %c0_69] : memref<32x16xf32, #tpu.memory_space<vmem>>, vector<1x16xf32>
    %c11_70 = arith.constant 11 : index
    %c0_71 = arith.constant 0 : index
    %144 = vector.load %arg6[%c11_70, %c0_71] : memref<128x16xf32, #tpu.memory_space<vmem>>, vector<1x16xf32>
    tpu.vector_store %arg6[%c11_70, %c0_71], %143 {strides = array<i32>} : memref<128x16xf32, #tpu.memory_space<vmem>>, vector<1x16xf32>,
    %c12_i32 = arith.constant 12 : i32
    %145 = arith.addi %0, %c12_i32 : i32
    %146 = arith.index_cast %145 : i32 to index
    %147 = memref.load %arg1[%146] : memref<128xi32, #tpu.memory_space<smem>>
    %148 = arith.index_cast %147 : i32 to index
    %c0_72 = arith.constant 0 : index
    %149 = vector.load %arg3[%148, %c0_72] : memref<32x16xf32, #tpu.memory_space<vmem>>, vector<1x16xf32>
    %c12 = arith.constant 12 : index
    %c0_73 = arith.constant 0 : index
    %150 = vector.load %arg5[%c12, %c0_73] : memref<128x16xf32, #tpu.memory_space<vmem>>, vector<1x16xf32>
    tpu.vector_store %arg5[%c12, %c0_73], %149 {strides = array<i32>} : memref<128x16xf32, #tpu.memory_space<vmem>>, vector<1x16xf32>,
    %c12_i32_74 = arith.constant 12 : i32
    %151 = arith.addi %0, %c12_i32_74 : i32
    %152 = arith.index_cast %151 : i32 to index
    %153 = memref.load %arg2[%152] : memref<128xi32, #tpu.memory_space<smem>>
    %154 = arith.index_cast %153 : i32 to index
    %c0_75 = arith.constant 0 : index
    %155 = vector.load %arg3[%154, %c0_75] : memref<32x16xf32, #tpu.memory_space<vmem>>, vector<1x16xf32>
    %c12_76 = arith.constant 12 : index
    %c0_77 = arith.constant 0 : index
    %156 = vector.load %arg6[%c12_76, %c0_77] : memref<128x16xf32, #tpu.memory_space<vmem>>, vector<1x16xf32>
    tpu.vector_store %arg6[%c12_76, %c0_77], %155 {strides = array<i32>} : memref<128x16xf32, #tpu.memory_space<vmem>>, vector<1x16xf32>,
    %c13_i32 = arith.constant 13 : i32
    %157 = arith.addi %0, %c13_i32 : i32
    %158 = arith.index_cast %157 : i32 to index
    %159 = memref.load %arg1[%158] : memref<128xi32, #tpu.memory_space<smem>>
    %160 = arith.index_cast %159 : i32 to index
    %c0_78 = arith.constant 0 : index
    %161 = vector.load %arg3[%160, %c0_78] : memref<32x16xf32, #tpu.memory_space<vmem>>, vector<1x16xf32>
    %c13 = arith.constant 13 : index
    %c0_79 = arith.constant 0 : index
    %162 = vector.load %arg5[%c13, %c0_79] : memref<128x16xf32, #tpu.memory_space<vmem>>, vector<1x16xf32>
    tpu.vector_store %arg5[%c13, %c0_79], %161 {strides = array<i32>} : memref<128x16xf32, #tpu.memory_space<vmem>>, vector<1x16xf32>,
    %c13_i32_80 = arith.constant 13 : i32
    %163 = arith.addi %0, %c13_i32_80 : i32
    %164 = arith.index_cast %163 : i32 to index
    %165 = memref.load %arg2[%164] : memref<128xi32, #tpu.memory_space<smem>>
    %166 = arith.index_cast %165 : i32 to index
    %c0_81 = arith.constant 0 : index
    %167 = vector.load %arg3[%166, %c0_81] : memref<32x16xf32, #tpu.memory_space<vmem>>, vector<1x16xf32>
    %c13_82 = arith.constant 13 : index
    %c0_83 = arith.constant 0 : index
    %168 = vector.load %arg6[%c13_82, %c0_83] : memref<128x16xf32, #tpu.memory_space<vmem>>, vector<1x16xf32>
    tpu.vector_store %arg6[%c13_82, %c0_83], %167 {strides = array<i32>} : memref<128x16xf32, #tpu.memory_space<vmem>>, vector<1x16xf32>,
    %c14_i32 = arith.constant 14 : i32
    %169 = arith.addi %0, %c14_i32 : i32
    %170 = arith.index_cast %169 : i32 to index
    %171 = memref.load %arg1[%170] : memref<128xi32, #tpu.memory_space<smem>>
    %172 = arith.index_cast %171 : i32 to index
    %c0_84 = arith.constant 0 : index
    %173 = vector.load %arg3[%172, %c0_84] : memref<32x16xf32, #tpu.memory_space<vmem>>, vector<1x16xf32>
    %c14 = arith.constant 14 : index
    %c0_85 = arith.constant 0 : index
    %174 = vector.load %arg5[%c14, %c0_85] : memref<128x16xf32, #tpu.memory_space<vmem>>, vector<1x16xf32>
    tpu.vector_store %arg5[%c14, %c0_85], %173 {strides = array<i32>} : memref<128x16xf32, #tpu.memory_space<vmem>>, vector<1x16xf32>,
    %c14_i32_86 = arith.constant 14 : i32
    %175 = arith.addi %0, %c14_i32_86 : i32
    %176 = arith.index_cast %175 : i32 to index
    %177 = memref.load %arg2[%176] : memref<128xi32, #tpu.memory_space<smem>>
    %178 = arith.index_cast %177 : i32 to index
    %c0_87 = arith.constant 0 : index
    %179 = vector.load %arg3[%178, %c0_87] : memref<32x16xf32, #tpu.memory_space<vmem>>, vector<1x16xf32>
    %c14_88 = arith.constant 14 : index
    %c0_89 = arith.constant 0 : index
    %180 = vector.load %arg6[%c14_88, %c0_89] : memref<128x16xf32, #tpu.memory_space<vmem>>, vector<1x16xf32>
    tpu.vector_store %arg6[%c14_88, %c0_89], %179 {strides = array<i32>} : memref<128x16xf32, #tpu.memory_space<vmem>>, vector<1x16xf32>,
    %c15_i32 = arith.constant 15 : i32
    %181 = arith.addi %0, %c15_i32 : i32
    %182 = arith.index_cast %181 : i32 to index
    %183 = memref.load %arg1[%182] : memref<128xi32, #tpu.memory_space<smem>>
    %184 = arith.index_cast %183 : i32 to index
    %c0_90 = arith.constant 0 : index
    %185 = vector.load %arg3[%184, %c0_90] : memref<32x16xf32, #tpu.memory_space<vmem>>, vector<1x16xf32>
    %c15 = arith.constant 15 : index
    %c0_91 = arith.constant 0 : index
    %186 = vector.load %arg5[%c15, %c0_91] : memref<128x16xf32, #tpu.memory_space<vmem>>, vector<1x16xf32>
    tpu.vector_store %arg5[%c15, %c0_91], %185 {strides = array<i32>} : memref<128x16xf32, #tpu.memory_space<vmem>>, vector<1x16xf32>,
    %c15_i32_92 = arith.constant 15 : i32
    %187 = arith.addi %0, %c15_i32_92 : i32
    %188 = arith.index_cast %187 : i32 to index
    %189 = memref.load %arg2[%188] : memref<128xi32, #tpu.memory_space<smem>>
    %190 = arith.index_cast %189 : i32 to index
    %c0_93 = arith.constant 0 : index
    %191 = vector.load %arg3[%190, %c0_93] : memref<32x16xf32, #tpu.memory_space<vmem>>, vector<1x16xf32>
    %c15_94 = arith.constant 15 : index
    %c0_95 = arith.constant 0 : index
    %192 = vector.load %arg6[%c15_94, %c0_95] : memref<128x16xf32, #tpu.memory_space<vmem>>, vector<1x16xf32>
    tpu.vector_store %arg6[%c15_94, %c0_95], %191 {strides = array<i32>} : memref<128x16xf32, #tpu.memory_space<vmem>>, vector<1x16xf32>,
    %c16_i32 = arith.constant 16 : i32
    %193 = arith.addi %0, %c16_i32 : i32
    %194 = arith.index_cast %193 : i32 to index
    %195 = memref.load %arg1[%194] : memref<128xi32, #tpu.memory_space<smem>>
    %196 = arith.index_cast %195 : i32 to index
    %c0_96 = arith.constant 0 : index
    %197 = vector.load %arg3[%196, %c0_96] : memref<32x16xf32, #tpu.memory_space<vmem>>, vector<1x16xf32>
    %c16 = arith.constant 16 : index
    %c0_97 = arith.constant 0 : index
    %198 = vector.load %arg5[%c16, %c0_97] : memref<128x16xf32, #tpu.memory_space<vmem>>, vector<1x16xf32>
    tpu.vector_store %arg5[%c16, %c0_97], %197 {strides = array<i32>} : memref<128x16xf32, #tpu.memory_space<vmem>>, vector<1x16xf32>,
    %c16_i32_98 = arith.constant 16 : i32
    %199 = arith.addi %0, %c16_i32_98 : i32
    %200 = arith.index_cast %199 : i32 to index
    %201 = memref.load %arg2[%200] : memref<128xi32, #tpu.memory_space<smem>>
    %202 = arith.index_cast %201 : i32 to index
    %c0_99 = arith.constant 0 : index
    %203 = vector.load %arg3[%202, %c0_99] : memref<32x16xf32, #tpu.memory_space<vmem>>, vector<1x16xf32>
    %c16_100 = arith.constant 16 : index
    %c0_101 = arith.constant 0 : index
    %204 = vector.load %arg6[%c16_100, %c0_101] : memref<128x16xf32, #tpu.memory_space<vmem>>, vector<1x16xf32>
    tpu.vector_store %arg6[%c16_100, %c0_101], %203 {strides = array<i32>} : memref<128x16xf32, #tpu.memory_space<vmem>>, vector<1x16xf32>,
    %c17_i32 = arith.constant 17 : i32
    %205 = arith.addi %0, %c17_i32 : i32
    %206 = arith.index_cast %205 : i32 to index
    %207 = memref.load %arg1[%206] : memref<128xi32, #tpu.memory_space<smem>>
    %208 = arith.index_cast %207 : i32 to index
    %c0_102 = arith.constant 0 : index
    %209 = vector.load %arg3[%208, %c0_102] : memref<32x16xf32, #tpu.memory_space<vmem>>, vector<1x16xf32>
    %c17 = arith.constant 17 : index
    %c0_103 = arith.constant 0 : index
    %210 = vector.load %arg5[%c17, %c0_103] : memref<128x16xf32, #tpu.memory_space<vmem>>, vector<1x16xf32>
    tpu.vector_store %arg5[%c17, %c0_103], %209 {strides = array<i32>} : memref<128x16xf32, #tpu.memory_space<vmem>>, vector<1x16xf32>,
    %c17_i32_104 = arith.constant 17 : i32
    %211 = arith.addi %0, %c17_i32_104 : i32
    %212 = arith.index_cast %211 : i32 to index
    %213 = memref.load %arg2[%212] : memref<128xi32, #tpu.memory_space<smem>>
    %214 = arith.index_cast %213 : i32 to index
    %c0_105 = arith.constant 0 : index
    %215 = vector.load %arg3[%214, %c0_105] : memref<32x16xf32, #tpu.memory_space<vmem>>, vector<1x16xf32>
    %c17_106 = arith.constant 17 : index
    %c0_107 = arith.constant 0 : index
    %216 = vector.load %arg6[%c17_106, %c0_107] : memref<128x16xf32, #tpu.memory_space<vmem>>, vector<1x16xf32>
    tpu.vector_store %arg6[%c17_106, %c0_107], %215 {strides = array<i32>} : memref<128x16xf32, #tpu.memory_space<vmem>>, vector<1x16xf32>,
    %c18_i32 = arith.constant 18 : i32
    %217 = arith.addi %0, %c18_i32 : i32
    %218 = arith.index_cast %217 : i32 to index
    %219 = memref.load %arg1[%218] : memref<128xi32, #tpu.memory_space<smem>>
    %220 = arith.index_cast %219 : i32 to index
    %c0_108 = arith.constant 0 : index
    %221 = vector.load %arg3[%220, %c0_108] : memref<32x16xf32, #tpu.memory_space<vmem>>, vector<1x16xf32>
    %c18 = arith.constant 18 : index
    %c0_109 = arith.constant 0 : index
    %222 = vector.load %arg5[%c18, %c0_109] : memref<128x16xf32, #tpu.memory_space<vmem>>, vector<1x16xf32>
    tpu.vector_store %arg5[%c18, %c0_109], %221 {strides = array<i32>} : memref<128x16xf32, #tpu.memory_space<vmem>>, vector<1x16xf32>,
    %c18_i32_110 = arith.constant 18 : i32
    %223 = arith.addi %0, %c18_i32_110 : i32
    %224 = arith.index_cast %223 : i32 to index
    %225 = memref.load %arg2[%224] : memref<128xi32, #tpu.memory_space<smem>>
    %226 = arith.index_cast %225 : i32 to index
    %c0_111 = arith.constant 0 : index
    %227 = vector.load %arg3[%226, %c0_111] : memref<32x16xf32, #tpu.memory_space<vmem>>, vector<1x16xf32>
    %c18_112 = arith.constant 18 : index
    %c0_113 = arith.constant 0 : index
    %228 = vector.load %arg6[%c18_112, %c0_113] : memref<128x16xf32, #tpu.memory_space<vmem>>, vector<1x16xf32>
    tpu.vector_store %arg6[%c18_112, %c0_113], %227 {strides = array<i32>} : memref<128x16xf32, #tpu.memory_space<vmem>>, vector<1x16xf32>,
    %c19_i32 = arith.constant 19 : i32
    %229 = arith.addi %0, %c19_i32 : i32
    %230 = arith.index_cast %229 : i32 to index
    %231 = memref.load %arg1[%230] : memref<128xi32, #tpu.memory_space<smem>>
    %232 = arith.index_cast %231 : i32 to index
    %c0_114 = arith.constant 0 : index
    %233 = vector.load %arg3[%232, %c0_114] : memref<32x16xf32, #tpu.memory_space<vmem>>, vector<1x16xf32>
    %c19 = arith.constant 19 : index
    %c0_115 = arith.constant 0 : index
    %234 = vector.load %arg5[%c19, %c0_115] : memref<128x16xf32, #tpu.memory_space<vmem>>, vector<1x16xf32>
    tpu.vector_store %arg5[%c19, %c0_115], %233 {strides = array<i32>} : memref<128x16xf32, #tpu.memory_space<vmem>>, vector<1x16xf32>,
    %c19_i32_116 = arith.constant 19 : i32
    %235 = arith.addi %0, %c19_i32_116 : i32
    %236 = arith.index_cast %235 : i32 to index
    %237 = memref.load %arg2[%236] : memref<128xi32, #tpu.memory_space<smem>>
    %238 = arith.index_cast %237 : i32 to index
    %c0_117 = arith.constant 0 : index
    %239 = vector.load %arg3[%238, %c0_117] : memref<32x16xf32, #tpu.memory_space<vmem>>, vector<1x16xf32>
    %c19_118 = arith.constant 19 : index
    %c0_119 = arith.constant 0 : index
    %240 = vector.load %arg6[%c19_118, %c0_119] : memref<128x16xf32, #tpu.memory_space<vmem>>, vector<1x16xf32>
    tpu.vector_store %arg6[%c19_118, %c0_119], %239 {strides = array<i32>} : memref<128x16xf32, #tpu.memory_space<vmem>>, vector<1x16xf32>,
    %c20_i32 = arith.constant 20 : i32
    %241 = arith.addi %0, %c20_i32 : i32
    %242 = arith.index_cast %241 : i32 to index
    %243 = memref.load %arg1[%242] : memref<128xi32, #tpu.memory_space<smem>>
    %244 = arith.index_cast %243 : i32 to index
    %c0_120 = arith.constant 0 : index
    %245 = vector.load %arg3[%244, %c0_120] : memref<32x16xf32, #tpu.memory_space<vmem>>, vector<1x16xf32>
    %c20 = arith.constant 20 : index
    %c0_121 = arith.constant 0 : index
    %246 = vector.load %arg5[%c20, %c0_121] : memref<128x16xf32, #tpu.memory_space<vmem>>, vector<1x16xf32>
    tpu.vector_store %arg5[%c20, %c0_121], %245 {strides = array<i32>} : memref<128x16xf32, #tpu.memory_space<vmem>>, vector<1x16xf32>,
    %c20_i32_122 = arith.constant 20 : i32
    %247 = arith.addi %0, %c20_i32_122 : i32
    %248 = arith.index_cast %247 : i32 to index
    %249 = memref.load %arg2[%248] : memref<128xi32, #tpu.memory_space<smem>>
    %250 = arith.index_cast %249 : i32 to index
    %c0_123 = arith.constant 0 : index
    %251 = vector.load %arg3[%250, %c0_123] : memref<32x16xf32, #tpu.memory_space<vmem>>, vector<1x16xf32>
    %c20_124 = arith.constant 20 : index
    %c0_125 = arith.constant 0 : index
    %252 = vector.load %arg6[%c20_124, %c0_125] : memref<128x16xf32, #tpu.memory_space<vmem>>, vector<1x16xf32>
    tpu.vector_store %arg6[%c20_124, %c0_125], %251 {strides = array<i32>} : memref<128x16xf32, #tpu.memory_space<vmem>>, vector<1x16xf32>,
    %c21_i32 = arith.constant 21 : i32
    %253 = arith.addi %0, %c21_i32 : i32
    %254 = arith.index_cast %253 : i32 to index
    %255 = memref.load %arg1[%254] : memref<128xi32, #tpu.memory_space<smem>>
    %256 = arith.index_cast %255 : i32 to index
    %c0_126 = arith.constant 0 : index
    %257 = vector.load %arg3[%256, %c0_126] : memref<32x16xf32, #tpu.memory_space<vmem>>, vector<1x16xf32>
    %c21 = arith.constant 21 : index
    %c0_127 = arith.constant 0 : index
    %258 = vector.load %arg5[%c21, %c0_127] : memref<128x16xf32, #tpu.memory_space<vmem>>, vector<1x16xf32>
    tpu.vector_store %arg5[%c21, %c0_127], %257 {strides = array<i32>} : memref<128x16xf32, #tpu.memory_space<vmem>>, vector<1x16xf32>,
    %c21_i32_128 = arith.constant 21 : i32
    %259 = arith.addi %0, %c21_i32_128 : i32
    %260 = arith.index_cast %259 : i32 to index
    %261 = memref.load %arg2[%260] : memref<128xi32, #tpu.memory_space<smem>>
    %262 = arith.index_cast %261 : i32 to index
    %c0_129 = arith.constant 0 : index
    %263 = vector.load %arg3[%262, %c0_129] : memref<32x16xf32, #tpu.memory_space<vmem>>, vector<1x16xf32>
    %c21_130 = arith.constant 21 : index
    %c0_131 = arith.constant 0 : index
    %264 = vector.load %arg6[%c21_130, %c0_131] : memref<128x16xf32, #tpu.memory_space<vmem>>, vector<1x16xf32>
    tpu.vector_store %arg6[%c21_130, %c0_131], %263 {strides = array<i32>} : memref<128x16xf32, #tpu.memory_space<vmem>>, vector<1x16xf32>,
    %c22_i32 = arith.constant 22 : i32
    %265 = arith.addi %0, %c22_i32 : i32
    %266 = arith.index_cast %265 : i32 to index
    %267 = memref.load %arg1[%266] : memref<128xi32, #tpu.memory_space<smem>>
    %268 = arith.index_cast %267 : i32 to index
    %c0_132 = arith.constant 0 : index
    %269 = vector.load %arg3[%268, %c0_132] : memref<32x16xf32, #tpu.memory_space<vmem>>, vector<1x16xf32>
    %c22 = arith.constant 22 : index
    %c0_133 = arith.constant 0 : index
    %270 = vector.load %arg5[%c22, %c0_133] : memref<128x16xf32, #tpu.memory_space<vmem>>, vector<1x16xf32>
    tpu.vector_store %arg5[%c22, %c0_133], %269 {strides = array<i32>} : memref<128x16xf32, #tpu.memory_space<vmem>>, vector<1x16xf32>,
    %c22_i32_134 = arith.constant 22 : i32
    %271 = arith.addi %0, %c22_i32_134 : i32
    %272 = arith.index_cast %271 : i32 to index
    %273 = memref.load %arg2[%272] : memref<128xi32, #tpu.memory_space<smem>>
    %274 = arith.index_cast %273 : i32 to index
    %c0_135 = arith.constant 0 : index
    %275 = vector.load %arg3[%274, %c0_135] : memref<32x16xf32, #tpu.memory_space<vmem>>, vector<1x16xf32>
    %c22_136 = arith.constant 22 : index
    %c0_137 = arith.constant 0 : index
    %276 = vector.load %arg6[%c22_136, %c0_137] : memref<128x16xf32, #tpu.memory_space<vmem>>, vector<1x16xf32>
    tpu.vector_store %arg6[%c22_136, %c0_137], %275 {strides = array<i32>} : memref<128x16xf32, #tpu.memory_space<vmem>>, vector<1x16xf32>,
    %c23_i32 = arith.constant 23 : i32
    %277 = arith.addi %0, %c23_i32 : i32
    %278 = arith.index_cast %277 : i32 to index
    %279 = memref.load %arg1[%278] : memref<128xi32, #tpu.memory_space<smem>>
    %280 = arith.index_cast %279 : i32 to index
    %c0_138 = arith.constant 0 : index
    %281 = vector.load %arg3[%280, %c0_138] : memref<32x16xf32, #tpu.memory_space<vmem>>, vector<1x16xf32>
    %c23 = arith.constant 23 : index
    %c0_139 = arith.constant 0 : index
    %282 = vector.load %arg5[%c23, %c0_139] : memref<128x16xf32, #tpu.memory_space<vmem>>, vector<1x16xf32>
    tpu.vector_store %arg5[%c23, %c0_139], %281 {strides = array<i32>} : memref<128x16xf32, #tpu.memory_space<vmem>>, vector<1x16xf32>,
    %c23_i32_140 = arith.constant 23 : i32
    %283 = arith.addi %0, %c23_i32_140 : i32
    %284 = arith.index_cast %283 : i32 to index
    %285 = memref.load %arg2[%284] : memref<128xi32, #tpu.memory_space<smem>>
    %286 = arith.index_cast %285 : i32 to index
    %c0_141 = arith.constant 0 : index
    %287 = vector.load %arg3[%286, %c0_141] : memref<32x16xf32, #tpu.memory_space<vmem>>, vector<1x16xf32>
    %c23_142 = arith.constant 23 : index
    %c0_143 = arith.constant 0 : index
    %288 = vector.load %arg6[%c23_142, %c0_143] : memref<128x16xf32, #tpu.memory_space<vmem>>, vector<1x16xf32>
    tpu.vector_store %arg6[%c23_142, %c0_143], %287 {strides = array<i32>} : memref<128x16xf32, #tpu.memory_space<vmem>>, vector<1x16xf32>,
    %c24_i32 = arith.constant 24 : i32
    %289 = arith.addi %0, %c24_i32 : i32
    %290 = arith.index_cast %289 : i32 to index
    %291 = memref.load %arg1[%290] : memref<128xi32, #tpu.memory_space<smem>>
    %292 = arith.index_cast %291 : i32 to index
    %c0_144 = arith.constant 0 : index
    %293 = vector.load %arg3[%292, %c0_144] : memref<32x16xf32, #tpu.memory_space<vmem>>, vector<1x16xf32>
    %c24 = arith.constant 24 : index
    %c0_145 = arith.constant 0 : index
    %294 = vector.load %arg5[%c24, %c0_145] : memref<128x16xf32, #tpu.memory_space<vmem>>, vector<1x16xf32>
    tpu.vector_store %arg5[%c24, %c0_145], %293 {strides = array<i32>} : memref<128x16xf32, #tpu.memory_space<vmem>>, vector<1x16xf32>,
    %c24_i32_146 = arith.constant 24 : i32
    %295 = arith.addi %0, %c24_i32_146 : i32
    %296 = arith.index_cast %295 : i32 to index
    %297 = memref.load %arg2[%296] : memref<128xi32, #tpu.memory_space<smem>>
    %298 = arith.index_cast %297 : i32 to index
    %c0_147 = arith.constant 0 : index
    %299 = vector.load %arg3[%298, %c0_147] : memref<32x16xf32, #tpu.memory_space<vmem>>, vector<1x16xf32>
    %c24_148 = arith.constant 24 : index
    %c0_149 = arith.constant 0 : index
    %300 = vector.load %arg6[%c24_148, %c0_149] : memref<128x16xf32, #tpu.memory_space<vmem>>, vector<1x16xf32>
    tpu.vector_store %arg6[%c24_148, %c0_149], %299 {strides = array<i32>} : memref<128x16xf32, #tpu.memory_space<vmem>>, vector<1x16xf32>,
    %c25_i32 = arith.constant 25 : i32
    %301 = arith.addi %0, %c25_i32 : i32
    %302 = arith.index_cast %301 : i32 to index
    %303 = memref.load %arg1[%302] : memref<128xi32, #tpu.memory_space<smem>>
    %304 = arith.index_cast %303 : i32 to index
    %c0_150 = arith.constant 0 : index
    %305 = vector.load %arg3[%304, %c0_150] : memref<32x16xf32, #tpu.memory_space<vmem>>, vector<1x16xf32>
    %c25 = arith.constant 25 : index
    %c0_151 = arith.constant 0 : index
    %306 = vector.load %arg5[%c25, %c0_151] : memref<128x16xf32, #tpu.memory_space<vmem>>, vector<1x16xf32>
    tpu.vector_store %arg5[%c25, %c0_151], %305 {strides = array<i32>} : memref<128x16xf32, #tpu.memory_space<vmem>>, vector<1x16xf32>,
    %c25_i32_152 = arith.constant 25 : i32
    %307 = arith.addi %0, %c25_i32_152 : i32
    %308 = arith.index_cast %307 : i32 to index
    %309 = memref.load %arg2[%308] : memref<128xi32, #tpu.memory_space<smem>>
    %310 = arith.index_cast %309 : i32 to index
    %c0_153 = arith.constant 0 : index
    %311 = vector.load %arg3[%310, %c0_153] : memref<32x16xf32, #tpu.memory_space<vmem>>, vector<1x16xf32>
    %c25_154 = arith.constant 25 : index
    %c0_155 = arith.constant 0 : index
    %312 = vector.load %arg6[%c25_154, %c0_155] : memref<128x16xf32, #tpu.memory_space<vmem>>, vector<1x16xf32>
    tpu.vector_store %arg6[%c25_154, %c0_155], %311 {strides = array<i32>} : memref<128x16xf32, #tpu.memory_space<vmem>>, vector<1x16xf32>,
    %c26_i32 = arith.constant 26 : i32
    %313 = arith.addi %0, %c26_i32 : i32
    %314 = arith.index_cast %313 : i32 to index
    %315 = memref.load %arg1[%314] : memref<128xi32, #tpu.memory_space<smem>>
    %316 = arith.index_cast %315 : i32 to index
    %c0_156 = arith.constant 0 : index
    %317 = vector.load %arg3[%316, %c0_156] : memref<32x16xf32, #tpu.memory_space<vmem>>, vector<1x16xf32>
    %c26 = arith.constant 26 : index
    %c0_157 = arith.constant 0 : index
    %318 = vector.load %arg5[%c26, %c0_157] : memref<128x16xf32, #tpu.memory_space<vmem>>, vector<1x16xf32>
    tpu.vector_store %arg5[%c26, %c0_157], %317 {strides = array<i32>} : memref<128x16xf32, #tpu.memory_space<vmem>>, vector<1x16xf32>,
    %c26_i32_158 = arith.constant 26 : i32
    %319 = arith.addi %0, %c26_i32_158 : i32
    %320 = arith.index_cast %319 : i32 to index
    %321 = memref.load %arg2[%320] : memref<128xi32, #tpu.memory_space<smem>>
    %322 = arith.index_cast %321 : i32 to index
    %c0_159 = arith.constant 0 : index
    %323 = vector.load %arg3[%322, %c0_159] : memref<32x16xf32, #tpu.memory_space<vmem>>, vector<1x16xf32>
    %c26_160 = arith.constant 26 : index
    %c0_161 = arith.constant 0 : index
    %324 = vector.load %arg6[%c26_160, %c0_161] : memref<128x16xf32, #tpu.memory_space<vmem>>, vector<1x16xf32>
    tpu.vector_store %arg6[%c26_160, %c0_161], %323 {strides = array<i32>} : memref<128x16xf32, #tpu.memory_space<vmem>>, vector<1x16xf32>,
    %c27_i32 = arith.constant 27 : i32
    %325 = arith.addi %0, %c27_i32 : i32
    %326 = arith.index_cast %325 : i32 to index
    %327 = memref.load %arg1[%326] : memref<128xi32, #tpu.memory_space<smem>>
    %328 = arith.index_cast %327 : i32 to index
    %c0_162 = arith.constant 0 : index
    %329 = vector.load %arg3[%328, %c0_162] : memref<32x16xf32, #tpu.memory_space<vmem>>, vector<1x16xf32>
    %c27 = arith.constant 27 : index
    %c0_163 = arith.constant 0 : index
    %330 = vector.load %arg5[%c27, %c0_163] : memref<128x16xf32, #tpu.memory_space<vmem>>, vector<1x16xf32>
    tpu.vector_store %arg5[%c27, %c0_163], %329 {strides = array<i32>} : memref<128x16xf32, #tpu.memory_space<vmem>>, vector<1x16xf32>,
    %c27_i32_164 = arith.constant 27 : i32
    %331 = arith.addi %0, %c27_i32_164 : i32
    %332 = arith.index_cast %331 : i32 to index
    %333 = memref.load %arg2[%332] : memref<128xi32, #tpu.memory_space<smem>>
    %334 = arith.index_cast %333 : i32 to index
    %c0_165 = arith.constant 0 : index
    %335 = vector.load %arg3[%334, %c0_165] : memref<32x16xf32, #tpu.memory_space<vmem>>, vector<1x16xf32>
    %c27_166 = arith.constant 27 : index
    %c0_167 = arith.constant 0 : index
    %336 = vector.load %arg6[%c27_166, %c0_167] : memref<128x16xf32, #tpu.memory_space<vmem>>, vector<1x16xf32>
    tpu.vector_store %arg6[%c27_166, %c0_167], %335 {strides = array<i32>} : memref<128x16xf32, #tpu.memory_space<vmem>>, vector<1x16xf32>,
    %c28_i32 = arith.constant 28 : i32
    %337 = arith.addi %0, %c28_i32 : i32
    %338 = arith.index_cast %337 : i32 to index
    %339 = memref.load %arg1[%338] : memref<128xi32, #tpu.memory_space<smem>>
    %340 = arith.index_cast %339 : i32 to index
    %c0_168 = arith.constant 0 : index
    %341 = vector.load %arg3[%340, %c0_168] : memref<32x16xf32, #tpu.memory_space<vmem>>, vector<1x16xf32>
    %c28 = arith.constant 28 : index
    %c0_169 = arith.constant 0 : index
    %342 = vector.load %arg5[%c28, %c0_169] : memref<128x16xf32, #tpu.memory_space<vmem>>, vector<1x16xf32>
    tpu.vector_store %arg5[%c28, %c0_169], %341 {strides = array<i32>} : memref<128x16xf32, #tpu.memory_space<vmem>>, vector<1x16xf32>,
    %c28_i32_170 = arith.constant 28 : i32
    %343 = arith.addi %0, %c28_i32_170 : i32
    %344 = arith.index_cast %343 : i32 to index
    %345 = memref.load %arg2[%344] : memref<128xi32, #tpu.memory_space<smem>>
    %346 = arith.index_cast %345 : i32 to index
    %c0_171 = arith.constant 0 : index
    %347 = vector.load %arg3[%346, %c0_171] : memref<32x16xf32, #tpu.memory_space<vmem>>, vector<1x16xf32>
    %c28_172 = arith.constant 28 : index
    %c0_173 = arith.constant 0 : index
    %348 = vector.load %arg6[%c28_172, %c0_173] : memref<128x16xf32, #tpu.memory_space<vmem>>, vector<1x16xf32>
    tpu.vector_store %arg6[%c28_172, %c0_173], %347 {strides = array<i32>} : memref<128x16xf32, #tpu.memory_space<vmem>>, vector<1x16xf32>,
    %c29_i32 = arith.constant 29 : i32
    %349 = arith.addi %0, %c29_i32 : i32
    %350 = arith.index_cast %349 : i32 to index
    %351 = memref.load %arg1[%350] : memref<128xi32, #tpu.memory_space<smem>>
    %352 = arith.index_cast %351 : i32 to index
    %c0_174 = arith.constant 0 : index
    %353 = vector.load %arg3[%352, %c0_174] : memref<32x16xf32, #tpu.memory_space<vmem>>, vector<1x16xf32>
    %c29 = arith.constant 29 : index
    %c0_175 = arith.constant 0 : index
    %354 = vector.load %arg5[%c29, %c0_175] : memref<128x16xf32, #tpu.memory_space<vmem>>, vector<1x16xf32>
    tpu.vector_store %arg5[%c29, %c0_175], %353 {strides = array<i32>} : memref<128x16xf32, #tpu.memory_space<vmem>>, vector<1x16xf32>,
    %c29_i32_176 = arith.constant 29 : i32
    %355 = arith.addi %0, %c29_i32_176 : i32
    %356 = arith.index_cast %355 : i32 to index
    %357 = memref.load %arg2[%356] : memref<128xi32, #tpu.memory_space<smem>>
    %358 = arith.index_cast %357 : i32 to index
    %c0_177 = arith.constant 0 : index
    %359 = vector.load %arg3[%358, %c0_177] : memref<32x16xf32, #tpu.memory_space<vmem>>, vector<1x16xf32>
    %c29_178 = arith.constant 29 : index
    %c0_179 = arith.constant 0 : index
    %360 = vector.load %arg6[%c29_178, %c0_179] : memref<128x16xf32, #tpu.memory_space<vmem>>, vector<1x16xf32>
    tpu.vector_store %arg6[%c29_178, %c0_179], %359 {strides = array<i32>} : memref<128x16xf32, #tpu.memory_space<vmem>>, vector<1x16xf32>,
    %c30_i32 = arith.constant 30 : i32
    %361 = arith.addi %0, %c30_i32 : i32
    %362 = arith.index_cast %361 : i32 to index
    %363 = memref.load %arg1[%362] : memref<128xi32, #tpu.memory_space<smem>>
    %364 = arith.index_cast %363 : i32 to index
    %c0_180 = arith.constant 0 : index
    %365 = vector.load %arg3[%364, %c0_180] : memref<32x16xf32, #tpu.memory_space<vmem>>, vector<1x16xf32>
    %c30 = arith.constant 30 : index
    %c0_181 = arith.constant 0 : index
    %366 = vector.load %arg5[%c30, %c0_181] : memref<128x16xf32, #tpu.memory_space<vmem>>, vector<1x16xf32>
    tpu.vector_store %arg5[%c30, %c0_181], %365 {strides = array<i32>} : memref<128x16xf32, #tpu.memory_space<vmem>>, vector<1x16xf32>,
    %c30_i32_182 = arith.constant 30 : i32
    %367 = arith.addi %0, %c30_i32_182 : i32
    %368 = arith.index_cast %367 : i32 to index
    %369 = memref.load %arg2[%368] : memref<128xi32, #tpu.memory_space<smem>>
    %370 = arith.index_cast %369 : i32 to index
    %c0_183 = arith.constant 0 : index
    %371 = vector.load %arg3[%370, %c0_183] : memref<32x16xf32, #tpu.memory_space<vmem>>, vector<1x16xf32>
    %c30_184 = arith.constant 30 : index
    %c0_185 = arith.constant 0 : index
    %372 = vector.load %arg6[%c30_184, %c0_185] : memref<128x16xf32, #tpu.memory_space<vmem>>, vector<1x16xf32>
    tpu.vector_store %arg6[%c30_184, %c0_185], %371 {strides = array<i32>} : memref<128x16xf32, #tpu.memory_space<vmem>>, vector<1x16xf32>,
    %c31_i32 = arith.constant 31 : i32
    %373 = arith.addi %0, %c31_i32 : i32
    %374 = arith.index_cast %373 : i32 to index
    %375 = memref.load %arg1[%374] : memref<128xi32, #tpu.memory_space<smem>>
    %376 = arith.index_cast %375 : i32 to index
    %c0_186 = arith.constant 0 : index
    %377 = vector.load %arg3[%376, %c0_186] : memref<32x16xf32, #tpu.memory_space<vmem>>, vector<1x16xf32>
    %c31 = arith.constant 31 : index
    %c0_187 = arith.constant 0 : index
    %378 = vector.load %arg5[%c31, %c0_187] : memref<128x16xf32, #tpu.memory_space<vmem>>, vector<1x16xf32>
    tpu.vector_store %arg5[%c31, %c0_187], %377 {strides = array<i32>} : memref<128x16xf32, #tpu.memory_space<vmem>>, vector<1x16xf32>,
    %c31_i32_188 = arith.constant 31 : i32
    %379 = arith.addi %0, %c31_i32_188 : i32
    %380 = arith.index_cast %379 : i32 to index
    %381 = memref.load %arg2[%380] : memref<128xi32, #tpu.memory_space<smem>>
    %382 = arith.index_cast %381 : i32 to index
    %c0_189 = arith.constant 0 : index
    %383 = vector.load %arg3[%382, %c0_189] : memref<32x16xf32, #tpu.memory_space<vmem>>, vector<1x16xf32>
    %c31_190 = arith.constant 31 : index
    %c0_191 = arith.constant 0 : index
    %384 = vector.load %arg6[%c31_190, %c0_191] : memref<128x16xf32, #tpu.memory_space<vmem>>, vector<1x16xf32>
    tpu.vector_store %arg6[%c31_190, %c0_191], %383 {strides = array<i32>} : memref<128x16xf32, #tpu.memory_space<vmem>>, vector<1x16xf32>,
    %c32_i32 = arith.constant 32 : i32
    %385 = arith.addi %0, %c32_i32 : i32
    %386 = arith.index_cast %385 : i32 to index
    %387 = memref.load %arg1[%386] : memref<128xi32, #tpu.memory_space<smem>>
    %388 = arith.index_cast %387 : i32 to index
    %c0_192 = arith.constant 0 : index
    %389 = vector.load %arg3[%388, %c0_192] : memref<32x16xf32, #tpu.memory_space<vmem>>, vector<1x16xf32>
    %c32 = arith.constant 32 : index
    %c0_193 = arith.constant 0 : index
    %390 = vector.load %arg5[%c32, %c0_193] : memref<128x16xf32, #tpu.memory_space<vmem>>, vector<1x16xf32>
    tpu.vector_store %arg5[%c32, %c0_193], %389 {strides = array<i32>} : memref<128x16xf32, #tpu.memory_space<vmem>>, vector<1x16xf32>,
    %c32_i32_194 = arith.constant 32 : i32
    %391 = arith.addi %0, %c32_i32_194 : i32
    %392 = arith.index_cast %391 : i32 to index
    %393 = memref.load %arg2[%392] : memref<128xi32, #tpu.memory_space<smem>>
    %394 = arith.index_cast %393 : i32 to index
    %c0_195 = arith.constant 0 : index
    %395 = vector.load %arg3[%394, %c0_195] : memref<32x16xf32, #tpu.memory_space<vmem>>, vector<1x16xf32>
    %c32_196 = arith.constant 32 : index
    %c0_197 = arith.constant 0 : index
    %396 = vector.load %arg6[%c32_196, %c0_197] : memref<128x16xf32, #tpu.memory_space<vmem>>, vector<1x16xf32>
    tpu.vector_store %arg6[%c32_196, %c0_197], %395 {strides = array<i32>} : memref<128x16xf32, #tpu.memory_space<vmem>>, vector<1x16xf32>,
    %c33_i32 = arith.constant 33 : i32
    %397 = arith.addi %0, %c33_i32 : i32
    %398 = arith.index_cast %397 : i32 to index
    %399 = memref.load %arg1[%398] : memref<128xi32, #tpu.memory_space<smem>>
    %400 = arith.index_cast %399 : i32 to index
    %c0_198 = arith.constant 0 : index
    %401 = vector.load %arg3[%400, %c0_198] : memref<32x16xf32, #tpu.memory_space<vmem>>, vector<1x16xf32>
    %c33 = arith.constant 33 : index
    %c0_199 = arith.constant 0 : index
    %402 = vector.load %arg5[%c33, %c0_199] : memref<128x16xf32, #tpu.memory_space<vmem>>, vector<1x16xf32>
    tpu.vector_store %arg5[%c33, %c0_199], %401 {strides = array<i32>} : memref<128x16xf32, #tpu.memory_space<vmem>>, vector<1x16xf32>,
    %c33_i32_200 = arith.constant 33 : i32
    %403 = arith.addi %0, %c33_i32_200 : i32
    %404 = arith.index_cast %403 : i32 to index
    %405 = memref.load %arg2[%404] : memref<128xi32, #tpu.memory_space<smem>>
    %406 = arith.index_cast %405 : i32 to index
    %c0_201 = arith.constant 0 : index
    %407 = vector.load %arg3[%406, %c0_201] : memref<32x16xf32, #tpu.memory_space<vmem>>, vector<1x16xf32>
    %c33_202 = arith.constant 33 : index
    %c0_203 = arith.constant 0 : index
    %408 = vector.load %arg6[%c33_202, %c0_203] : memref<128x16xf32, #tpu.memory_space<vmem>>, vector<1x16xf32>
    tpu.vector_store %arg6[%c33_202, %c0_203], %407 {strides = array<i32>} : memref<128x16xf32, #tpu.memory_space<vmem>>, vector<1x16xf32>,
    %c34_i32 = arith.constant 34 : i32
    %409 = arith.addi %0, %c34_i32 : i32
    %410 = arith.index_cast %409 : i32 to index
    %411 = memref.load %arg1[%410] : memref<128xi32, #tpu.memory_space<smem>>
    %412 = arith.index_cast %411 : i32 to index
    %c0_204 = arith.constant 0 : index
    %413 = vector.load %arg3[%412, %c0_204] : memref<32x16xf32, #tpu.memory_space<vmem>>, vector<1x16xf32>
    %c34 = arith.constant 34 : index
    %c0_205 = arith.constant 0 : index
    %414 = vector.load %arg5[%c34, %c0_205] : memref<128x16xf32, #tpu.memory_space<vmem>>, vector<1x16xf32>
    tpu.vector_store %arg5[%c34, %c0_205], %413 {strides = array<i32>} : memref<128x16xf32, #tpu.memory_space<vmem>>, vector<1x16xf32>,
    %c34_i32_206 = arith.constant 34 : i32
    %415 = arith.addi %0, %c34_i32_206 : i32
    %416 = arith.index_cast %415 : i32 to index
    %417 = memref.load %arg2[%416] : memref<128xi32, #tpu.memory_space<smem>>
    %418 = arith.index_cast %417 : i32 to index
    %c0_207 = arith.constant 0 : index
    %419 = vector.load %arg3[%418, %c0_207] : memref<32x16xf32, #tpu.memory_space<vmem>>, vector<1x16xf32>
    %c34_208 = arith.constant 34 : index
    %c0_209 = arith.constant 0 : index
    %420 = vector.load %arg6[%c34_208, %c0_209] : memref<128x16xf32, #tpu.memory_space<vmem>>, vector<1x16xf32>
    tpu.vector_store %arg6[%c34_208, %c0_209], %419 {strides = array<i32>} : memref<128x16xf32, #tpu.memory_space<vmem>>, vector<1x16xf32>,
    %c35_i32 = arith.constant 35 : i32
    %421 = arith.addi %0, %c35_i32 : i32
    %422 = arith.index_cast %421 : i32 to index
    %423 = memref.load %arg1[%422] : memref<128xi32, #tpu.memory_space<smem>>
    %424 = arith.index_cast %423 : i32 to index
    %c0_210 = arith.constant 0 : index
    %425 = vector.load %arg3[%424, %c0_210] : memref<32x16xf32, #tpu.memory_space<vmem>>, vector<1x16xf32>
    %c35 = arith.constant 35 : index
    %c0_211 = arith.constant 0 : index
    %426 = vector.load %arg5[%c35, %c0_211] : memref<128x16xf32, #tpu.memory_space<vmem>>, vector<1x16xf32>
    tpu.vector_store %arg5[%c35, %c0_211], %425 {strides = array<i32>} : memref<128x16xf32, #tpu.memory_space<vmem>>, vector<1x16xf32>,
    %c35_i32_212 = arith.constant 35 : i32
    %427 = arith.addi %0, %c35_i32_212 : i32
    %428 = arith.index_cast %427 : i32 to index
    %429 = memref.load %arg2[%428] : memref<128xi32, #tpu.memory_space<smem>>
    %430 = arith.index_cast %429 : i32 to index
    %c0_213 = arith.constant 0 : index
    %431 = vector.load %arg3[%430, %c0_213] : memref<32x16xf32, #tpu.memory_space<vmem>>, vector<1x16xf32>
    %c35_214 = arith.constant 35 : index
    %c0_215 = arith.constant 0 : index
    %432 = vector.load %arg6[%c35_214, %c0_215] : memref<128x16xf32, #tpu.memory_space<vmem>>, vector<1x16xf32>
    tpu.vector_store %arg6[%c35_214, %c0_215], %431 {strides = array<i32>} : memref<128x16xf32, #tpu.memory_space<vmem>>, vector<1x16xf32>,
    %c36_i32 = arith.constant 36 : i32
    %433 = arith.addi %0, %c36_i32 : i32
    %434 = arith.index_cast %433 : i32 to index
    %435 = memref.load %arg1[%434] : memref<128xi32, #tpu.memory_space<smem>>
    %436 = arith.index_cast %435 : i32 to index
    %c0_216 = arith.constant 0 : index
    %437 = vector.load %arg3[%436, %c0_216] : memref<32x16xf32, #tpu.memory_space<vmem>>, vector<1x16xf32>
    %c36 = arith.constant 36 : index
    %c0_217 = arith.constant 0 : index
    %438 = vector.load %arg5[%c36, %c0_217] : memref<128x16xf32, #tpu.memory_space<vmem>>, vector<1x16xf32>
    tpu.vector_store %arg5[%c36, %c0_217], %437 {strides = array<i32>} : memref<128x16xf32, #tpu.memory_space<vmem>>, vector<1x16xf32>,
    %c36_i32_218 = arith.constant 36 : i32
    %439 = arith.addi %0, %c36_i32_218 : i32
    %440 = arith.index_cast %439 : i32 to index
    %441 = memref.load %arg2[%440] : memref<128xi32, #tpu.memory_space<smem>>
    %442 = arith.index_cast %441 : i32 to index
    %c0_219 = arith.constant 0 : index
    %443 = vector.load %arg3[%442, %c0_219] : memref<32x16xf32, #tpu.memory_space<vmem>>, vector<1x16xf32>
    %c36_220 = arith.constant 36 : index
    %c0_221 = arith.constant 0 : index
    %444 = vector.load %arg6[%c36_220, %c0_221] : memref<128x16xf32, #tpu.memory_space<vmem>>, vector<1x16xf32>
    tpu.vector_store %arg6[%c36_220, %c0_221], %443 {strides = array<i32>} : memref<128x16xf32, #tpu.memory_space<vmem>>, vector<1x16xf32>,
    %c37_i32 = arith.constant 37 : i32
    %445 = arith.addi %0, %c37_i32 : i32
    %446 = arith.index_cast %445 : i32 to index
    %447 = memref.load %arg1[%446] : memref<128xi32, #tpu.memory_space<smem>>
    %448 = arith.index_cast %447 : i32 to index
    %c0_222 = arith.constant 0 : index
    %449 = vector.load %arg3[%448, %c0_222] : memref<32x16xf32, #tpu.memory_space<vmem>>, vector<1x16xf32>
    %c37 = arith.constant 37 : index
    %c0_223 = arith.constant 0 : index
    %450 = vector.load %arg5[%c37, %c0_223] : memref<128x16xf32, #tpu.memory_space<vmem>>, vector<1x16xf32>
    tpu.vector_store %arg5[%c37, %c0_223], %449 {strides = array<i32>} : memref<128x16xf32, #tpu.memory_space<vmem>>, vector<1x16xf32>,
    %c37_i32_224 = arith.constant 37 : i32
    %451 = arith.addi %0, %c37_i32_224 : i32
    %452 = arith.index_cast %451 : i32 to index
    %453 = memref.load %arg2[%452] : memref<128xi32, #tpu.memory_space<smem>>
    %454 = arith.index_cast %453 : i32 to index
    %c0_225 = arith.constant 0 : index
    %455 = vector.load %arg3[%454, %c0_225] : memref<32x16xf32, #tpu.memory_space<vmem>>, vector<1x16xf32>
    %c37_226 = arith.constant 37 : index
    %c0_227 = arith.constant 0 : index
    %456 = vector.load %arg6[%c37_226, %c0_227] : memref<128x16xf32, #tpu.memory_space<vmem>>, vector<1x16xf32>
    tpu.vector_store %arg6[%c37_226, %c0_227], %455 {strides = array<i32>} : memref<128x16xf32, #tpu.memory_space<vmem>>, vector<1x16xf32>,
    %c38_i32 = arith.constant 38 : i32
    %457 = arith.addi %0, %c38_i32 : i32
    %458 = arith.index_cast %457 : i32 to index
    %459 = memref.load %arg1[%458] : memref<128xi32, #tpu.memory_space<smem>>
    %460 = arith.index_cast %459 : i32 to index
    %c0_228 = arith.constant 0 : index
    %461 = vector.load %arg3[%460, %c0_228] : memref<32x16xf32, #tpu.memory_space<vmem>>, vector<1x16xf32>
    %c38 = arith.constant 38 : index
    %c0_229 = arith.constant 0 : index
    %462 = vector.load %arg5[%c38, %c0_229] : memref<128x16xf32, #tpu.memory_space<vmem>>, vector<1x16xf32>
    tpu.vector_store %arg5[%c38, %c0_229], %461 {strides = array<i32>} : memref<128x16xf32, #tpu.memory_space<vmem>>, vector<1x16xf32>,
    %c38_i32_230 = arith.constant 38 : i32
    %463 = arith.addi %0, %c38_i32_230 : i32
    %464 = arith.index_cast %463 : i32 to index
    %465 = memref.load %arg2[%464] : memref<128xi32, #tpu.memory_space<smem>>
    %466 = arith.index_cast %465 : i32 to index
    %c0_231 = arith.constant 0 : index
    %467 = vector.load %arg3[%466, %c0_231] : memref<32x16xf32, #tpu.memory_space<vmem>>, vector<1x16xf32>
    %c38_232 = arith.constant 38 : index
    %c0_233 = arith.constant 0 : index
    %468 = vector.load %arg6[%c38_232, %c0_233] : memref<128x16xf32, #tpu.memory_space<vmem>>, vector<1x16xf32>
    tpu.vector_store %arg6[%c38_232, %c0_233], %467 {strides = array<i32>} : memref<128x16xf32, #tpu.memory_space<vmem>>, vector<1x16xf32>,
    %c39_i32 = arith.constant 39 : i32
    %469 = arith.addi %0, %c39_i32 : i32
    %470 = arith.index_cast %469 : i32 to index
    %471 = memref.load %arg1[%470] : memref<128xi32, #tpu.memory_space<smem>>
    %472 = arith.index_cast %471 : i32 to index
    %c0_234 = arith.constant 0 : index
    %473 = vector.load %arg3[%472, %c0_234] : memref<32x16xf32, #tpu.memory_space<vmem>>, vector<1x16xf32>
    %c39 = arith.constant 39 : index
    %c0_235 = arith.constant 0 : index
    %474 = vector.load %arg5[%c39, %c0_235] : memref<128x16xf32, #tpu.memory_space<vmem>>, vector<1x16xf32>
    tpu.vector_store %arg5[%c39, %c0_235], %473 {strides = array<i32>} : memref<128x16xf32, #tpu.memory_space<vmem>>, vector<1x16xf32>,
    %c39_i32_236 = arith.constant 39 : i32
    %475 = arith.addi %0, %c39_i32_236 : i32
    %476 = arith.index_cast %475 : i32 to index
    %477 = memref.load %arg2[%476] : memref<128xi32, #tpu.memory_space<smem>>
    %478 = arith.index_cast %477 : i32 to index
    %c0_237 = arith.constant 0 : index
    %479 = vector.load %arg3[%478, %c0_237] : memref<32x16xf32, #tpu.memory_space<vmem>>, vector<1x16xf32>
    %c39_238 = arith.constant 39 : index
    %c0_239 = arith.constant 0 : index
    %480 = vector.load %arg6[%c39_238, %c0_239] : memref<128x16xf32, #tpu.memory_space<vmem>>, vector<1x16xf32>
    tpu.vector_store %arg6[%c39_238, %c0_239], %479 {strides = array<i32>} : memref<128x16xf32, #tpu.memory_space<vmem>>, vector<1x16xf32>,
    %c40_i32 = arith.constant 40 : i32
    %481 = arith.addi %0, %c40_i32 : i32
    %482 = arith.index_cast %481 : i32 to index
    %483 = memref.load %arg1[%482] : memref<128xi32, #tpu.memory_space<smem>>
    %484 = arith.index_cast %483 : i32 to index
    %c0_240 = arith.constant 0 : index
    %485 = vector.load %arg3[%484, %c0_240] : memref<32x16xf32, #tpu.memory_space<vmem>>, vector<1x16xf32>
    %c40 = arith.constant 40 : index
    %c0_241 = arith.constant 0 : index
    %486 = vector.load %arg5[%c40, %c0_241] : memref<128x16xf32, #tpu.memory_space<vmem>>, vector<1x16xf32>
    tpu.vector_store %arg5[%c40, %c0_241], %485 {strides = array<i32>} : memref<128x16xf32, #tpu.memory_space<vmem>>, vector<1x16xf32>,
    %c40_i32_242 = arith.constant 40 : i32
    %487 = arith.addi %0, %c40_i32_242 : i32
    %488 = arith.index_cast %487 : i32 to index
    %489 = memref.load %arg2[%488] : memref<128xi32, #tpu.memory_space<smem>>
    %490 = arith.index_cast %489 : i32 to index
    %c0_243 = arith.constant 0 : index
    %491 = vector.load %arg3[%490, %c0_243] : memref<32x16xf32, #tpu.memory_space<vmem>>, vector<1x16xf32>
    %c40_244 = arith.constant 40 : index
    %c0_245 = arith.constant 0 : index
    %492 = vector.load %arg6[%c40_244, %c0_245] : memref<128x16xf32, #tpu.memory_space<vmem>>, vector<1x16xf32>
    tpu.vector_store %arg6[%c40_244, %c0_245], %491 {strides = array<i32>} : memref<128x16xf32, #tpu.memory_space<vmem>>, vector<1x16xf32>,
    %c41_i32 = arith.constant 41 : i32
    %493 = arith.addi %0, %c41_i32 : i32
    %494 = arith.index_cast %493 : i32 to index
    %495 = memref.load %arg1[%494] : memref<128xi32, #tpu.memory_space<smem>>
    %496 = arith.index_cast %495 : i32 to index
    %c0_246 = arith.constant 0 : index
    %497 = vector.load %arg3[%496, %c0_246] : memref<32x16xf32, #tpu.memory_space<vmem>>, vector<1x16xf32>
    %c41 = arith.constant 41 : index
    %c0_247 = arith.constant 0 : index
    %498 = vector.load %arg5[%c41, %c0_247] : memref<128x16xf32, #tpu.memory_space<vmem>>, vector<1x16xf32>
    tpu.vector_store %arg5[%c41, %c0_247], %497 {strides = array<i32>} : memref<128x16xf32, #tpu.memory_space<vmem>>, vector<1x16xf32>,
    %c41_i32_248 = arith.constant 41 : i32
    %499 = arith.addi %0, %c41_i32_248 : i32
    %500 = arith.index_cast %499 : i32 to index
    %501 = memref.load %arg2[%500] : memref<128xi32, #tpu.memory_space<smem>>
    %502 = arith.index_cast %501 : i32 to index
    %c0_249 = arith.constant 0 : index
    %503 = vector.load %arg3[%502, %c0_249] : memref<32x16xf32, #tpu.memory_space<vmem>>, vector<1x16xf32>
    %c41_250 = arith.constant 41 : index
    %c0_251 = arith.constant 0 : index
    %504 = vector.load %arg6[%c41_250, %c0_251] : memref<128x16xf32, #tpu.memory_space<vmem>>, vector<1x16xf32>
    tpu.vector_store %arg6[%c41_250, %c0_251], %503 {strides = array<i32>} : memref<128x16xf32, #tpu.memory_space<vmem>>, vector<1x16xf32>,
    %c42_i32 = arith.constant 42 : i32
    %505 = arith.addi %0, %c42_i32 : i32
    %506 = arith.index_cast %505 : i32 to index
    %507 = memref.load %arg1[%506] : memref<128xi32, #tpu.memory_space<smem>>
    %508 = arith.index_cast %507 : i32 to index
    %c0_252 = arith.constant 0 : index
    %509 = vector.load %arg3[%508, %c0_252] : memref<32x16xf32, #tpu.memory_space<vmem>>, vector<1x16xf32>
    %c42 = arith.constant 42 : index
    %c0_253 = arith.constant 0 : index
    %510 = vector.load %arg5[%c42, %c0_253] : memref<128x16xf32, #tpu.memory_space<vmem>>, vector<1x16xf32>
    tpu.vector_store %arg5[%c42, %c0_253], %509 {strides = array<i32>} : memref<128x16xf32, #tpu.memory_space<vmem>>, vector<1x16xf32>,
    %c42_i32_254 = arith.constant 42 : i32
    %511 = arith.addi %0, %c42_i32_254 : i32
    %512 = arith.index_cast %511 : i32 to index
    %513 = memref.load %arg2[%512] : memref<128xi32, #tpu.memory_space<smem>>
    %514 = arith.index_cast %513 : i32 to index
    %c0_255 = arith.constant 0 : index
    %515 = vector.load %arg3[%514, %c0_255] : memref<32x16xf32, #tpu.memory_space<vmem>>, vector<1x16xf32>
    %c42_256 = arith.constant 42 : index
    %c0_257 = arith.constant 0 : index
    %516 = vector.load %arg6[%c42_256, %c0_257] : memref<128x16xf32, #tpu.memory_space<vmem>>, vector<1x16xf32>
    tpu.vector_store %arg6[%c42_256, %c0_257], %515 {strides = array<i32>} : memref<128x16xf32, #tpu.memory_space<vmem>>, vector<1x16xf32>,
    %c43_i32 = arith.constant 43 : i32
    %517 = arith.addi %0, %c43_i32 : i32
    %518 = arith.index_cast %517 : i32 to index
    %519 = memref.load %arg1[%518] : memref<128xi32, #tpu.memory_space<smem>>
    %520 = arith.index_cast %519 : i32 to index
    %c0_258 = arith.constant 0 : index
    %521 = vector.load %arg3[%520, %c0_258] : memref<32x16xf32, #tpu.memory_space<vmem>>, vector<1x16xf32>
    %c43 = arith.constant 43 : index
    %c0_259 = arith.constant 0 : index
    %522 = vector.load %arg5[%c43, %c0_259] : memref<128x16xf32, #tpu.memory_space<vmem>>, vector<1x16xf32>
    tpu.vector_store %arg5[%c43, %c0_259], %521 {strides = array<i32>} : memref<128x16xf32, #tpu.memory_space<vmem>>, vector<1x16xf32>,
    %c43_i32_260 = arith.constant 43 : i32
    %523 = arith.addi %0, %c43_i32_260 : i32
    %524 = arith.index_cast %523 : i32 to index
    %525 = memref.load %arg2[%524] : memref<128xi32, #tpu.memory_space<smem>>
    %526 = arith.index_cast %525 : i32 to index
    %c0_261 = arith.constant 0 : index
    %527 = vector.load %arg3[%526, %c0_261] : memref<32x16xf32, #tpu.memory_space<vmem>>, vector<1x16xf32>
    %c43_262 = arith.constant 43 : index
    %c0_263 = arith.constant 0 : index
    %528 = vector.load %arg6[%c43_262, %c0_263] : memref<128x16xf32, #tpu.memory_space<vmem>>, vector<1x16xf32>
    tpu.vector_store %arg6[%c43_262, %c0_263], %527 {strides = array<i32>} : memref<128x16xf32, #tpu.memory_space<vmem>>, vector<1x16xf32>,
    %c44_i32 = arith.constant 44 : i32
    %529 = arith.addi %0, %c44_i32 : i32
    %530 = arith.index_cast %529 : i32 to index
    %531 = memref.load %arg1[%530] : memref<128xi32, #tpu.memory_space<smem>>
    %532 = arith.index_cast %531 : i32 to index
    %c0_264 = arith.constant 0 : index
    %533 = vector.load %arg3[%532, %c0_264] : memref<32x16xf32, #tpu.memory_space<vmem>>, vector<1x16xf32>
    %c44 = arith.constant 44 : index
    %c0_265 = arith.constant 0 : index
    %534 = vector.load %arg5[%c44, %c0_265] : memref<128x16xf32, #tpu.memory_space<vmem>>, vector<1x16xf32>
    tpu.vector_store %arg5[%c44, %c0_265], %533 {strides = array<i32>} : memref<128x16xf32, #tpu.memory_space<vmem>>, vector<1x16xf32>,
    %c44_i32_266 = arith.constant 44 : i32
    %535 = arith.addi %0, %c44_i32_266 : i32
    %536 = arith.index_cast %535 : i32 to index
    %537 = memref.load %arg2[%536] : memref<128xi32, #tpu.memory_space<smem>>
    %538 = arith.index_cast %537 : i32 to index
    %c0_267 = arith.constant 0 : index
    %539 = vector.load %arg3[%538, %c0_267] : memref<32x16xf32, #tpu.memory_space<vmem>>, vector<1x16xf32>
    %c44_268 = arith.constant 44 : index
    %c0_269 = arith.constant 0 : index
    %540 = vector.load %arg6[%c44_268, %c0_269] : memref<128x16xf32, #tpu.memory_space<vmem>>, vector<1x16xf32>
    tpu.vector_store %arg6[%c44_268, %c0_269], %539 {strides = array<i32>} : memref<128x16xf32, #tpu.memory_space<vmem>>, vector<1x16xf32>,
    %c45_i32 = arith.constant 45 : i32
    %541 = arith.addi %0, %c45_i32 : i32
    %542 = arith.index_cast %541 : i32 to index
    %543 = memref.load %arg1[%542] : memref<128xi32, #tpu.memory_space<smem>>
    %544 = arith.index_cast %543 : i32 to index
    %c0_270 = arith.constant 0 : index
    %545 = vector.load %arg3[%544, %c0_270] : memref<32x16xf32, #tpu.memory_space<vmem>>, vector<1x16xf32>
    %c45 = arith.constant 45 : index
    %c0_271 = arith.constant 0 : index
    %546 = vector.load %arg5[%c45, %c0_271] : memref<128x16xf32, #tpu.memory_space<vmem>>, vector<1x16xf32>
    tpu.vector_store %arg5[%c45, %c0_271], %545 {strides = array<i32>} : memref<128x16xf32, #tpu.memory_space<vmem>>, vector<1x16xf32>,
    %c45_i32_272 = arith.constant 45 : i32
    %547 = arith.addi %0, %c45_i32_272 : i32
    %548 = arith.index_cast %547 : i32 to index
    %549 = memref.load %arg2[%548] : memref<128xi32, #tpu.memory_space<smem>>
    %550 = arith.index_cast %549 : i32 to index
    %c0_273 = arith.constant 0 : index
    %551 = vector.load %arg3[%550, %c0_273] : memref<32x16xf32, #tpu.memory_space<vmem>>, vector<1x16xf32>
    %c45_274 = arith.constant 45 : index
    %c0_275 = arith.constant 0 : index
    %552 = vector.load %arg6[%c45_274, %c0_275] : memref<128x16xf32, #tpu.memory_space<vmem>>, vector<1x16xf32>
    tpu.vector_store %arg6[%c45_274, %c0_275], %551 {strides = array<i32>} : memref<128x16xf32, #tpu.memory_space<vmem>>, vector<1x16xf32>,
    %c46_i32 = arith.constant 46 : i32
    %553 = arith.addi %0, %c46_i32 : i32
    %554 = arith.index_cast %553 : i32 to index
    %555 = memref.load %arg1[%554] : memref<128xi32, #tpu.memory_space<smem>>
    %556 = arith.index_cast %555 : i32 to index
    %c0_276 = arith.constant 0 : index
    %557 = vector.load %arg3[%556, %c0_276] : memref<32x16xf32, #tpu.memory_space<vmem>>, vector<1x16xf32>
    %c46 = arith.constant 46 : index
    %c0_277 = arith.constant 0 : index
    %558 = vector.load %arg5[%c46, %c0_277] : memref<128x16xf32, #tpu.memory_space<vmem>>, vector<1x16xf32>
    tpu.vector_store %arg5[%c46, %c0_277], %557 {strides = array<i32>} : memref<128x16xf32, #tpu.memory_space<vmem>>, vector<1x16xf32>,
    %c46_i32_278 = arith.constant 46 : i32
    %559 = arith.addi %0, %c46_i32_278 : i32
    %560 = arith.index_cast %559 : i32 to index
    %561 = memref.load %arg2[%560] : memref<128xi32, #tpu.memory_space<smem>>
    %562 = arith.index_cast %561 : i32 to index
    %c0_279 = arith.constant 0 : index
    %563 = vector.load %arg3[%562, %c0_279] : memref<32x16xf32, #tpu.memory_space<vmem>>, vector<1x16xf32>
    %c46_280 = arith.constant 46 : index
    %c0_281 = arith.constant 0 : index
    %564 = vector.load %arg6[%c46_280, %c0_281] : memref<128x16xf32, #tpu.memory_space<vmem>>, vector<1x16xf32>
    tpu.vector_store %arg6[%c46_280, %c0_281], %563 {strides = array<i32>} : memref<128x16xf32, #tpu.memory_space<vmem>>, vector<1x16xf32>,
    %c47_i32 = arith.constant 47 : i32
    %565 = arith.addi %0, %c47_i32 : i32
    %566 = arith.index_cast %565 : i32 to index
    %567 = memref.load %arg1[%566] : memref<128xi32, #tpu.memory_space<smem>>
    %568 = arith.index_cast %567 : i32 to index
    %c0_282 = arith.constant 0 : index
    %569 = vector.load %arg3[%568, %c0_282] : memref<32x16xf32, #tpu.memory_space<vmem>>, vector<1x16xf32>
    %c47 = arith.constant 47 : index
    %c0_283 = arith.constant 0 : index
    %570 = vector.load %arg5[%c47, %c0_283] : memref<128x16xf32, #tpu.memory_space<vmem>>, vector<1x16xf32>
    tpu.vector_store %arg5[%c47, %c0_283], %569 {strides = array<i32>} : memref<128x16xf32, #tpu.memory_space<vmem>>, vector<1x16xf32>,
    %c47_i32_284 = arith.constant 47 : i32
    %571 = arith.addi %0, %c47_i32_284 : i32
    %572 = arith.index_cast %571 : i32 to index
    %573 = memref.load %arg2[%572] : memref<128xi32, #tpu.memory_space<smem>>
    %574 = arith.index_cast %573 : i32 to index
    %c0_285 = arith.constant 0 : index
    %575 = vector.load %arg3[%574, %c0_285] : memref<32x16xf32, #tpu.memory_space<vmem>>, vector<1x16xf32>
    %c47_286 = arith.constant 47 : index
    %c0_287 = arith.constant 0 : index
    %576 = vector.load %arg6[%c47_286, %c0_287] : memref<128x16xf32, #tpu.memory_space<vmem>>, vector<1x16xf32>
    tpu.vector_store %arg6[%c47_286, %c0_287], %575 {strides = array<i32>} : memref<128x16xf32, #tpu.memory_space<vmem>>, vector<1x16xf32>,
    %c48_i32 = arith.constant 48 : i32
    %577 = arith.addi %0, %c48_i32 : i32
    %578 = arith.index_cast %577 : i32 to index
    %579 = memref.load %arg1[%578] : memref<128xi32, #tpu.memory_space<smem>>
    %580 = arith.index_cast %579 : i32 to index
    %c0_288 = arith.constant 0 : index
    %581 = vector.load %arg3[%580, %c0_288] : memref<32x16xf32, #tpu.memory_space<vmem>>, vector<1x16xf32>
    %c48 = arith.constant 48 : index
    %c0_289 = arith.constant 0 : index
    %582 = vector.load %arg5[%c48, %c0_289] : memref<128x16xf32, #tpu.memory_space<vmem>>, vector<1x16xf32>
    tpu.vector_store %arg5[%c48, %c0_289], %581 {strides = array<i32>} : memref<128x16xf32, #tpu.memory_space<vmem>>, vector<1x16xf32>,
    %c48_i32_290 = arith.constant 48 : i32
    %583 = arith.addi %0, %c48_i32_290 : i32
    %584 = arith.index_cast %583 : i32 to index
    %585 = memref.load %arg2[%584] : memref<128xi32, #tpu.memory_space<smem>>
    %586 = arith.index_cast %585 : i32 to index
    %c0_291 = arith.constant 0 : index
    %587 = vector.load %arg3[%586, %c0_291] : memref<32x16xf32, #tpu.memory_space<vmem>>, vector<1x16xf32>
    %c48_292 = arith.constant 48 : index
    %c0_293 = arith.constant 0 : index
    %588 = vector.load %arg6[%c48_292, %c0_293] : memref<128x16xf32, #tpu.memory_space<vmem>>, vector<1x16xf32>
    tpu.vector_store %arg6[%c48_292, %c0_293], %587 {strides = array<i32>} : memref<128x16xf32, #tpu.memory_space<vmem>>, vector<1x16xf32>,
    %c49_i32 = arith.constant 49 : i32
    %589 = arith.addi %0, %c49_i32 : i32
    %590 = arith.index_cast %589 : i32 to index
    %591 = memref.load %arg1[%590] : memref<128xi32, #tpu.memory_space<smem>>
    %592 = arith.index_cast %591 : i32 to index
    %c0_294 = arith.constant 0 : index
    %593 = vector.load %arg3[%592, %c0_294] : memref<32x16xf32, #tpu.memory_space<vmem>>, vector<1x16xf32>
    %c49 = arith.constant 49 : index
    %c0_295 = arith.constant 0 : index
    %594 = vector.load %arg5[%c49, %c0_295] : memref<128x16xf32, #tpu.memory_space<vmem>>, vector<1x16xf32>
    tpu.vector_store %arg5[%c49, %c0_295], %593 {strides = array<i32>} : memref<128x16xf32, #tpu.memory_space<vmem>>, vector<1x16xf32>,
    %c49_i32_296 = arith.constant 49 : i32
    %595 = arith.addi %0, %c49_i32_296 : i32
    %596 = arith.index_cast %595 : i32 to index
    %597 = memref.load %arg2[%596] : memref<128xi32, #tpu.memory_space<smem>>
    %598 = arith.index_cast %597 : i32 to index
    %c0_297 = arith.constant 0 : index
    %599 = vector.load %arg3[%598, %c0_297] : memref<32x16xf32, #tpu.memory_space<vmem>>, vector<1x16xf32>
    %c49_298 = arith.constant 49 : index
    %c0_299 = arith.constant 0 : index
    %600 = vector.load %arg6[%c49_298, %c0_299] : memref<128x16xf32, #tpu.memory_space<vmem>>, vector<1x16xf32>
    tpu.vector_store %arg6[%c49_298, %c0_299], %599 {strides = array<i32>} : memref<128x16xf32, #tpu.memory_space<vmem>>, vector<1x16xf32>,
    %c50_i32 = arith.constant 50 : i32
    %601 = arith.addi %0, %c50_i32 : i32
    %602 = arith.index_cast %601 : i32 to index
    %603 = memref.load %arg1[%602] : memref<128xi32, #tpu.memory_space<smem>>
    %604 = arith.index_cast %603 : i32 to index
    %c0_300 = arith.constant 0 : index
    %605 = vector.load %arg3[%604, %c0_300] : memref<32x16xf32, #tpu.memory_space<vmem>>, vector<1x16xf32>
    %c50 = arith.constant 50 : index
    %c0_301 = arith.constant 0 : index
    %606 = vector.load %arg5[%c50, %c0_301] : memref<128x16xf32, #tpu.memory_space<vmem>>, vector<1x16xf32>
    tpu.vector_store %arg5[%c50, %c0_301], %605 {strides = array<i32>} : memref<128x16xf32, #tpu.memory_space<vmem>>, vector<1x16xf32>,
    %c50_i32_302 = arith.constant 50 : i32
    %607 = arith.addi %0, %c50_i32_302 : i32
    %608 = arith.index_cast %607 : i32 to index
    %609 = memref.load %arg2[%608] : memref<128xi32, #tpu.memory_space<smem>>
    %610 = arith.index_cast %609 : i32 to index
    %c0_303 = arith.constant 0 : index
    %611 = vector.load %arg3[%610, %c0_303] : memref<32x16xf32, #tpu.memory_space<vmem>>, vector<1x16xf32>
    %c50_304 = arith.constant 50 : index
    %c0_305 = arith.constant 0 : index
    %612 = vector.load %arg6[%c50_304, %c0_305] : memref<128x16xf32, #tpu.memory_space<vmem>>, vector<1x16xf32>
    tpu.vector_store %arg6[%c50_304, %c0_305], %611 {strides = array<i32>} : memref<128x16xf32, #tpu.memory_space<vmem>>, vector<1x16xf32>,
    %c51_i32 = arith.constant 51 : i32
    %613 = arith.addi %0, %c51_i32 : i32
    %614 = arith.index_cast %613 : i32 to index
    %615 = memref.load %arg1[%614] : memref<128xi32, #tpu.memory_space<smem>>
    %616 = arith.index_cast %615 : i32 to index
    %c0_306 = arith.constant 0 : index
    %617 = vector.load %arg3[%616, %c0_306] : memref<32x16xf32, #tpu.memory_space<vmem>>, vector<1x16xf32>
    %c51 = arith.constant 51 : index
    %c0_307 = arith.constant 0 : index
    %618 = vector.load %arg5[%c51, %c0_307] : memref<128x16xf32, #tpu.memory_space<vmem>>, vector<1x16xf32>
    tpu.vector_store %arg5[%c51, %c0_307], %617 {strides = array<i32>} : memref<128x16xf32, #tpu.memory_space<vmem>>, vector<1x16xf32>,
    %c51_i32_308 = arith.constant 51 : i32
    %619 = arith.addi %0, %c51_i32_308 : i32
    %620 = arith.index_cast %619 : i32 to index
    %621 = memref.load %arg2[%620] : memref<128xi32, #tpu.memory_space<smem>>
    %622 = arith.index_cast %621 : i32 to index
    %c0_309 = arith.constant 0 : index
    %623 = vector.load %arg3[%622, %c0_309] : memref<32x16xf32, #tpu.memory_space<vmem>>, vector<1x16xf32>
    %c51_310 = arith.constant 51 : index
    %c0_311 = arith.constant 0 : index
    %624 = vector.load %arg6[%c51_310, %c0_311] : memref<128x16xf32, #tpu.memory_space<vmem>>, vector<1x16xf32>
    tpu.vector_store %arg6[%c51_310, %c0_311], %623 {strides = array<i32>} : memref<128x16xf32, #tpu.memory_space<vmem>>, vector<1x16xf32>,
    %c52_i32 = arith.constant 52 : i32
    %625 = arith.addi %0, %c52_i32 : i32
    %626 = arith.index_cast %625 : i32 to index
    %627 = memref.load %arg1[%626] : memref<128xi32, #tpu.memory_space<smem>>
    %628 = arith.index_cast %627 : i32 to index
    %c0_312 = arith.constant 0 : index
    %629 = vector.load %arg3[%628, %c0_312] : memref<32x16xf32, #tpu.memory_space<vmem>>, vector<1x16xf32>
    %c52 = arith.constant 52 : index
    %c0_313 = arith.constant 0 : index
    %630 = vector.load %arg5[%c52, %c0_313] : memref<128x16xf32, #tpu.memory_space<vmem>>, vector<1x16xf32>
    tpu.vector_store %arg5[%c52, %c0_313], %629 {strides = array<i32>} : memref<128x16xf32, #tpu.memory_space<vmem>>, vector<1x16xf32>,
    %c52_i32_314 = arith.constant 52 : i32
    %631 = arith.addi %0, %c52_i32_314 : i32
    %632 = arith.index_cast %631 : i32 to index
    %633 = memref.load %arg2[%632] : memref<128xi32, #tpu.memory_space<smem>>
    %634 = arith.index_cast %633 : i32 to index
    %c0_315 = arith.constant 0 : index
    %635 = vector.load %arg3[%634, %c0_315] : memref<32x16xf32, #tpu.memory_space<vmem>>, vector<1x16xf32>
    %c52_316 = arith.constant 52 : index
    %c0_317 = arith.constant 0 : index
    %636 = vector.load %arg6[%c52_316, %c0_317] : memref<128x16xf32, #tpu.memory_space<vmem>>, vector<1x16xf32>
    tpu.vector_store %arg6[%c52_316, %c0_317], %635 {strides = array<i32>} : memref<128x16xf32, #tpu.memory_space<vmem>>, vector<1x16xf32>,
    %c53_i32 = arith.constant 53 : i32
    %637 = arith.addi %0, %c53_i32 : i32
    %638 = arith.index_cast %637 : i32 to index
    %639 = memref.load %arg1[%638] : memref<128xi32, #tpu.memory_space<smem>>
    %640 = arith.index_cast %639 : i32 to index
    %c0_318 = arith.constant 0 : index
    %641 = vector.load %arg3[%640, %c0_318] : memref<32x16xf32, #tpu.memory_space<vmem>>, vector<1x16xf32>
    %c53 = arith.constant 53 : index
    %c0_319 = arith.constant 0 : index
    %642 = vector.load %arg5[%c53, %c0_319] : memref<128x16xf32, #tpu.memory_space<vmem>>, vector<1x16xf32>
    tpu.vector_store %arg5[%c53, %c0_319], %641 {strides = array<i32>} : memref<128x16xf32, #tpu.memory_space<vmem>>, vector<1x16xf32>,
    %c53_i32_320 = arith.constant 53 : i32
    %643 = arith.addi %0, %c53_i32_320 : i32
    %644 = arith.index_cast %643 : i32 to index
    %645 = memref.load %arg2[%644] : memref<128xi32, #tpu.memory_space<smem>>
    %646 = arith.index_cast %645 : i32 to index
    %c0_321 = arith.constant 0 : index
    %647 = vector.load %arg3[%646, %c0_321] : memref<32x16xf32, #tpu.memory_space<vmem>>, vector<1x16xf32>
    %c53_322 = arith.constant 53 : index
    %c0_323 = arith.constant 0 : index
    %648 = vector.load %arg6[%c53_322, %c0_323] : memref<128x16xf32, #tpu.memory_space<vmem>>, vector<1x16xf32>
    tpu.vector_store %arg6[%c53_322, %c0_323], %647 {strides = array<i32>} : memref<128x16xf32, #tpu.memory_space<vmem>>, vector<1x16xf32>,
    %c54_i32 = arith.constant 54 : i32
    %649 = arith.addi %0, %c54_i32 : i32
    %650 = arith.index_cast %649 : i32 to index
    %651 = memref.load %arg1[%650] : memref<128xi32, #tpu.memory_space<smem>>
    %652 = arith.index_cast %651 : i32 to index
    %c0_324 = arith.constant 0 : index
    %653 = vector.load %arg3[%652, %c0_324] : memref<32x16xf32, #tpu.memory_space<vmem>>, vector<1x16xf32>
    %c54 = arith.constant 54 : index
    %c0_325 = arith.constant 0 : index
    %654 = vector.load %arg5[%c54, %c0_325] : memref<128x16xf32, #tpu.memory_space<vmem>>, vector<1x16xf32>
    tpu.vector_store %arg5[%c54, %c0_325], %653 {strides = array<i32>} : memref<128x16xf32, #tpu.memory_space<vmem>>, vector<1x16xf32>,
    %c54_i32_326 = arith.constant 54 : i32
    %655 = arith.addi %0, %c54_i32_326 : i32
    %656 = arith.index_cast %655 : i32 to index
    %657 = memref.load %arg2[%656] : memref<128xi32, #tpu.memory_space<smem>>
    %658 = arith.index_cast %657 : i32 to index
    %c0_327 = arith.constant 0 : index
    %659 = vector.load %arg3[%658, %c0_327] : memref<32x16xf32, #tpu.memory_space<vmem>>, vector<1x16xf32>
    %c54_328 = arith.constant 54 : index
    %c0_329 = arith.constant 0 : index
    %660 = vector.load %arg6[%c54_328, %c0_329] : memref<128x16xf32, #tpu.memory_space<vmem>>, vector<1x16xf32>
    tpu.vector_store %arg6[%c54_328, %c0_329], %659 {strides = array<i32>} : memref<128x16xf32, #tpu.memory_space<vmem>>, vector<1x16xf32>,
    %c55_i32 = arith.constant 55 : i32
    %661 = arith.addi %0, %c55_i32 : i32
    %662 = arith.index_cast %661 : i32 to index
    %663 = memref.load %arg1[%662] : memref<128xi32, #tpu.memory_space<smem>>
    %664 = arith.index_cast %663 : i32 to index
    %c0_330 = arith.constant 0 : index
    %665 = vector.load %arg3[%664, %c0_330] : memref<32x16xf32, #tpu.memory_space<vmem>>, vector<1x16xf32>
    %c55 = arith.constant 55 : index
    %c0_331 = arith.constant 0 : index
    %666 = vector.load %arg5[%c55, %c0_331] : memref<128x16xf32, #tpu.memory_space<vmem>>, vector<1x16xf32>
    tpu.vector_store %arg5[%c55, %c0_331], %665 {strides = array<i32>} : memref<128x16xf32, #tpu.memory_space<vmem>>, vector<1x16xf32>,
    %c55_i32_332 = arith.constant 55 : i32
    %667 = arith.addi %0, %c55_i32_332 : i32
    %668 = arith.index_cast %667 : i32 to index
    %669 = memref.load %arg2[%668] : memref<128xi32, #tpu.memory_space<smem>>
    %670 = arith.index_cast %669 : i32 to index
    %c0_333 = arith.constant 0 : index
    %671 = vector.load %arg3[%670, %c0_333] : memref<32x16xf32, #tpu.memory_space<vmem>>, vector<1x16xf32>
    %c55_334 = arith.constant 55 : index
    %c0_335 = arith.constant 0 : index
    %672 = vector.load %arg6[%c55_334, %c0_335] : memref<128x16xf32, #tpu.memory_space<vmem>>, vector<1x16xf32>
    tpu.vector_store %arg6[%c55_334, %c0_335], %671 {strides = array<i32>} : memref<128x16xf32, #tpu.memory_space<vmem>>, vector<1x16xf32>,
    %c56_i32 = arith.constant 56 : i32
    %673 = arith.addi %0, %c56_i32 : i32
    %674 = arith.index_cast %673 : i32 to index
    %675 = memref.load %arg1[%674] : memref<128xi32, #tpu.memory_space<smem>>
    %676 = arith.index_cast %675 : i32 to index
    %c0_336 = arith.constant 0 : index
    %677 = vector.load %arg3[%676, %c0_336] : memref<32x16xf32, #tpu.memory_space<vmem>>, vector<1x16xf32>
    %c56 = arith.constant 56 : index
    %c0_337 = arith.constant 0 : index
    %678 = vector.load %arg5[%c56, %c0_337] : memref<128x16xf32, #tpu.memory_space<vmem>>, vector<1x16xf32>
    tpu.vector_store %arg5[%c56, %c0_337], %677 {strides = array<i32>} : memref<128x16xf32, #tpu.memory_space<vmem>>, vector<1x16xf32>,
    %c56_i32_338 = arith.constant 56 : i32
    %679 = arith.addi %0, %c56_i32_338 : i32
    %680 = arith.index_cast %679 : i32 to index
    %681 = memref.load %arg2[%680] : memref<128xi32, #tpu.memory_space<smem>>
    %682 = arith.index_cast %681 : i32 to index
    %c0_339 = arith.constant 0 : index
    %683 = vector.load %arg3[%682, %c0_339] : memref<32x16xf32, #tpu.memory_space<vmem>>, vector<1x16xf32>
    %c56_340 = arith.constant 56 : index
    %c0_341 = arith.constant 0 : index
    %684 = vector.load %arg6[%c56_340, %c0_341] : memref<128x16xf32, #tpu.memory_space<vmem>>, vector<1x16xf32>
    tpu.vector_store %arg6[%c56_340, %c0_341], %683 {strides = array<i32>} : memref<128x16xf32, #tpu.memory_space<vmem>>, vector<1x16xf32>,
    %c57_i32 = arith.constant 57 : i32
    %685 = arith.addi %0, %c57_i32 : i32
    %686 = arith.index_cast %685 : i32 to index
    %687 = memref.load %arg1[%686] : memref<128xi32, #tpu.memory_space<smem>>
    %688 = arith.index_cast %687 : i32 to index
    %c0_342 = arith.constant 0 : index
    %689 = vector.load %arg3[%688, %c0_342] : memref<32x16xf32, #tpu.memory_space<vmem>>, vector<1x16xf32>
    %c57 = arith.constant 57 : index
    %c0_343 = arith.constant 0 : index
    %690 = vector.load %arg5[%c57, %c0_343] : memref<128x16xf32, #tpu.memory_space<vmem>>, vector<1x16xf32>
    tpu.vector_store %arg5[%c57, %c0_343], %689 {strides = array<i32>} : memref<128x16xf32, #tpu.memory_space<vmem>>, vector<1x16xf32>,
    %c57_i32_344 = arith.constant 57 : i32
    %691 = arith.addi %0, %c57_i32_344 : i32
    %692 = arith.index_cast %691 : i32 to index
    %693 = memref.load %arg2[%692] : memref<128xi32, #tpu.memory_space<smem>>
    %694 = arith.index_cast %693 : i32 to index
    %c0_345 = arith.constant 0 : index
    %695 = vector.load %arg3[%694, %c0_345] : memref<32x16xf32, #tpu.memory_space<vmem>>, vector<1x16xf32>
    %c57_346 = arith.constant 57 : index
    %c0_347 = arith.constant 0 : index
    %696 = vector.load %arg6[%c57_346, %c0_347] : memref<128x16xf32, #tpu.memory_space<vmem>>, vector<1x16xf32>
    tpu.vector_store %arg6[%c57_346, %c0_347], %695 {strides = array<i32>} : memref<128x16xf32, #tpu.memory_space<vmem>>, vector<1x16xf32>,
    %c58_i32 = arith.constant 58 : i32
    %697 = arith.addi %0, %c58_i32 : i32
    %698 = arith.index_cast %697 : i32 to index
    %699 = memref.load %arg1[%698] : memref<128xi32, #tpu.memory_space<smem>>
    %700 = arith.index_cast %699 : i32 to index
    %c0_348 = arith.constant 0 : index
    %701 = vector.load %arg3[%700, %c0_348] : memref<32x16xf32, #tpu.memory_space<vmem>>, vector<1x16xf32>
    %c58 = arith.constant 58 : index
    %c0_349 = arith.constant 0 : index
    %702 = vector.load %arg5[%c58, %c0_349] : memref<128x16xf32, #tpu.memory_space<vmem>>, vector<1x16xf32>
    tpu.vector_store %arg5[%c58, %c0_349], %701 {strides = array<i32>} : memref<128x16xf32, #tpu.memory_space<vmem>>, vector<1x16xf32>,
    %c58_i32_350 = arith.constant 58 : i32
    %703 = arith.addi %0, %c58_i32_350 : i32
    %704 = arith.index_cast %703 : i32 to index
    %705 = memref.load %arg2[%704] : memref<128xi32, #tpu.memory_space<smem>>
    %706 = arith.index_cast %705 : i32 to index
    %c0_351 = arith.constant 0 : index
    %707 = vector.load %arg3[%706, %c0_351] : memref<32x16xf32, #tpu.memory_space<vmem>>, vector<1x16xf32>
    %c58_352 = arith.constant 58 : index
    %c0_353 = arith.constant 0 : index
    %708 = vector.load %arg6[%c58_352, %c0_353] : memref<128x16xf32, #tpu.memory_space<vmem>>, vector<1x16xf32>
    tpu.vector_store %arg6[%c58_352, %c0_353], %707 {strides = array<i32>} : memref<128x16xf32, #tpu.memory_space<vmem>>, vector<1x16xf32>,
    %c59_i32 = arith.constant 59 : i32
    %709 = arith.addi %0, %c59_i32 : i32
    %710 = arith.index_cast %709 : i32 to index
    %711 = memref.load %arg1[%710] : memref<128xi32, #tpu.memory_space<smem>>
    %712 = arith.index_cast %711 : i32 to index
    %c0_354 = arith.constant 0 : index
    %713 = vector.load %arg3[%712, %c0_354] : memref<32x16xf32, #tpu.memory_space<vmem>>, vector<1x16xf32>
    %c59 = arith.constant 59 : index
    %c0_355 = arith.constant 0 : index
    %714 = vector.load %arg5[%c59, %c0_355] : memref<128x16xf32, #tpu.memory_space<vmem>>, vector<1x16xf32>
    tpu.vector_store %arg5[%c59, %c0_355], %713 {strides = array<i32>} : memref<128x16xf32, #tpu.memory_space<vmem>>, vector<1x16xf32>,
    %c59_i32_356 = arith.constant 59 : i32
    %715 = arith.addi %0, %c59_i32_356 : i32
    %716 = arith.index_cast %715 : i32 to index
    %717 = memref.load %arg2[%716] : memref<128xi32, #tpu.memory_space<smem>>
    %718 = arith.index_cast %717 : i32 to index
    %c0_357 = arith.constant 0 : index
    %719 = vector.load %arg3[%718, %c0_357] : memref<32x16xf32, #tpu.memory_space<vmem>>, vector<1x16xf32>
    %c59_358 = arith.constant 59 : index
    %c0_359 = arith.constant 0 : index
    %720 = vector.load %arg6[%c59_358, %c0_359] : memref<128x16xf32, #tpu.memory_space<vmem>>, vector<1x16xf32>
    tpu.vector_store %arg6[%c59_358, %c0_359], %719 {strides = array<i32>} : memref<128x16xf32, #tpu.memory_space<vmem>>, vector<1x16xf32>,
    %c60_i32 = arith.constant 60 : i32
    %721 = arith.addi %0, %c60_i32 : i32
    %722 = arith.index_cast %721 : i32 to index
    %723 = memref.load %arg1[%722] : memref<128xi32, #tpu.memory_space<smem>>
    %724 = arith.index_cast %723 : i32 to index
    %c0_360 = arith.constant 0 : index
    %725 = vector.load %arg3[%724, %c0_360] : memref<32x16xf32, #tpu.memory_space<vmem>>, vector<1x16xf32>
    %c60 = arith.constant 60 : index
    %c0_361 = arith.constant 0 : index
    %726 = vector.load %arg5[%c60, %c0_361] : memref<128x16xf32, #tpu.memory_space<vmem>>, vector<1x16xf32>
    tpu.vector_store %arg5[%c60, %c0_361], %725 {strides = array<i32>} : memref<128x16xf32, #tpu.memory_space<vmem>>, vector<1x16xf32>,
    %c60_i32_362 = arith.constant 60 : i32
    %727 = arith.addi %0, %c60_i32_362 : i32
    %728 = arith.index_cast %727 : i32 to index
    %729 = memref.load %arg2[%728] : memref<128xi32, #tpu.memory_space<smem>>
    %730 = arith.index_cast %729 : i32 to index
    %c0_363 = arith.constant 0 : index
    %731 = vector.load %arg3[%730, %c0_363] : memref<32x16xf32, #tpu.memory_space<vmem>>, vector<1x16xf32>
    %c60_364 = arith.constant 60 : index
    %c0_365 = arith.constant 0 : index
    %732 = vector.load %arg6[%c60_364, %c0_365] : memref<128x16xf32, #tpu.memory_space<vmem>>, vector<1x16xf32>
    tpu.vector_store %arg6[%c60_364, %c0_365], %731 {strides = array<i32>} : memref<128x16xf32, #tpu.memory_space<vmem>>, vector<1x16xf32>,
    %c61_i32 = arith.constant 61 : i32
    %733 = arith.addi %0, %c61_i32 : i32
    %734 = arith.index_cast %733 : i32 to index
    %735 = memref.load %arg1[%734] : memref<128xi32, #tpu.memory_space<smem>>
    %736 = arith.index_cast %735 : i32 to index
    %c0_366 = arith.constant 0 : index
    %737 = vector.load %arg3[%736, %c0_366] : memref<32x16xf32, #tpu.memory_space<vmem>>, vector<1x16xf32>
    %c61 = arith.constant 61 : index
    %c0_367 = arith.constant 0 : index
    %738 = vector.load %arg5[%c61, %c0_367] : memref<128x16xf32, #tpu.memory_space<vmem>>, vector<1x16xf32>
    tpu.vector_store %arg5[%c61, %c0_367], %737 {strides = array<i32>} : memref<128x16xf32, #tpu.memory_space<vmem>>, vector<1x16xf32>,
    %c61_i32_368 = arith.constant 61 : i32
    %739 = arith.addi %0, %c61_i32_368 : i32
    %740 = arith.index_cast %739 : i32 to index
    %741 = memref.load %arg2[%740] : memref<128xi32, #tpu.memory_space<smem>>
    %742 = arith.index_cast %741 : i32 to index
    %c0_369 = arith.constant 0 : index
    %743 = vector.load %arg3[%742, %c0_369] : memref<32x16xf32, #tpu.memory_space<vmem>>, vector<1x16xf32>
    %c61_370 = arith.constant 61 : index
    %c0_371 = arith.constant 0 : index
    %744 = vector.load %arg6[%c61_370, %c0_371] : memref<128x16xf32, #tpu.memory_space<vmem>>, vector<1x16xf32>
    tpu.vector_store %arg6[%c61_370, %c0_371], %743 {strides = array<i32>} : memref<128x16xf32, #tpu.memory_space<vmem>>, vector<1x16xf32>,
    %c62_i32 = arith.constant 62 : i32
    %745 = arith.addi %0, %c62_i32 : i32
    %746 = arith.index_cast %745 : i32 to index
    %747 = memref.load %arg1[%746] : memref<128xi32, #tpu.memory_space<smem>>
    %748 = arith.index_cast %747 : i32 to index
    %c0_372 = arith.constant 0 : index
    %749 = vector.load %arg3[%748, %c0_372] : memref<32x16xf32, #tpu.memory_space<vmem>>, vector<1x16xf32>
    %c62 = arith.constant 62 : index
    %c0_373 = arith.constant 0 : index
    %750 = vector.load %arg5[%c62, %c0_373] : memref<128x16xf32, #tpu.memory_space<vmem>>, vector<1x16xf32>
    tpu.vector_store %arg5[%c62, %c0_373], %749 {strides = array<i32>} : memref<128x16xf32, #tpu.memory_space<vmem>>, vector<1x16xf32>,
    %c62_i32_374 = arith.constant 62 : i32
    %751 = arith.addi %0, %c62_i32_374 : i32
    %752 = arith.index_cast %751 : i32 to index
    %753 = memref.load %arg2[%752] : memref<128xi32, #tpu.memory_space<smem>>
    %754 = arith.index_cast %753 : i32 to index
    %c0_375 = arith.constant 0 : index
    %755 = vector.load %arg3[%754, %c0_375] : memref<32x16xf32, #tpu.memory_space<vmem>>, vector<1x16xf32>
    %c62_376 = arith.constant 62 : index
    %c0_377 = arith.constant 0 : index
    %756 = vector.load %arg6[%c62_376, %c0_377] : memref<128x16xf32, #tpu.memory_space<vmem>>, vector<1x16xf32>
    tpu.vector_store %arg6[%c62_376, %c0_377], %755 {strides = array<i32>} : memref<128x16xf32, #tpu.memory_space<vmem>>, vector<1x16xf32>,
    %c63_i32 = arith.constant 63 : i32
    %757 = arith.addi %0, %c63_i32 : i32
    %758 = arith.index_cast %757 : i32 to index
    %759 = memref.load %arg1[%758] : memref<128xi32, #tpu.memory_space<smem>>
    %760 = arith.index_cast %759 : i32 to index
    %c0_378 = arith.constant 0 : index
    %761 = vector.load %arg3[%760, %c0_378] : memref<32x16xf32, #tpu.memory_space<vmem>>, vector<1x16xf32>
    %c63 = arith.constant 63 : index
    %c0_379 = arith.constant 0 : index
    %762 = vector.load %arg5[%c63, %c0_379] : memref<128x16xf32, #tpu.memory_space<vmem>>, vector<1x16xf32>
    tpu.vector_store %arg5[%c63, %c0_379], %761 {strides = array<i32>} : memref<128x16xf32, #tpu.memory_space<vmem>>, vector<1x16xf32>,
    %c63_i32_380 = arith.constant 63 : i32
    %763 = arith.addi %0, %c63_i32_380 : i32
    %764 = arith.index_cast %763 : i32 to index
    %765 = memref.load %arg2[%764] : memref<128xi32, #tpu.memory_space<smem>>
    %766 = arith.index_cast %765 : i32 to index
    %c0_381 = arith.constant 0 : index
    %767 = vector.load %arg3[%766, %c0_381] : memref<32x16xf32, #tpu.memory_space<vmem>>, vector<1x16xf32>
    %c63_382 = arith.constant 63 : index
    %c0_383 = arith.constant 0 : index
    %768 = vector.load %arg6[%c63_382, %c0_383] : memref<128x16xf32, #tpu.memory_space<vmem>>, vector<1x16xf32>
    tpu.vector_store %arg6[%c63_382, %c0_383], %767 {strides = array<i32>} : memref<128x16xf32, #tpu.memory_space<vmem>>, vector<1x16xf32>,
    %c64_i32 = arith.constant 64 : i32
    %769 = arith.addi %0, %c64_i32 : i32
    %770 = arith.index_cast %769 : i32 to index
    %771 = memref.load %arg1[%770] : memref<128xi32, #tpu.memory_space<smem>>
    %772 = arith.index_cast %771 : i32 to index
    %c0_384 = arith.constant 0 : index
    %773 = vector.load %arg3[%772, %c0_384] : memref<32x16xf32, #tpu.memory_space<vmem>>, vector<1x16xf32>
    %c64 = arith.constant 64 : index
    %c0_385 = arith.constant 0 : index
    %774 = vector.load %arg5[%c64, %c0_385] : memref<128x16xf32, #tpu.memory_space<vmem>>, vector<1x16xf32>
    tpu.vector_store %arg5[%c64, %c0_385], %773 {strides = array<i32>} : memref<128x16xf32, #tpu.memory_space<vmem>>, vector<1x16xf32>,
    %c64_i32_386 = arith.constant 64 : i32
    %775 = arith.addi %0, %c64_i32_386 : i32
    %776 = arith.index_cast %775 : i32 to index
    %777 = memref.load %arg2[%776] : memref<128xi32, #tpu.memory_space<smem>>
    %778 = arith.index_cast %777 : i32 to index
    %c0_387 = arith.constant 0 : index
    %779 = vector.load %arg3[%778, %c0_387] : memref<32x16xf32, #tpu.memory_space<vmem>>, vector<1x16xf32>
    %c64_388 = arith.constant 64 : index
    %c0_389 = arith.constant 0 : index
    %780 = vector.load %arg6[%c64_388, %c0_389] : memref<128x16xf32, #tpu.memory_space<vmem>>, vector<1x16xf32>
    tpu.vector_store %arg6[%c64_388, %c0_389], %779 {strides = array<i32>} : memref<128x16xf32, #tpu.memory_space<vmem>>, vector<1x16xf32>,
    %c65_i32 = arith.constant 65 : i32
    %781 = arith.addi %0, %c65_i32 : i32
    %782 = arith.index_cast %781 : i32 to index
    %783 = memref.load %arg1[%782] : memref<128xi32, #tpu.memory_space<smem>>
    %784 = arith.index_cast %783 : i32 to index
    %c0_390 = arith.constant 0 : index
    %785 = vector.load %arg3[%784, %c0_390] : memref<32x16xf32, #tpu.memory_space<vmem>>, vector<1x16xf32>
    %c65 = arith.constant 65 : index
    %c0_391 = arith.constant 0 : index
    %786 = vector.load %arg5[%c65, %c0_391] : memref<128x16xf32, #tpu.memory_space<vmem>>, vector<1x16xf32>
    tpu.vector_store %arg5[%c65, %c0_391], %785 {strides = array<i32>} : memref<128x16xf32, #tpu.memory_space<vmem>>, vector<1x16xf32>,
    %c65_i32_392 = arith.constant 65 : i32
    %787 = arith.addi %0, %c65_i32_392 : i32
    %788 = arith.index_cast %787 : i32 to index
    %789 = memref.load %arg2[%788] : memref<128xi32, #tpu.memory_space<smem>>
    %790 = arith.index_cast %789 : i32 to index
    %c0_393 = arith.constant 0 : index
    %791 = vector.load %arg3[%790, %c0_393] : memref<32x16xf32, #tpu.memory_space<vmem>>, vector<1x16xf32>
    %c65_394 = arith.constant 65 : index
    %c0_395 = arith.constant 0 : index
    %792 = vector.load %arg6[%c65_394, %c0_395] : memref<128x16xf32, #tpu.memory_space<vmem>>, vector<1x16xf32>
    tpu.vector_store %arg6[%c65_394, %c0_395], %791 {strides = array<i32>} : memref<128x16xf32, #tpu.memory_space<vmem>>, vector<1x16xf32>,
    %c66_i32 = arith.constant 66 : i32
    %793 = arith.addi %0, %c66_i32 : i32
    %794 = arith.index_cast %793 : i32 to index
    %795 = memref.load %arg1[%794] : memref<128xi32, #tpu.memory_space<smem>>
    %796 = arith.index_cast %795 : i32 to index
    %c0_396 = arith.constant 0 : index
    %797 = vector.load %arg3[%796, %c0_396] : memref<32x16xf32, #tpu.memory_space<vmem>>, vector<1x16xf32>
    %c66 = arith.constant 66 : index
    %c0_397 = arith.constant 0 : index
    %798 = vector.load %arg5[%c66, %c0_397] : memref<128x16xf32, #tpu.memory_space<vmem>>, vector<1x16xf32>
    tpu.vector_store %arg5[%c66, %c0_397], %797 {strides = array<i32>} : memref<128x16xf32, #tpu.memory_space<vmem>>, vector<1x16xf32>,
    %c66_i32_398 = arith.constant 66 : i32
    %799 = arith.addi %0, %c66_i32_398 : i32
    %800 = arith.index_cast %799 : i32 to index
    %801 = memref.load %arg2[%800] : memref<128xi32, #tpu.memory_space<smem>>
    %802 = arith.index_cast %801 : i32 to index
    %c0_399 = arith.constant 0 : index
    %803 = vector.load %arg3[%802, %c0_399] : memref<32x16xf32, #tpu.memory_space<vmem>>, vector<1x16xf32>
    %c66_400 = arith.constant 66 : index
    %c0_401 = arith.constant 0 : index
    %804 = vector.load %arg6[%c66_400, %c0_401] : memref<128x16xf32, #tpu.memory_space<vmem>>, vector<1x16xf32>
    tpu.vector_store %arg6[%c66_400, %c0_401], %803 {strides = array<i32>} : memref<128x16xf32, #tpu.memory_space<vmem>>, vector<1x16xf32>,
    %c67_i32 = arith.constant 67 : i32
    %805 = arith.addi %0, %c67_i32 : i32
    %806 = arith.index_cast %805 : i32 to index
    %807 = memref.load %arg1[%806] : memref<128xi32, #tpu.memory_space<smem>>
    %808 = arith.index_cast %807 : i32 to index
    %c0_402 = arith.constant 0 : index
    %809 = vector.load %arg3[%808, %c0_402] : memref<32x16xf32, #tpu.memory_space<vmem>>, vector<1x16xf32>
    %c67 = arith.constant 67 : index
    %c0_403 = arith.constant 0 : index
    %810 = vector.load %arg5[%c67, %c0_403] : memref<128x16xf32, #tpu.memory_space<vmem>>, vector<1x16xf32>
    tpu.vector_store %arg5[%c67, %c0_403], %809 {strides = array<i32>} : memref<128x16xf32, #tpu.memory_space<vmem>>, vector<1x16xf32>,
    %c67_i32_404 = arith.constant 67 : i32
    %811 = arith.addi %0, %c67_i32_404 : i32
    %812 = arith.index_cast %811 : i32 to index
    %813 = memref.load %arg2[%812] : memref<128xi32, #tpu.memory_space<smem>>
    %814 = arith.index_cast %813 : i32 to index
    %c0_405 = arith.constant 0 : index
    %815 = vector.load %arg3[%814, %c0_405] : memref<32x16xf32, #tpu.memory_space<vmem>>, vector<1x16xf32>
    %c67_406 = arith.constant 67 : index
    %c0_407 = arith.constant 0 : index
    %816 = vector.load %arg6[%c67_406, %c0_407] : memref<128x16xf32, #tpu.memory_space<vmem>>, vector<1x16xf32>
    tpu.vector_store %arg6[%c67_406, %c0_407], %815 {strides = array<i32>} : memref<128x16xf32, #tpu.memory_space<vmem>>, vector<1x16xf32>,
    %c68_i32 = arith.constant 68 : i32
    %817 = arith.addi %0, %c68_i32 : i32
    %818 = arith.index_cast %817 : i32 to index
    %819 = memref.load %arg1[%818] : memref<128xi32, #tpu.memory_space<smem>>
    %820 = arith.index_cast %819 : i32 to index
    %c0_408 = arith.constant 0 : index
    %821 = vector.load %arg3[%820, %c0_408] : memref<32x16xf32, #tpu.memory_space<vmem>>, vector<1x16xf32>
    %c68 = arith.constant 68 : index
    %c0_409 = arith.constant 0 : index
    %822 = vector.load %arg5[%c68, %c0_409] : memref<128x16xf32, #tpu.memory_space<vmem>>, vector<1x16xf32>
    tpu.vector_store %arg5[%c68, %c0_409], %821 {strides = array<i32>} : memref<128x16xf32, #tpu.memory_space<vmem>>, vector<1x16xf32>,
    %c68_i32_410 = arith.constant 68 : i32
    %823 = arith.addi %0, %c68_i32_410 : i32
    %824 = arith.index_cast %823 : i32 to index
    %825 = memref.load %arg2[%824] : memref<128xi32, #tpu.memory_space<smem>>
    %826 = arith.index_cast %825 : i32 to index
    %c0_411 = arith.constant 0 : index
    %827 = vector.load %arg3[%826, %c0_411] : memref<32x16xf32, #tpu.memory_space<vmem>>, vector<1x16xf32>
    %c68_412 = arith.constant 68 : index
    %c0_413 = arith.constant 0 : index
    %828 = vector.load %arg6[%c68_412, %c0_413] : memref<128x16xf32, #tpu.memory_space<vmem>>, vector<1x16xf32>
    tpu.vector_store %arg6[%c68_412, %c0_413], %827 {strides = array<i32>} : memref<128x16xf32, #tpu.memory_space<vmem>>, vector<1x16xf32>,
    %c69_i32 = arith.constant 69 : i32
    %829 = arith.addi %0, %c69_i32 : i32
    %830 = arith.index_cast %829 : i32 to index
    %831 = memref.load %arg1[%830] : memref<128xi32, #tpu.memory_space<smem>>
    %832 = arith.index_cast %831 : i32 to index
    %c0_414 = arith.constant 0 : index
    %833 = vector.load %arg3[%832, %c0_414] : memref<32x16xf32, #tpu.memory_space<vmem>>, vector<1x16xf32>
    %c69 = arith.constant 69 : index
    %c0_415 = arith.constant 0 : index
    %834 = vector.load %arg5[%c69, %c0_415] : memref<128x16xf32, #tpu.memory_space<vmem>>, vector<1x16xf32>
    tpu.vector_store %arg5[%c69, %c0_415], %833 {strides = array<i32>} : memref<128x16xf32, #tpu.memory_space<vmem>>, vector<1x16xf32>,
    %c69_i32_416 = arith.constant 69 : i32
    %835 = arith.addi %0, %c69_i32_416 : i32
    %836 = arith.index_cast %835 : i32 to index
    %837 = memref.load %arg2[%836] : memref<128xi32, #tpu.memory_space<smem>>
    %838 = arith.index_cast %837 : i32 to index
    %c0_417 = arith.constant 0 : index
    %839 = vector.load %arg3[%838, %c0_417] : memref<32x16xf32, #tpu.memory_space<vmem>>, vector<1x16xf32>
    %c69_418 = arith.constant 69 : index
    %c0_419 = arith.constant 0 : index
    %840 = vector.load %arg6[%c69_418, %c0_419] : memref<128x16xf32, #tpu.memory_space<vmem>>, vector<1x16xf32>
    tpu.vector_store %arg6[%c69_418, %c0_419], %839 {strides = array<i32>} : memref<128x16xf32, #tpu.memory_space<vmem>>, vector<1x16xf32>,
    %c70_i32 = arith.constant 70 : i32
    %841 = arith.addi %0, %c70_i32 : i32
    %842 = arith.index_cast %841 : i32 to index
    %843 = memref.load %arg1[%842] : memref<128xi32, #tpu.memory_space<smem>>
    %844 = arith.index_cast %843 : i32 to index
    %c0_420 = arith.constant 0 : index
    %845 = vector.load %arg3[%844, %c0_420] : memref<32x16xf32, #tpu.memory_space<vmem>>, vector<1x16xf32>
    %c70 = arith.constant 70 : index
    %c0_421 = arith.constant 0 : index
    %846 = vector.load %arg5[%c70, %c0_421] : memref<128x16xf32, #tpu.memory_space<vmem>>, vector<1x16xf32>
    tpu.vector_store %arg5[%c70, %c0_421], %845 {strides = array<i32>} : memref<128x16xf32, #tpu.memory_space<vmem>>, vector<1x16xf32>,
    %c70_i32_422 = arith.constant 70 : i32
    %847 = arith.addi %0, %c70_i32_422 : i32
    %848 = arith.index_cast %847 : i32 to index
    %849 = memref.load %arg2[%848] : memref<128xi32, #tpu.memory_space<smem>>
    %850 = arith.index_cast %849 : i32 to index
    %c0_423 = arith.constant 0 : index
    %851 = vector.load %arg3[%850, %c0_423] : memref<32x16xf32, #tpu.memory_space<vmem>>, vector<1x16xf32>
    %c70_424 = arith.constant 70 : index
    %c0_425 = arith.constant 0 : index
    %852 = vector.load %arg6[%c70_424, %c0_425] : memref<128x16xf32, #tpu.memory_space<vmem>>, vector<1x16xf32>
    tpu.vector_store %arg6[%c70_424, %c0_425], %851 {strides = array<i32>} : memref<128x16xf32, #tpu.memory_space<vmem>>, vector<1x16xf32>,
    %c71_i32 = arith.constant 71 : i32
    %853 = arith.addi %0, %c71_i32 : i32
    %854 = arith.index_cast %853 : i32 to index
    %855 = memref.load %arg1[%854] : memref<128xi32, #tpu.memory_space<smem>>
    %856 = arith.index_cast %855 : i32 to index
    %c0_426 = arith.constant 0 : index
    %857 = vector.load %arg3[%856, %c0_426] : memref<32x16xf32, #tpu.memory_space<vmem>>, vector<1x16xf32>
    %c71 = arith.constant 71 : index
    %c0_427 = arith.constant 0 : index
    %858 = vector.load %arg5[%c71, %c0_427] : memref<128x16xf32, #tpu.memory_space<vmem>>, vector<1x16xf32>
    tpu.vector_store %arg5[%c71, %c0_427], %857 {strides = array<i32>} : memref<128x16xf32, #tpu.memory_space<vmem>>, vector<1x16xf32>,
    %c71_i32_428 = arith.constant 71 : i32
    %859 = arith.addi %0, %c71_i32_428 : i32
    %860 = arith.index_cast %859 : i32 to index
    %861 = memref.load %arg2[%860] : memref<128xi32, #tpu.memory_space<smem>>
    %862 = arith.index_cast %861 : i32 to index
    %c0_429 = arith.constant 0 : index
    %863 = vector.load %arg3[%862, %c0_429] : memref<32x16xf32, #tpu.memory_space<vmem>>, vector<1x16xf32>
    %c71_430 = arith.constant 71 : index
    %c0_431 = arith.constant 0 : index
    %864 = vector.load %arg6[%c71_430, %c0_431] : memref<128x16xf32, #tpu.memory_space<vmem>>, vector<1x16xf32>
    tpu.vector_store %arg6[%c71_430, %c0_431], %863 {strides = array<i32>} : memref<128x16xf32, #tpu.memory_space<vmem>>, vector<1x16xf32>,
    %c72_i32 = arith.constant 72 : i32
    %865 = arith.addi %0, %c72_i32 : i32
    %866 = arith.index_cast %865 : i32 to index
    %867 = memref.load %arg1[%866] : memref<128xi32, #tpu.memory_space<smem>>
    %868 = arith.index_cast %867 : i32 to index
    %c0_432 = arith.constant 0 : index
    %869 = vector.load %arg3[%868, %c0_432] : memref<32x16xf32, #tpu.memory_space<vmem>>, vector<1x16xf32>
    %c72 = arith.constant 72 : index
    %c0_433 = arith.constant 0 : index
    %870 = vector.load %arg5[%c72, %c0_433] : memref<128x16xf32, #tpu.memory_space<vmem>>, vector<1x16xf32>
    tpu.vector_store %arg5[%c72, %c0_433], %869 {strides = array<i32>} : memref<128x16xf32, #tpu.memory_space<vmem>>, vector<1x16xf32>,
    %c72_i32_434 = arith.constant 72 : i32
    %871 = arith.addi %0, %c72_i32_434 : i32
    %872 = arith.index_cast %871 : i32 to index
    %873 = memref.load %arg2[%872] : memref<128xi32, #tpu.memory_space<smem>>
    %874 = arith.index_cast %873 : i32 to index
    %c0_435 = arith.constant 0 : index
    %875 = vector.load %arg3[%874, %c0_435] : memref<32x16xf32, #tpu.memory_space<vmem>>, vector<1x16xf32>
    %c72_436 = arith.constant 72 : index
    %c0_437 = arith.constant 0 : index
    %876 = vector.load %arg6[%c72_436, %c0_437] : memref<128x16xf32, #tpu.memory_space<vmem>>, vector<1x16xf32>
    tpu.vector_store %arg6[%c72_436, %c0_437], %875 {strides = array<i32>} : memref<128x16xf32, #tpu.memory_space<vmem>>, vector<1x16xf32>,
    %c73_i32 = arith.constant 73 : i32
    %877 = arith.addi %0, %c73_i32 : i32
    %878 = arith.index_cast %877 : i32 to index
    %879 = memref.load %arg1[%878] : memref<128xi32, #tpu.memory_space<smem>>
    %880 = arith.index_cast %879 : i32 to index
    %c0_438 = arith.constant 0 : index
    %881 = vector.load %arg3[%880, %c0_438] : memref<32x16xf32, #tpu.memory_space<vmem>>, vector<1x16xf32>
    %c73 = arith.constant 73 : index
    %c0_439 = arith.constant 0 : index
    %882 = vector.load %arg5[%c73, %c0_439] : memref<128x16xf32, #tpu.memory_space<vmem>>, vector<1x16xf32>
    tpu.vector_store %arg5[%c73, %c0_439], %881 {strides = array<i32>} : memref<128x16xf32, #tpu.memory_space<vmem>>, vector<1x16xf32>,
    %c73_i32_440 = arith.constant 73 : i32
    %883 = arith.addi %0, %c73_i32_440 : i32
    %884 = arith.index_cast %883 : i32 to index
    %885 = memref.load %arg2[%884] : memref<128xi32, #tpu.memory_space<smem>>
    %886 = arith.index_cast %885 : i32 to index
    %c0_441 = arith.constant 0 : index
    %887 = vector.load %arg3[%886, %c0_441] : memref<32x16xf32, #tpu.memory_space<vmem>>, vector<1x16xf32>
    %c73_442 = arith.constant 73 : index
    %c0_443 = arith.constant 0 : index
    %888 = vector.load %arg6[%c73_442, %c0_443] : memref<128x16xf32, #tpu.memory_space<vmem>>, vector<1x16xf32>
    tpu.vector_store %arg6[%c73_442, %c0_443], %887 {strides = array<i32>} : memref<128x16xf32, #tpu.memory_space<vmem>>, vector<1x16xf32>,
    %c74_i32 = arith.constant 74 : i32
    %889 = arith.addi %0, %c74_i32 : i32
    %890 = arith.index_cast %889 : i32 to index
    %891 = memref.load %arg1[%890] : memref<128xi32, #tpu.memory_space<smem>>
    %892 = arith.index_cast %891 : i32 to index
    %c0_444 = arith.constant 0 : index
    %893 = vector.load %arg3[%892, %c0_444] : memref<32x16xf32, #tpu.memory_space<vmem>>, vector<1x16xf32>
    %c74 = arith.constant 74 : index
    %c0_445 = arith.constant 0 : index
    %894 = vector.load %arg5[%c74, %c0_445] : memref<128x16xf32, #tpu.memory_space<vmem>>, vector<1x16xf32>
    tpu.vector_store %arg5[%c74, %c0_445], %893 {strides = array<i32>} : memref<128x16xf32, #tpu.memory_space<vmem>>, vector<1x16xf32>,
    %c74_i32_446 = arith.constant 74 : i32
    %895 = arith.addi %0, %c74_i32_446 : i32
    %896 = arith.index_cast %895 : i32 to index
    %897 = memref.load %arg2[%896] : memref<128xi32, #tpu.memory_space<smem>>
    %898 = arith.index_cast %897 : i32 to index
    %c0_447 = arith.constant 0 : index
    %899 = vector.load %arg3[%898, %c0_447] : memref<32x16xf32, #tpu.memory_space<vmem>>, vector<1x16xf32>
    %c74_448 = arith.constant 74 : index
    %c0_449 = arith.constant 0 : index
    %900 = vector.load %arg6[%c74_448, %c0_449] : memref<128x16xf32, #tpu.memory_space<vmem>>, vector<1x16xf32>
    tpu.vector_store %arg6[%c74_448, %c0_449], %899 {strides = array<i32>} : memref<128x16xf32, #tpu.memory_space<vmem>>, vector<1x16xf32>,
    %c75_i32 = arith.constant 75 : i32
    %901 = arith.addi %0, %c75_i32 : i32
    %902 = arith.index_cast %901 : i32 to index
    %903 = memref.load %arg1[%902] : memref<128xi32, #tpu.memory_space<smem>>
    %904 = arith.index_cast %903 : i32 to index
    %c0_450 = arith.constant 0 : index
    %905 = vector.load %arg3[%904, %c0_450] : memref<32x16xf32, #tpu.memory_space<vmem>>, vector<1x16xf32>
    %c75 = arith.constant 75 : index
    %c0_451 = arith.constant 0 : index
    %906 = vector.load %arg5[%c75, %c0_451] : memref<128x16xf32, #tpu.memory_space<vmem>>, vector<1x16xf32>
    tpu.vector_store %arg5[%c75, %c0_451], %905 {strides = array<i32>} : memref<128x16xf32, #tpu.memory_space<vmem>>, vector<1x16xf32>,
    %c75_i32_452 = arith.constant 75 : i32
    %907 = arith.addi %0, %c75_i32_452 : i32
    %908 = arith.index_cast %907 : i32 to index
    %909 = memref.load %arg2[%908] : memref<128xi32, #tpu.memory_space<smem>>
    %910 = arith.index_cast %909 : i32 to index
    %c0_453 = arith.constant 0 : index
    %911 = vector.load %arg3[%910, %c0_453] : memref<32x16xf32, #tpu.memory_space<vmem>>, vector<1x16xf32>
    %c75_454 = arith.constant 75 : index
    %c0_455 = arith.constant 0 : index
    %912 = vector.load %arg6[%c75_454, %c0_455] : memref<128x16xf32, #tpu.memory_space<vmem>>, vector<1x16xf32>
    tpu.vector_store %arg6[%c75_454, %c0_455], %911 {strides = array<i32>} : memref<128x16xf32, #tpu.memory_space<vmem>>, vector<1x16xf32>,
    %c76_i32 = arith.constant 76 : i32
    %913 = arith.addi %0, %c76_i32 : i32
    %914 = arith.index_cast %913 : i32 to index
    %915 = memref.load %arg1[%914] : memref<128xi32, #tpu.memory_space<smem>>
    %916 = arith.index_cast %915 : i32 to index
    %c0_456 = arith.constant 0 : index
    %917 = vector.load %arg3[%916, %c0_456] : memref<32x16xf32, #tpu.memory_space<vmem>>, vector<1x16xf32>
    %c76 = arith.constant 76 : index
    %c0_457 = arith.constant 0 : index
    %918 = vector.load %arg5[%c76, %c0_457] : memref<128x16xf32, #tpu.memory_space<vmem>>, vector<1x16xf32>
    tpu.vector_store %arg5[%c76, %c0_457], %917 {strides = array<i32>} : memref<128x16xf32, #tpu.memory_space<vmem>>, vector<1x16xf32>,
    %c76_i32_458 = arith.constant 76 : i32
    %919 = arith.addi %0, %c76_i32_458 : i32
    %920 = arith.index_cast %919 : i32 to index
    %921 = memref.load %arg2[%920] : memref<128xi32, #tpu.memory_space<smem>>
    %922 = arith.index_cast %921 : i32 to index
    %c0_459 = arith.constant 0 : index
    %923 = vector.load %arg3[%922, %c0_459] : memref<32x16xf32, #tpu.memory_space<vmem>>, vector<1x16xf32>
    %c76_460 = arith.constant 76 : index
    %c0_461 = arith.constant 0 : index
    %924 = vector.load %arg6[%c76_460, %c0_461] : memref<128x16xf32, #tpu.memory_space<vmem>>, vector<1x16xf32>
    tpu.vector_store %arg6[%c76_460, %c0_461], %923 {strides = array<i32>} : memref<128x16xf32, #tpu.memory_space<vmem>>, vector<1x16xf32>,
    %c77_i32 = arith.constant 77 : i32
    %925 = arith.addi %0, %c77_i32 : i32
    %926 = arith.index_cast %925 : i32 to index
    %927 = memref.load %arg1[%926] : memref<128xi32, #tpu.memory_space<smem>>
    %928 = arith.index_cast %927 : i32 to index
    %c0_462 = arith.constant 0 : index
    %929 = vector.load %arg3[%928, %c0_462] : memref<32x16xf32, #tpu.memory_space<vmem>>, vector<1x16xf32>
    %c77 = arith.constant 77 : index
    %c0_463 = arith.constant 0 : index
    %930 = vector.load %arg5[%c77, %c0_463] : memref<128x16xf32, #tpu.memory_space<vmem>>, vector<1x16xf32>
    tpu.vector_store %arg5[%c77, %c0_463], %929 {strides = array<i32>} : memref<128x16xf32, #tpu.memory_space<vmem>>, vector<1x16xf32>,
    %c77_i32_464 = arith.constant 77 : i32
    %931 = arith.addi %0, %c77_i32_464 : i32
    %932 = arith.index_cast %931 : i32 to index
    %933 = memref.load %arg2[%932] : memref<128xi32, #tpu.memory_space<smem>>
    %934 = arith.index_cast %933 : i32 to index
    %c0_465 = arith.constant 0 : index
    %935 = vector.load %arg3[%934, %c0_465] : memref<32x16xf32, #tpu.memory_space<vmem>>, vector<1x16xf32>
    %c77_466 = arith.constant 77 : index
    %c0_467 = arith.constant 0 : index
    %936 = vector.load %arg6[%c77_466, %c0_467] : memref<128x16xf32, #tpu.memory_space<vmem>>, vector<1x16xf32>
    tpu.vector_store %arg6[%c77_466, %c0_467], %935 {strides = array<i32>} : memref<128x16xf32, #tpu.memory_space<vmem>>, vector<1x16xf32>,
    %c78_i32 = arith.constant 78 : i32
    %937 = arith.addi %0, %c78_i32 : i32
    %938 = arith.index_cast %937 : i32 to index
    %939 = memref.load %arg1[%938] : memref<128xi32, #tpu.memory_space<smem>>
    %940 = arith.index_cast %939 : i32 to index
    %c0_468 = arith.constant 0 : index
    %941 = vector.load %arg3[%940, %c0_468] : memref<32x16xf32, #tpu.memory_space<vmem>>, vector<1x16xf32>
    %c78 = arith.constant 78 : index
    %c0_469 = arith.constant 0 : index
    %942 = vector.load %arg5[%c78, %c0_469] : memref<128x16xf32, #tpu.memory_space<vmem>>, vector<1x16xf32>
    tpu.vector_store %arg5[%c78, %c0_469], %941 {strides = array<i32>} : memref<128x16xf32, #tpu.memory_space<vmem>>, vector<1x16xf32>,
    %c78_i32_470 = arith.constant 78 : i32
    %943 = arith.addi %0, %c78_i32_470 : i32
    %944 = arith.index_cast %943 : i32 to index
    %945 = memref.load %arg2[%944] : memref<128xi32, #tpu.memory_space<smem>>
    %946 = arith.index_cast %945 : i32 to index
    %c0_471 = arith.constant 0 : index
    %947 = vector.load %arg3[%946, %c0_471] : memref<32x16xf32, #tpu.memory_space<vmem>>, vector<1x16xf32>
    %c78_472 = arith.constant 78 : index
    %c0_473 = arith.constant 0 : index
    %948 = vector.load %arg6[%c78_472, %c0_473] : memref<128x16xf32, #tpu.memory_space<vmem>>, vector<1x16xf32>
    tpu.vector_store %arg6[%c78_472, %c0_473], %947 {strides = array<i32>} : memref<128x16xf32, #tpu.memory_space<vmem>>, vector<1x16xf32>,
    %c79_i32 = arith.constant 79 : i32
    %949 = arith.addi %0, %c79_i32 : i32
    %950 = arith.index_cast %949 : i32 to index
    %951 = memref.load %arg1[%950] : memref<128xi32, #tpu.memory_space<smem>>
    %952 = arith.index_cast %951 : i32 to index
    %c0_474 = arith.constant 0 : index
    %953 = vector.load %arg3[%952, %c0_474] : memref<32x16xf32, #tpu.memory_space<vmem>>, vector<1x16xf32>
    %c79 = arith.constant 79 : index
    %c0_475 = arith.constant 0 : index
    %954 = vector.load %arg5[%c79, %c0_475] : memref<128x16xf32, #tpu.memory_space<vmem>>, vector<1x16xf32>
    tpu.vector_store %arg5[%c79, %c0_475], %953 {strides = array<i32>} : memref<128x16xf32, #tpu.memory_space<vmem>>, vector<1x16xf32>,
    %c79_i32_476 = arith.constant 79 : i32
    %955 = arith.addi %0, %c79_i32_476 : i32
    %956 = arith.index_cast %955 : i32 to index
    %957 = memref.load %arg2[%956] : memref<128xi32, #tpu.memory_space<smem>>
    %958 = arith.index_cast %957 : i32 to index
    %c0_477 = arith.constant 0 : index
    %959 = vector.load %arg3[%958, %c0_477] : memref<32x16xf32, #tpu.memory_space<vmem>>, vector<1x16xf32>
    %c79_478 = arith.constant 79 : index
    %c0_479 = arith.constant 0 : index
    %960 = vector.load %arg6[%c79_478, %c0_479] : memref<128x16xf32, #tpu.memory_space<vmem>>, vector<1x16xf32>
    tpu.vector_store %arg6[%c79_478, %c0_479], %959 {strides = array<i32>} : memref<128x16xf32, #tpu.memory_space<vmem>>, vector<1x16xf32>,
    %c80_i32 = arith.constant 80 : i32
    %961 = arith.addi %0, %c80_i32 : i32
    %962 = arith.index_cast %961 : i32 to index
    %963 = memref.load %arg1[%962] : memref<128xi32, #tpu.memory_space<smem>>
    %964 = arith.index_cast %963 : i32 to index
    %c0_480 = arith.constant 0 : index
    %965 = vector.load %arg3[%964, %c0_480] : memref<32x16xf32, #tpu.memory_space<vmem>>, vector<1x16xf32>
    %c80 = arith.constant 80 : index
    %c0_481 = arith.constant 0 : index
    %966 = vector.load %arg5[%c80, %c0_481] : memref<128x16xf32, #tpu.memory_space<vmem>>, vector<1x16xf32>
    tpu.vector_store %arg5[%c80, %c0_481], %965 {strides = array<i32>} : memref<128x16xf32, #tpu.memory_space<vmem>>, vector<1x16xf32>,
    %c80_i32_482 = arith.constant 80 : i32
    %967 = arith.addi %0, %c80_i32_482 : i32
    %968 = arith.index_cast %967 : i32 to index
    %969 = memref.load %arg2[%968] : memref<128xi32, #tpu.memory_space<smem>>
    %970 = arith.index_cast %969 : i32 to index
    %c0_483 = arith.constant 0 : index
    %971 = vector.load %arg3[%970, %c0_483] : memref<32x16xf32, #tpu.memory_space<vmem>>, vector<1x16xf32>
    %c80_484 = arith.constant 80 : index
    %c0_485 = arith.constant 0 : index
    %972 = vector.load %arg6[%c80_484, %c0_485] : memref<128x16xf32, #tpu.memory_space<vmem>>, vector<1x16xf32>
    tpu.vector_store %arg6[%c80_484, %c0_485], %971 {strides = array<i32>} : memref<128x16xf32, #tpu.memory_space<vmem>>, vector<1x16xf32>,
    %c81_i32 = arith.constant 81 : i32
    %973 = arith.addi %0, %c81_i32 : i32
    %974 = arith.index_cast %973 : i32 to index
    %975 = memref.load %arg1[%974] : memref<128xi32, #tpu.memory_space<smem>>
    %976 = arith.index_cast %975 : i32 to index
    %c0_486 = arith.constant 0 : index
    %977 = vector.load %arg3[%976, %c0_486] : memref<32x16xf32, #tpu.memory_space<vmem>>, vector<1x16xf32>
    %c81 = arith.constant 81 : index
    %c0_487 = arith.constant 0 : index
    %978 = vector.load %arg5[%c81, %c0_487] : memref<128x16xf32, #tpu.memory_space<vmem>>, vector<1x16xf32>
    tpu.vector_store %arg5[%c81, %c0_487], %977 {strides = array<i32>} : memref<128x16xf32, #tpu.memory_space<vmem>>, vector<1x16xf32>,
    %c81_i32_488 = arith.constant 81 : i32
    %979 = arith.addi %0, %c81_i32_488 : i32
    %980 = arith.index_cast %979 : i32 to index
    %981 = memref.load %arg2[%980] : memref<128xi32, #tpu.memory_space<smem>>
    %982 = arith.index_cast %981 : i32 to index
    %c0_489 = arith.constant 0 : index
    %983 = vector.load %arg3[%982, %c0_489] : memref<32x16xf32, #tpu.memory_space<vmem>>, vector<1x16xf32>
    %c81_490 = arith.constant 81 : index
    %c0_491 = arith.constant 0 : index
    %984 = vector.load %arg6[%c81_490, %c0_491] : memref<128x16xf32, #tpu.memory_space<vmem>>, vector<1x16xf32>
    tpu.vector_store %arg6[%c81_490, %c0_491], %983 {strides = array<i32>} : memref<128x16xf32, #tpu.memory_space<vmem>>, vector<1x16xf32>,
    %c82_i32 = arith.constant 82 : i32
    %985 = arith.addi %0, %c82_i32 : i32
    %986 = arith.index_cast %985 : i32 to index
    %987 = memref.load %arg1[%986] : memref<128xi32, #tpu.memory_space<smem>>
    %988 = arith.index_cast %987 : i32 to index
    %c0_492 = arith.constant 0 : index
    %989 = vector.load %arg3[%988, %c0_492] : memref<32x16xf32, #tpu.memory_space<vmem>>, vector<1x16xf32>
    %c82 = arith.constant 82 : index
    %c0_493 = arith.constant 0 : index
    %990 = vector.load %arg5[%c82, %c0_493] : memref<128x16xf32, #tpu.memory_space<vmem>>, vector<1x16xf32>
    tpu.vector_store %arg5[%c82, %c0_493], %989 {strides = array<i32>} : memref<128x16xf32, #tpu.memory_space<vmem>>, vector<1x16xf32>,
    %c82_i32_494 = arith.constant 82 : i32
    %991 = arith.addi %0, %c82_i32_494 : i32
    %992 = arith.index_cast %991 : i32 to index
    %993 = memref.load %arg2[%992] : memref<128xi32, #tpu.memory_space<smem>>
    %994 = arith.index_cast %993 : i32 to index
    %c0_495 = arith.constant 0 : index
    %995 = vector.load %arg3[%994, %c0_495] : memref<32x16xf32, #tpu.memory_space<vmem>>, vector<1x16xf32>
    %c82_496 = arith.constant 82 : index
    %c0_497 = arith.constant 0 : index
    %996 = vector.load %arg6[%c82_496, %c0_497] : memref<128x16xf32, #tpu.memory_space<vmem>>, vector<1x16xf32>
    tpu.vector_store %arg6[%c82_496, %c0_497], %995 {strides = array<i32>} : memref<128x16xf32, #tpu.memory_space<vmem>>, vector<1x16xf32>,
    %c83_i32 = arith.constant 83 : i32
    %997 = arith.addi %0, %c83_i32 : i32
    %998 = arith.index_cast %997 : i32 to index
    %999 = memref.load %arg1[%998] : memref<128xi32, #tpu.memory_space<smem>>
    %1000 = arith.index_cast %999 : i32 to index
    %c0_498 = arith.constant 0 : index
    %1001 = vector.load %arg3[%1000, %c0_498] : memref<32x16xf32, #tpu.memory_space<vmem>>, vector<1x16xf32>
    %c83 = arith.constant 83 : index
    %c0_499 = arith.constant 0 : index
    %1002 = vector.load %arg5[%c83, %c0_499] : memref<128x16xf32, #tpu.memory_space<vmem>>, vector<1x16xf32>
    tpu.vector_store %arg5[%c83, %c0_499], %1001 {strides = array<i32>} : memref<128x16xf32, #tpu.memory_space<vmem>>, vector<1x16xf32>,
    %c83_i32_500 = arith.constant 83 : i32
    %1003 = arith.addi %0, %c83_i32_500 : i32
    %1004 = arith.index_cast %1003 : i32 to index
    %1005 = memref.load %arg2[%1004] : memref<128xi32, #tpu.memory_space<smem>>
    %1006 = arith.index_cast %1005 : i32 to index
    %c0_501 = arith.constant 0 : index
    %1007 = vector.load %arg3[%1006, %c0_501] : memref<32x16xf32, #tpu.memory_space<vmem>>, vector<1x16xf32>
    %c83_502 = arith.constant 83 : index
    %c0_503 = arith.constant 0 : index
    %1008 = vector.load %arg6[%c83_502, %c0_503] : memref<128x16xf32, #tpu.memory_space<vmem>>, vector<1x16xf32>
    tpu.vector_store %arg6[%c83_502, %c0_503], %1007 {strides = array<i32>} : memref<128x16xf32, #tpu.memory_space<vmem>>, vector<1x16xf32>,
    %c84_i32 = arith.constant 84 : i32
    %1009 = arith.addi %0, %c84_i32 : i32
    %1010 = arith.index_cast %1009 : i32 to index
    %1011 = memref.load %arg1[%1010] : memref<128xi32, #tpu.memory_space<smem>>
    %1012 = arith.index_cast %1011 : i32 to index
    %c0_504 = arith.constant 0 : index
    %1013 = vector.load %arg3[%1012, %c0_504] : memref<32x16xf32, #tpu.memory_space<vmem>>, vector<1x16xf32>
    %c84 = arith.constant 84 : index
    %c0_505 = arith.constant 0 : index
    %1014 = vector.load %arg5[%c84, %c0_505] : memref<128x16xf32, #tpu.memory_space<vmem>>, vector<1x16xf32>
    tpu.vector_store %arg5[%c84, %c0_505], %1013 {strides = array<i32>} : memref<128x16xf32, #tpu.memory_space<vmem>>, vector<1x16xf32>,
    %c84_i32_506 = arith.constant 84 : i32
    %1015 = arith.addi %0, %c84_i32_506 : i32
    %1016 = arith.index_cast %1015 : i32 to index
    %1017 = memref.load %arg2[%1016] : memref<128xi32, #tpu.memory_space<smem>>
    %1018 = arith.index_cast %1017 : i32 to index
    %c0_507 = arith.constant 0 : index
    %1019 = vector.load %arg3[%1018, %c0_507] : memref<32x16xf32, #tpu.memory_space<vmem>>, vector<1x16xf32>
    %c84_508 = arith.constant 84 : index
    %c0_509 = arith.constant 0 : index
    %1020 = vector.load %arg6[%c84_508, %c0_509] : memref<128x16xf32, #tpu.memory_space<vmem>>, vector<1x16xf32>
    tpu.vector_store %arg6[%c84_508, %c0_509], %1019 {strides = array<i32>} : memref<128x16xf32, #tpu.memory_space<vmem>>, vector<1x16xf32>,
    %c85_i32 = arith.constant 85 : i32
    %1021 = arith.addi %0, %c85_i32 : i32
    %1022 = arith.index_cast %1021 : i32 to index
    %1023 = memref.load %arg1[%1022] : memref<128xi32, #tpu.memory_space<smem>>
    %1024 = arith.index_cast %1023 : i32 to index
    %c0_510 = arith.constant 0 : index
    %1025 = vector.load %arg3[%1024, %c0_510] : memref<32x16xf32, #tpu.memory_space<vmem>>, vector<1x16xf32>
    %c85 = arith.constant 85 : index
    %c0_511 = arith.constant 0 : index
    %1026 = vector.load %arg5[%c85, %c0_511] : memref<128x16xf32, #tpu.memory_space<vmem>>, vector<1x16xf32>
    tpu.vector_store %arg5[%c85, %c0_511], %1025 {strides = array<i32>} : memref<128x16xf32, #tpu.memory_space<vmem>>, vector<1x16xf32>,
    %c85_i32_512 = arith.constant 85 : i32
    %1027 = arith.addi %0, %c85_i32_512 : i32
    %1028 = arith.index_cast %1027 : i32 to index
    %1029 = memref.load %arg2[%1028] : memref<128xi32, #tpu.memory_space<smem>>
    %1030 = arith.index_cast %1029 : i32 to index
    %c0_513 = arith.constant 0 : index
    %1031 = vector.load %arg3[%1030, %c0_513] : memref<32x16xf32, #tpu.memory_space<vmem>>, vector<1x16xf32>
    %c85_514 = arith.constant 85 : index
    %c0_515 = arith.constant 0 : index
    %1032 = vector.load %arg6[%c85_514, %c0_515] : memref<128x16xf32, #tpu.memory_space<vmem>>, vector<1x16xf32>
    tpu.vector_store %arg6[%c85_514, %c0_515], %1031 {strides = array<i32>} : memref<128x16xf32, #tpu.memory_space<vmem>>, vector<1x16xf32>,
    %c86_i32 = arith.constant 86 : i32
    %1033 = arith.addi %0, %c86_i32 : i32
    %1034 = arith.index_cast %1033 : i32 to index
    %1035 = memref.load %arg1[%1034] : memref<128xi32, #tpu.memory_space<smem>>
    %1036 = arith.index_cast %1035 : i32 to index
    %c0_516 = arith.constant 0 : index
    %1037 = vector.load %arg3[%1036, %c0_516] : memref<32x16xf32, #tpu.memory_space<vmem>>, vector<1x16xf32>
    %c86 = arith.constant 86 : index
    %c0_517 = arith.constant 0 : index
    %1038 = vector.load %arg5[%c86, %c0_517] : memref<128x16xf32, #tpu.memory_space<vmem>>, vector<1x16xf32>
    tpu.vector_store %arg5[%c86, %c0_517], %1037 {strides = array<i32>} : memref<128x16xf32, #tpu.memory_space<vmem>>, vector<1x16xf32>,
    %c86_i32_518 = arith.constant 86 : i32
    %1039 = arith.addi %0, %c86_i32_518 : i32
    %1040 = arith.index_cast %1039 : i32 to index
    %1041 = memref.load %arg2[%1040] : memref<128xi32, #tpu.memory_space<smem>>
    %1042 = arith.index_cast %1041 : i32 to index
    %c0_519 = arith.constant 0 : index
    %1043 = vector.load %arg3[%1042, %c0_519] : memref<32x16xf32, #tpu.memory_space<vmem>>, vector<1x16xf32>
    %c86_520 = arith.constant 86 : index
    %c0_521 = arith.constant 0 : index
    %1044 = vector.load %arg6[%c86_520, %c0_521] : memref<128x16xf32, #tpu.memory_space<vmem>>, vector<1x16xf32>
    tpu.vector_store %arg6[%c86_520, %c0_521], %1043 {strides = array<i32>} : memref<128x16xf32, #tpu.memory_space<vmem>>, vector<1x16xf32>,
    %c87_i32 = arith.constant 87 : i32
    %1045 = arith.addi %0, %c87_i32 : i32
    %1046 = arith.index_cast %1045 : i32 to index
    %1047 = memref.load %arg1[%1046] : memref<128xi32, #tpu.memory_space<smem>>
    %1048 = arith.index_cast %1047 : i32 to index
    %c0_522 = arith.constant 0 : index
    %1049 = vector.load %arg3[%1048, %c0_522] : memref<32x16xf32, #tpu.memory_space<vmem>>, vector<1x16xf32>
    %c87 = arith.constant 87 : index
    %c0_523 = arith.constant 0 : index
    %1050 = vector.load %arg5[%c87, %c0_523] : memref<128x16xf32, #tpu.memory_space<vmem>>, vector<1x16xf32>
    tpu.vector_store %arg5[%c87, %c0_523], %1049 {strides = array<i32>} : memref<128x16xf32, #tpu.memory_space<vmem>>, vector<1x16xf32>,
    %c87_i32_524 = arith.constant 87 : i32
    %1051 = arith.addi %0, %c87_i32_524 : i32
    %1052 = arith.index_cast %1051 : i32 to index
    %1053 = memref.load %arg2[%1052] : memref<128xi32, #tpu.memory_space<smem>>
    %1054 = arith.index_cast %1053 : i32 to index
    %c0_525 = arith.constant 0 : index
    %1055 = vector.load %arg3[%1054, %c0_525] : memref<32x16xf32, #tpu.memory_space<vmem>>, vector<1x16xf32>
    %c87_526 = arith.constant 87 : index
    %c0_527 = arith.constant 0 : index
    %1056 = vector.load %arg6[%c87_526, %c0_527] : memref<128x16xf32, #tpu.memory_space<vmem>>, vector<1x16xf32>
    tpu.vector_store %arg6[%c87_526, %c0_527], %1055 {strides = array<i32>} : memref<128x16xf32, #tpu.memory_space<vmem>>, vector<1x16xf32>,
    %c88_i32 = arith.constant 88 : i32
    %1057 = arith.addi %0, %c88_i32 : i32
    %1058 = arith.index_cast %1057 : i32 to index
    %1059 = memref.load %arg1[%1058] : memref<128xi32, #tpu.memory_space<smem>>
    %1060 = arith.index_cast %1059 : i32 to index
    %c0_528 = arith.constant 0 : index
    %1061 = vector.load %arg3[%1060, %c0_528] : memref<32x16xf32, #tpu.memory_space<vmem>>, vector<1x16xf32>
    %c88 = arith.constant 88 : index
    %c0_529 = arith.constant 0 : index
    %1062 = vector.load %arg5[%c88, %c0_529] : memref<128x16xf32, #tpu.memory_space<vmem>>, vector<1x16xf32>
    tpu.vector_store %arg5[%c88, %c0_529], %1061 {strides = array<i32>} : memref<128x16xf32, #tpu.memory_space<vmem>>, vector<1x16xf32>,
    %c88_i32_530 = arith.constant 88 : i32
    %1063 = arith.addi %0, %c88_i32_530 : i32
    %1064 = arith.index_cast %1063 : i32 to index
    %1065 = memref.load %arg2[%1064] : memref<128xi32, #tpu.memory_space<smem>>
    %1066 = arith.index_cast %1065 : i32 to index
    %c0_531 = arith.constant 0 : index
    %1067 = vector.load %arg3[%1066, %c0_531] : memref<32x16xf32, #tpu.memory_space<vmem>>, vector<1x16xf32>
    %c88_532 = arith.constant 88 : index
    %c0_533 = arith.constant 0 : index
    %1068 = vector.load %arg6[%c88_532, %c0_533] : memref<128x16xf32, #tpu.memory_space<vmem>>, vector<1x16xf32>
    tpu.vector_store %arg6[%c88_532, %c0_533], %1067 {strides = array<i32>} : memref<128x16xf32, #tpu.memory_space<vmem>>, vector<1x16xf32>,
    %c89_i32 = arith.constant 89 : i32
    %1069 = arith.addi %0, %c89_i32 : i32
    %1070 = arith.index_cast %1069 : i32 to index
    %1071 = memref.load %arg1[%1070] : memref<128xi32, #tpu.memory_space<smem>>
    %1072 = arith.index_cast %1071 : i32 to index
    %c0_534 = arith.constant 0 : index
    %1073 = vector.load %arg3[%1072, %c0_534] : memref<32x16xf32, #tpu.memory_space<vmem>>, vector<1x16xf32>
    %c89 = arith.constant 89 : index
    %c0_535 = arith.constant 0 : index
    %1074 = vector.load %arg5[%c89, %c0_535] : memref<128x16xf32, #tpu.memory_space<vmem>>, vector<1x16xf32>
    tpu.vector_store %arg5[%c89, %c0_535], %1073 {strides = array<i32>} : memref<128x16xf32, #tpu.memory_space<vmem>>, vector<1x16xf32>,
    %c89_i32_536 = arith.constant 89 : i32
    %1075 = arith.addi %0, %c89_i32_536 : i32
    %1076 = arith.index_cast %1075 : i32 to index
    %1077 = memref.load %arg2[%1076] : memref<128xi32, #tpu.memory_space<smem>>
    %1078 = arith.index_cast %1077 : i32 to index
    %c0_537 = arith.constant 0 : index
    %1079 = vector.load %arg3[%1078, %c0_537] : memref<32x16xf32, #tpu.memory_space<vmem>>, vector<1x16xf32>
    %c89_538 = arith.constant 89 : index
    %c0_539 = arith.constant 0 : index
    %1080 = vector.load %arg6[%c89_538, %c0_539] : memref<128x16xf32, #tpu.memory_space<vmem>>, vector<1x16xf32>
    tpu.vector_store %arg6[%c89_538, %c0_539], %1079 {strides = array<i32>} : memref<128x16xf32, #tpu.memory_space<vmem>>, vector<1x16xf32>,
    %c90_i32 = arith.constant 90 : i32
    %1081 = arith.addi %0, %c90_i32 : i32
    %1082 = arith.index_cast %1081 : i32 to index
    %1083 = memref.load %arg1[%1082] : memref<128xi32, #tpu.memory_space<smem>>
    %1084 = arith.index_cast %1083 : i32 to index
    %c0_540 = arith.constant 0 : index
    %1085 = vector.load %arg3[%1084, %c0_540] : memref<32x16xf32, #tpu.memory_space<vmem>>, vector<1x16xf32>
    %c90 = arith.constant 90 : index
    %c0_541 = arith.constant 0 : index
    %1086 = vector.load %arg5[%c90, %c0_541] : memref<128x16xf32, #tpu.memory_space<vmem>>, vector<1x16xf32>
    tpu.vector_store %arg5[%c90, %c0_541], %1085 {strides = array<i32>} : memref<128x16xf32, #tpu.memory_space<vmem>>, vector<1x16xf32>,
    %c90_i32_542 = arith.constant 90 : i32
    %1087 = arith.addi %0, %c90_i32_542 : i32
    %1088 = arith.index_cast %1087 : i32 to index
    %1089 = memref.load %arg2[%1088] : memref<128xi32, #tpu.memory_space<smem>>
    %1090 = arith.index_cast %1089 : i32 to index
    %c0_543 = arith.constant 0 : index
    %1091 = vector.load %arg3[%1090, %c0_543] : memref<32x16xf32, #tpu.memory_space<vmem>>, vector<1x16xf32>
    %c90_544 = arith.constant 90 : index
    %c0_545 = arith.constant 0 : index
    %1092 = vector.load %arg6[%c90_544, %c0_545] : memref<128x16xf32, #tpu.memory_space<vmem>>, vector<1x16xf32>
    tpu.vector_store %arg6[%c90_544, %c0_545], %1091 {strides = array<i32>} : memref<128x16xf32, #tpu.memory_space<vmem>>, vector<1x16xf32>,
    %c91_i32 = arith.constant 91 : i32
    %1093 = arith.addi %0, %c91_i32 : i32
    %1094 = arith.index_cast %1093 : i32 to index
    %1095 = memref.load %arg1[%1094] : memref<128xi32, #tpu.memory_space<smem>>
    %1096 = arith.index_cast %1095 : i32 to index
    %c0_546 = arith.constant 0 : index
    %1097 = vector.load %arg3[%1096, %c0_546] : memref<32x16xf32, #tpu.memory_space<vmem>>, vector<1x16xf32>
    %c91 = arith.constant 91 : index
    %c0_547 = arith.constant 0 : index
    %1098 = vector.load %arg5[%c91, %c0_547] : memref<128x16xf32, #tpu.memory_space<vmem>>, vector<1x16xf32>
    tpu.vector_store %arg5[%c91, %c0_547], %1097 {strides = array<i32>} : memref<128x16xf32, #tpu.memory_space<vmem>>, vector<1x16xf32>,
    %c91_i32_548 = arith.constant 91 : i32
    %1099 = arith.addi %0, %c91_i32_548 : i32
    %1100 = arith.index_cast %1099 : i32 to index
    %1101 = memref.load %arg2[%1100] : memref<128xi32, #tpu.memory_space<smem>>
    %1102 = arith.index_cast %1101 : i32 to index
    %c0_549 = arith.constant 0 : index
    %1103 = vector.load %arg3[%1102, %c0_549] : memref<32x16xf32, #tpu.memory_space<vmem>>, vector<1x16xf32>
    %c91_550 = arith.constant 91 : index
    %c0_551 = arith.constant 0 : index
    %1104 = vector.load %arg6[%c91_550, %c0_551] : memref<128x16xf32, #tpu.memory_space<vmem>>, vector<1x16xf32>
    tpu.vector_store %arg6[%c91_550, %c0_551], %1103 {strides = array<i32>} : memref<128x16xf32, #tpu.memory_space<vmem>>, vector<1x16xf32>,
    %c92_i32 = arith.constant 92 : i32
    %1105 = arith.addi %0, %c92_i32 : i32
    %1106 = arith.index_cast %1105 : i32 to index
    %1107 = memref.load %arg1[%1106] : memref<128xi32, #tpu.memory_space<smem>>
    %1108 = arith.index_cast %1107 : i32 to index
    %c0_552 = arith.constant 0 : index
    %1109 = vector.load %arg3[%1108, %c0_552] : memref<32x16xf32, #tpu.memory_space<vmem>>, vector<1x16xf32>
    %c92 = arith.constant 92 : index
    %c0_553 = arith.constant 0 : index
    %1110 = vector.load %arg5[%c92, %c0_553] : memref<128x16xf32, #tpu.memory_space<vmem>>, vector<1x16xf32>
    tpu.vector_store %arg5[%c92, %c0_553], %1109 {strides = array<i32>} : memref<128x16xf32, #tpu.memory_space<vmem>>, vector<1x16xf32>,
    %c92_i32_554 = arith.constant 92 : i32
    %1111 = arith.addi %0, %c92_i32_554 : i32
    %1112 = arith.index_cast %1111 : i32 to index
    %1113 = memref.load %arg2[%1112] : memref<128xi32, #tpu.memory_space<smem>>
    %1114 = arith.index_cast %1113 : i32 to index
    %c0_555 = arith.constant 0 : index
    %1115 = vector.load %arg3[%1114, %c0_555] : memref<32x16xf32, #tpu.memory_space<vmem>>, vector<1x16xf32>
    %c92_556 = arith.constant 92 : index
    %c0_557 = arith.constant 0 : index
    %1116 = vector.load %arg6[%c92_556, %c0_557] : memref<128x16xf32, #tpu.memory_space<vmem>>, vector<1x16xf32>
    tpu.vector_store %arg6[%c92_556, %c0_557], %1115 {strides = array<i32>} : memref<128x16xf32, #tpu.memory_space<vmem>>, vector<1x16xf32>,
    %c93_i32 = arith.constant 93 : i32
    %1117 = arith.addi %0, %c93_i32 : i32
    %1118 = arith.index_cast %1117 : i32 to index
    %1119 = memref.load %arg1[%1118] : memref<128xi32, #tpu.memory_space<smem>>
    %1120 = arith.index_cast %1119 : i32 to index
    %c0_558 = arith.constant 0 : index
    %1121 = vector.load %arg3[%1120, %c0_558] : memref<32x16xf32, #tpu.memory_space<vmem>>, vector<1x16xf32>
    %c93 = arith.constant 93 : index
    %c0_559 = arith.constant 0 : index
    %1122 = vector.load %arg5[%c93, %c0_559] : memref<128x16xf32, #tpu.memory_space<vmem>>, vector<1x16xf32>
    tpu.vector_store %arg5[%c93, %c0_559], %1121 {strides = array<i32>} : memref<128x16xf32, #tpu.memory_space<vmem>>, vector<1x16xf32>,
    %c93_i32_560 = arith.constant 93 : i32
    %1123 = arith.addi %0, %c93_i32_560 : i32
    %1124 = arith.index_cast %1123 : i32 to index
    %1125 = memref.load %arg2[%1124] : memref<128xi32, #tpu.memory_space<smem>>
    %1126 = arith.index_cast %1125 : i32 to index
    %c0_561 = arith.constant 0 : index
    %1127 = vector.load %arg3[%1126, %c0_561] : memref<32x16xf32, #tpu.memory_space<vmem>>, vector<1x16xf32>
    %c93_562 = arith.constant 93 : index
    %c0_563 = arith.constant 0 : index
    %1128 = vector.load %arg6[%c93_562, %c0_563] : memref<128x16xf32, #tpu.memory_space<vmem>>, vector<1x16xf32>
    tpu.vector_store %arg6[%c93_562, %c0_563], %1127 {strides = array<i32>} : memref<128x16xf32, #tpu.memory_space<vmem>>, vector<1x16xf32>,
    %c94_i32 = arith.constant 94 : i32
    %1129 = arith.addi %0, %c94_i32 : i32
    %1130 = arith.index_cast %1129 : i32 to index
    %1131 = memref.load %arg1[%1130] : memref<128xi32, #tpu.memory_space<smem>>
    %1132 = arith.index_cast %1131 : i32 to index
    %c0_564 = arith.constant 0 : index
    %1133 = vector.load %arg3[%1132, %c0_564] : memref<32x16xf32, #tpu.memory_space<vmem>>, vector<1x16xf32>
    %c94 = arith.constant 94 : index
    %c0_565 = arith.constant 0 : index
    %1134 = vector.load %arg5[%c94, %c0_565] : memref<128x16xf32, #tpu.memory_space<vmem>>, vector<1x16xf32>
    tpu.vector_store %arg5[%c94, %c0_565], %1133 {strides = array<i32>} : memref<128x16xf32, #tpu.memory_space<vmem>>, vector<1x16xf32>,
    %c94_i32_566 = arith.constant 94 : i32
    %1135 = arith.addi %0, %c94_i32_566 : i32
    %1136 = arith.index_cast %1135 : i32 to index
    %1137 = memref.load %arg2[%1136] : memref<128xi32, #tpu.memory_space<smem>>
    %1138 = arith.index_cast %1137 : i32 to index
    %c0_567 = arith.constant 0 : index
    %1139 = vector.load %arg3[%1138, %c0_567] : memref<32x16xf32, #tpu.memory_space<vmem>>, vector<1x16xf32>
    %c94_568 = arith.constant 94 : index
    %c0_569 = arith.constant 0 : index
    %1140 = vector.load %arg6[%c94_568, %c0_569] : memref<128x16xf32, #tpu.memory_space<vmem>>, vector<1x16xf32>
    tpu.vector_store %arg6[%c94_568, %c0_569], %1139 {strides = array<i32>} : memref<128x16xf32, #tpu.memory_space<vmem>>, vector<1x16xf32>,
    %c95_i32 = arith.constant 95 : i32
    %1141 = arith.addi %0, %c95_i32 : i32
    %1142 = arith.index_cast %1141 : i32 to index
    %1143 = memref.load %arg1[%1142] : memref<128xi32, #tpu.memory_space<smem>>
    %1144 = arith.index_cast %1143 : i32 to index
    %c0_570 = arith.constant 0 : index
    %1145 = vector.load %arg3[%1144, %c0_570] : memref<32x16xf32, #tpu.memory_space<vmem>>, vector<1x16xf32>
    %c95 = arith.constant 95 : index
    %c0_571 = arith.constant 0 : index
    %1146 = vector.load %arg5[%c95, %c0_571] : memref<128x16xf32, #tpu.memory_space<vmem>>, vector<1x16xf32>
    tpu.vector_store %arg5[%c95, %c0_571], %1145 {strides = array<i32>} : memref<128x16xf32, #tpu.memory_space<vmem>>, vector<1x16xf32>,
    %c95_i32_572 = arith.constant 95 : i32
    %1147 = arith.addi %0, %c95_i32_572 : i32
    %1148 = arith.index_cast %1147 : i32 to index
    %1149 = memref.load %arg2[%1148] : memref<128xi32, #tpu.memory_space<smem>>
    %1150 = arith.index_cast %1149 : i32 to index
    %c0_573 = arith.constant 0 : index
    %1151 = vector.load %arg3[%1150, %c0_573] : memref<32x16xf32, #tpu.memory_space<vmem>>, vector<1x16xf32>
    %c95_574 = arith.constant 95 : index
    %c0_575 = arith.constant 0 : index
    %1152 = vector.load %arg6[%c95_574, %c0_575] : memref<128x16xf32, #tpu.memory_space<vmem>>, vector<1x16xf32>
    tpu.vector_store %arg6[%c95_574, %c0_575], %1151 {strides = array<i32>} : memref<128x16xf32, #tpu.memory_space<vmem>>, vector<1x16xf32>,
    %c96_i32 = arith.constant 96 : i32
    %1153 = arith.addi %0, %c96_i32 : i32
    %1154 = arith.index_cast %1153 : i32 to index
    %1155 = memref.load %arg1[%1154] : memref<128xi32, #tpu.memory_space<smem>>
    %1156 = arith.index_cast %1155 : i32 to index
    %c0_576 = arith.constant 0 : index
    %1157 = vector.load %arg3[%1156, %c0_576] : memref<32x16xf32, #tpu.memory_space<vmem>>, vector<1x16xf32>
    %c96 = arith.constant 96 : index
    %c0_577 = arith.constant 0 : index
    %1158 = vector.load %arg5[%c96, %c0_577] : memref<128x16xf32, #tpu.memory_space<vmem>>, vector<1x16xf32>
    tpu.vector_store %arg5[%c96, %c0_577], %1157 {strides = array<i32>} : memref<128x16xf32, #tpu.memory_space<vmem>>, vector<1x16xf32>,
    %c96_i32_578 = arith.constant 96 : i32
    %1159 = arith.addi %0, %c96_i32_578 : i32
    %1160 = arith.index_cast %1159 : i32 to index
    %1161 = memref.load %arg2[%1160] : memref<128xi32, #tpu.memory_space<smem>>
    %1162 = arith.index_cast %1161 : i32 to index
    %c0_579 = arith.constant 0 : index
    %1163 = vector.load %arg3[%1162, %c0_579] : memref<32x16xf32, #tpu.memory_space<vmem>>, vector<1x16xf32>
    %c96_580 = arith.constant 96 : index
    %c0_581 = arith.constant 0 : index
    %1164 = vector.load %arg6[%c96_580, %c0_581] : memref<128x16xf32, #tpu.memory_space<vmem>>, vector<1x16xf32>
    tpu.vector_store %arg6[%c96_580, %c0_581], %1163 {strides = array<i32>} : memref<128x16xf32, #tpu.memory_space<vmem>>, vector<1x16xf32>,
    %c97_i32 = arith.constant 97 : i32
    %1165 = arith.addi %0, %c97_i32 : i32
    %1166 = arith.index_cast %1165 : i32 to index
    %1167 = memref.load %arg1[%1166] : memref<128xi32, #tpu.memory_space<smem>>
    %1168 = arith.index_cast %1167 : i32 to index
    %c0_582 = arith.constant 0 : index
    %1169 = vector.load %arg3[%1168, %c0_582] : memref<32x16xf32, #tpu.memory_space<vmem>>, vector<1x16xf32>
    %c97 = arith.constant 97 : index
    %c0_583 = arith.constant 0 : index
    %1170 = vector.load %arg5[%c97, %c0_583] : memref<128x16xf32, #tpu.memory_space<vmem>>, vector<1x16xf32>
    tpu.vector_store %arg5[%c97, %c0_583], %1169 {strides = array<i32>} : memref<128x16xf32, #tpu.memory_space<vmem>>, vector<1x16xf32>,
    %c97_i32_584 = arith.constant 97 : i32
    %1171 = arith.addi %0, %c97_i32_584 : i32
    %1172 = arith.index_cast %1171 : i32 to index
    %1173 = memref.load %arg2[%1172] : memref<128xi32, #tpu.memory_space<smem>>
    %1174 = arith.index_cast %1173 : i32 to index
    %c0_585 = arith.constant 0 : index
    %1175 = vector.load %arg3[%1174, %c0_585] : memref<32x16xf32, #tpu.memory_space<vmem>>, vector<1x16xf32>
    %c97_586 = arith.constant 97 : index
    %c0_587 = arith.constant 0 : index
    %1176 = vector.load %arg6[%c97_586, %c0_587] : memref<128x16xf32, #tpu.memory_space<vmem>>, vector<1x16xf32>
    tpu.vector_store %arg6[%c97_586, %c0_587], %1175 {strides = array<i32>} : memref<128x16xf32, #tpu.memory_space<vmem>>, vector<1x16xf32>,
    %c98_i32 = arith.constant 98 : i32
    %1177 = arith.addi %0, %c98_i32 : i32
    %1178 = arith.index_cast %1177 : i32 to index
    %1179 = memref.load %arg1[%1178] : memref<128xi32, #tpu.memory_space<smem>>
    %1180 = arith.index_cast %1179 : i32 to index
    %c0_588 = arith.constant 0 : index
    %1181 = vector.load %arg3[%1180, %c0_588] : memref<32x16xf32, #tpu.memory_space<vmem>>, vector<1x16xf32>
    %c98 = arith.constant 98 : index
    %c0_589 = arith.constant 0 : index
    %1182 = vector.load %arg5[%c98, %c0_589] : memref<128x16xf32, #tpu.memory_space<vmem>>, vector<1x16xf32>
    tpu.vector_store %arg5[%c98, %c0_589], %1181 {strides = array<i32>} : memref<128x16xf32, #tpu.memory_space<vmem>>, vector<1x16xf32>,
    %c98_i32_590 = arith.constant 98 : i32
    %1183 = arith.addi %0, %c98_i32_590 : i32
    %1184 = arith.index_cast %1183 : i32 to index
    %1185 = memref.load %arg2[%1184] : memref<128xi32, #tpu.memory_space<smem>>
    %1186 = arith.index_cast %1185 : i32 to index
    %c0_591 = arith.constant 0 : index
    %1187 = vector.load %arg3[%1186, %c0_591] : memref<32x16xf32, #tpu.memory_space<vmem>>, vector<1x16xf32>
    %c98_592 = arith.constant 98 : index
    %c0_593 = arith.constant 0 : index
    %1188 = vector.load %arg6[%c98_592, %c0_593] : memref<128x16xf32, #tpu.memory_space<vmem>>, vector<1x16xf32>
    tpu.vector_store %arg6[%c98_592, %c0_593], %1187 {strides = array<i32>} : memref<128x16xf32, #tpu.memory_space<vmem>>, vector<1x16xf32>,
    %c99_i32 = arith.constant 99 : i32
    %1189 = arith.addi %0, %c99_i32 : i32
    %1190 = arith.index_cast %1189 : i32 to index
    %1191 = memref.load %arg1[%1190] : memref<128xi32, #tpu.memory_space<smem>>
    %1192 = arith.index_cast %1191 : i32 to index
    %c0_594 = arith.constant 0 : index
    %1193 = vector.load %arg3[%1192, %c0_594] : memref<32x16xf32, #tpu.memory_space<vmem>>, vector<1x16xf32>
    %c99 = arith.constant 99 : index
    %c0_595 = arith.constant 0 : index
    %1194 = vector.load %arg5[%c99, %c0_595] : memref<128x16xf32, #tpu.memory_space<vmem>>, vector<1x16xf32>
    tpu.vector_store %arg5[%c99, %c0_595], %1193 {strides = array<i32>} : memref<128x16xf32, #tpu.memory_space<vmem>>, vector<1x16xf32>,
    %c99_i32_596 = arith.constant 99 : i32
    %1195 = arith.addi %0, %c99_i32_596 : i32
    %1196 = arith.index_cast %1195 : i32 to index
    %1197 = memref.load %arg2[%1196] : memref<128xi32, #tpu.memory_space<smem>>
    %1198 = arith.index_cast %1197 : i32 to index
    %c0_597 = arith.constant 0 : index
    %1199 = vector.load %arg3[%1198, %c0_597] : memref<32x16xf32, #tpu.memory_space<vmem>>, vector<1x16xf32>
    %c99_598 = arith.constant 99 : index
    %c0_599 = arith.constant 0 : index
    %1200 = vector.load %arg6[%c99_598, %c0_599] : memref<128x16xf32, #tpu.memory_space<vmem>>, vector<1x16xf32>
    tpu.vector_store %arg6[%c99_598, %c0_599], %1199 {strides = array<i32>} : memref<128x16xf32, #tpu.memory_space<vmem>>, vector<1x16xf32>,
    %c100_i32 = arith.constant 100 : i32
    %1201 = arith.addi %0, %c100_i32 : i32
    %1202 = arith.index_cast %1201 : i32 to index
    %1203 = memref.load %arg1[%1202] : memref<128xi32, #tpu.memory_space<smem>>
    %1204 = arith.index_cast %1203 : i32 to index
    %c0_600 = arith.constant 0 : index
    %1205 = vector.load %arg3[%1204, %c0_600] : memref<32x16xf32, #tpu.memory_space<vmem>>, vector<1x16xf32>
    %c100 = arith.constant 100 : index
    %c0_601 = arith.constant 0 : index
    %1206 = vector.load %arg5[%c100, %c0_601] : memref<128x16xf32, #tpu.memory_space<vmem>>, vector<1x16xf32>
    tpu.vector_store %arg5[%c100, %c0_601], %1205 {strides = array<i32>} : memref<128x16xf32, #tpu.memory_space<vmem>>, vector<1x16xf32>,
    %c100_i32_602 = arith.constant 100 : i32
    %1207 = arith.addi %0, %c100_i32_602 : i32
    %1208 = arith.index_cast %1207 : i32 to index
    %1209 = memref.load %arg2[%1208] : memref<128xi32, #tpu.memory_space<smem>>
    %1210 = arith.index_cast %1209 : i32 to index
    %c0_603 = arith.constant 0 : index
    %1211 = vector.load %arg3[%1210, %c0_603] : memref<32x16xf32, #tpu.memory_space<vmem>>, vector<1x16xf32>
    %c100_604 = arith.constant 100 : index
    %c0_605 = arith.constant 0 : index
    %1212 = vector.load %arg6[%c100_604, %c0_605] : memref<128x16xf32, #tpu.memory_space<vmem>>, vector<1x16xf32>
    tpu.vector_store %arg6[%c100_604, %c0_605], %1211 {strides = array<i32>} : memref<128x16xf32, #tpu.memory_space<vmem>>, vector<1x16xf32>,
    %c101_i32 = arith.constant 101 : i32
    %1213 = arith.addi %0, %c101_i32 : i32
    %1214 = arith.index_cast %1213 : i32 to index
    %1215 = memref.load %arg1[%1214] : memref<128xi32, #tpu.memory_space<smem>>
    %1216 = arith.index_cast %1215 : i32 to index
    %c0_606 = arith.constant 0 : index
    %1217 = vector.load %arg3[%1216, %c0_606] : memref<32x16xf32, #tpu.memory_space<vmem>>, vector<1x16xf32>
    %c101 = arith.constant 101 : index
    %c0_607 = arith.constant 0 : index
    %1218 = vector.load %arg5[%c101, %c0_607] : memref<128x16xf32, #tpu.memory_space<vmem>>, vector<1x16xf32>
    tpu.vector_store %arg5[%c101, %c0_607], %1217 {strides = array<i32>} : memref<128x16xf32, #tpu.memory_space<vmem>>, vector<1x16xf32>,
    %c101_i32_608 = arith.constant 101 : i32
    %1219 = arith.addi %0, %c101_i32_608 : i32
    %1220 = arith.index_cast %1219 : i32 to index
    %1221 = memref.load %arg2[%1220] : memref<128xi32, #tpu.memory_space<smem>>
    %1222 = arith.index_cast %1221 : i32 to index
    %c0_609 = arith.constant 0 : index
    %1223 = vector.load %arg3[%1222, %c0_609] : memref<32x16xf32, #tpu.memory_space<vmem>>, vector<1x16xf32>
    %c101_610 = arith.constant 101 : index
    %c0_611 = arith.constant 0 : index
    %1224 = vector.load %arg6[%c101_610, %c0_611] : memref<128x16xf32, #tpu.memory_space<vmem>>, vector<1x16xf32>
    tpu.vector_store %arg6[%c101_610, %c0_611], %1223 {strides = array<i32>} : memref<128x16xf32, #tpu.memory_space<vmem>>, vector<1x16xf32>,
    %c102_i32 = arith.constant 102 : i32
    %1225 = arith.addi %0, %c102_i32 : i32
    %1226 = arith.index_cast %1225 : i32 to index
    %1227 = memref.load %arg1[%1226] : memref<128xi32, #tpu.memory_space<smem>>
    %1228 = arith.index_cast %1227 : i32 to index
    %c0_612 = arith.constant 0 : index
    %1229 = vector.load %arg3[%1228, %c0_612] : memref<32x16xf32, #tpu.memory_space<vmem>>, vector<1x16xf32>
    %c102 = arith.constant 102 : index
    %c0_613 = arith.constant 0 : index
    %1230 = vector.load %arg5[%c102, %c0_613] : memref<128x16xf32, #tpu.memory_space<vmem>>, vector<1x16xf32>
    tpu.vector_store %arg5[%c102, %c0_613], %1229 {strides = array<i32>} : memref<128x16xf32, #tpu.memory_space<vmem>>, vector<1x16xf32>,
    %c102_i32_614 = arith.constant 102 : i32
    %1231 = arith.addi %0, %c102_i32_614 : i32
    %1232 = arith.index_cast %1231 : i32 to index
    %1233 = memref.load %arg2[%1232] : memref<128xi32, #tpu.memory_space<smem>>
    %1234 = arith.index_cast %1233 : i32 to index
    %c0_615 = arith.constant 0 : index
    %1235 = vector.load %arg3[%1234, %c0_615] : memref<32x16xf32, #tpu.memory_space<vmem>>, vector<1x16xf32>
    %c102_616 = arith.constant 102 : index
    %c0_617 = arith.constant 0 : index
    %1236 = vector.load %arg6[%c102_616, %c0_617] : memref<128x16xf32, #tpu.memory_space<vmem>>, vector<1x16xf32>
    tpu.vector_store %arg6[%c102_616, %c0_617], %1235 {strides = array<i32>} : memref<128x16xf32, #tpu.memory_space<vmem>>, vector<1x16xf32>,
    %c103_i32 = arith.constant 103 : i32
    %1237 = arith.addi %0, %c103_i32 : i32
    %1238 = arith.index_cast %1237 : i32 to index
    %1239 = memref.load %arg1[%1238] : memref<128xi32, #tpu.memory_space<smem>>
    %1240 = arith.index_cast %1239 : i32 to index
    %c0_618 = arith.constant 0 : index
    %1241 = vector.load %arg3[%1240, %c0_618] : memref<32x16xf32, #tpu.memory_space<vmem>>, vector<1x16xf32>
    %c103 = arith.constant 103 : index
    %c0_619 = arith.constant 0 : index
    %1242 = vector.load %arg5[%c103, %c0_619] : memref<128x16xf32, #tpu.memory_space<vmem>>, vector<1x16xf32>
    tpu.vector_store %arg5[%c103, %c0_619], %1241 {strides = array<i32>} : memref<128x16xf32, #tpu.memory_space<vmem>>, vector<1x16xf32>,
    %c103_i32_620 = arith.constant 103 : i32
    %1243 = arith.addi %0, %c103_i32_620 : i32
    %1244 = arith.index_cast %1243 : i32 to index
    %1245 = memref.load %arg2[%1244] : memref<128xi32, #tpu.memory_space<smem>>
    %1246 = arith.index_cast %1245 : i32 to index
    %c0_621 = arith.constant 0 : index
    %1247 = vector.load %arg3[%1246, %c0_621] : memref<32x16xf32, #tpu.memory_space<vmem>>, vector<1x16xf32>
    %c103_622 = arith.constant 103 : index
    %c0_623 = arith.constant 0 : index
    %1248 = vector.load %arg6[%c103_622, %c0_623] : memref<128x16xf32, #tpu.memory_space<vmem>>, vector<1x16xf32>
    tpu.vector_store %arg6[%c103_622, %c0_623], %1247 {strides = array<i32>} : memref<128x16xf32, #tpu.memory_space<vmem>>, vector<1x16xf32>,
    %c104_i32 = arith.constant 104 : i32
    %1249 = arith.addi %0, %c104_i32 : i32
    %1250 = arith.index_cast %1249 : i32 to index
    %1251 = memref.load %arg1[%1250] : memref<128xi32, #tpu.memory_space<smem>>
    %1252 = arith.index_cast %1251 : i32 to index
    %c0_624 = arith.constant 0 : index
    %1253 = vector.load %arg3[%1252, %c0_624] : memref<32x16xf32, #tpu.memory_space<vmem>>, vector<1x16xf32>
    %c104 = arith.constant 104 : index
    %c0_625 = arith.constant 0 : index
    %1254 = vector.load %arg5[%c104, %c0_625] : memref<128x16xf32, #tpu.memory_space<vmem>>, vector<1x16xf32>
    tpu.vector_store %arg5[%c104, %c0_625], %1253 {strides = array<i32>} : memref<128x16xf32, #tpu.memory_space<vmem>>, vector<1x16xf32>,
    %c104_i32_626 = arith.constant 104 : i32
    %1255 = arith.addi %0, %c104_i32_626 : i32
    %1256 = arith.index_cast %1255 : i32 to index
    %1257 = memref.load %arg2[%1256] : memref<128xi32, #tpu.memory_space<smem>>
    %1258 = arith.index_cast %1257 : i32 to index
    %c0_627 = arith.constant 0 : index
    %1259 = vector.load %arg3[%1258, %c0_627] : memref<32x16xf32, #tpu.memory_space<vmem>>, vector<1x16xf32>
    %c104_628 = arith.constant 104 : index
    %c0_629 = arith.constant 0 : index
    %1260 = vector.load %arg6[%c104_628, %c0_629] : memref<128x16xf32, #tpu.memory_space<vmem>>, vector<1x16xf32>
    tpu.vector_store %arg6[%c104_628, %c0_629], %1259 {strides = array<i32>} : memref<128x16xf32, #tpu.memory_space<vmem>>, vector<1x16xf32>,
    %c105_i32 = arith.constant 105 : i32
    %1261 = arith.addi %0, %c105_i32 : i32
    %1262 = arith.index_cast %1261 : i32 to index
    %1263 = memref.load %arg1[%1262] : memref<128xi32, #tpu.memory_space<smem>>
    %1264 = arith.index_cast %1263 : i32 to index
    %c0_630 = arith.constant 0 : index
    %1265 = vector.load %arg3[%1264, %c0_630] : memref<32x16xf32, #tpu.memory_space<vmem>>, vector<1x16xf32>
    %c105 = arith.constant 105 : index
    %c0_631 = arith.constant 0 : index
    %1266 = vector.load %arg5[%c105, %c0_631] : memref<128x16xf32, #tpu.memory_space<vmem>>, vector<1x16xf32>
    tpu.vector_store %arg5[%c105, %c0_631], %1265 {strides = array<i32>} : memref<128x16xf32, #tpu.memory_space<vmem>>, vector<1x16xf32>,
    %c105_i32_632 = arith.constant 105 : i32
    %1267 = arith.addi %0, %c105_i32_632 : i32
    %1268 = arith.index_cast %1267 : i32 to index
    %1269 = memref.load %arg2[%1268] : memref<128xi32, #tpu.memory_space<smem>>
    %1270 = arith.index_cast %1269 : i32 to index
    %c0_633 = arith.constant 0 : index
    %1271 = vector.load %arg3[%1270, %c0_633] : memref<32x16xf32, #tpu.memory_space<vmem>>, vector<1x16xf32>
    %c105_634 = arith.constant 105 : index
    %c0_635 = arith.constant 0 : index
    %1272 = vector.load %arg6[%c105_634, %c0_635] : memref<128x16xf32, #tpu.memory_space<vmem>>, vector<1x16xf32>
    tpu.vector_store %arg6[%c105_634, %c0_635], %1271 {strides = array<i32>} : memref<128x16xf32, #tpu.memory_space<vmem>>, vector<1x16xf32>,
    %c106_i32 = arith.constant 106 : i32
    %1273 = arith.addi %0, %c106_i32 : i32
    %1274 = arith.index_cast %1273 : i32 to index
    %1275 = memref.load %arg1[%1274] : memref<128xi32, #tpu.memory_space<smem>>
    %1276 = arith.index_cast %1275 : i32 to index
    %c0_636 = arith.constant 0 : index
    %1277 = vector.load %arg3[%1276, %c0_636] : memref<32x16xf32, #tpu.memory_space<vmem>>, vector<1x16xf32>
    %c106 = arith.constant 106 : index
    %c0_637 = arith.constant 0 : index
    %1278 = vector.load %arg5[%c106, %c0_637] : memref<128x16xf32, #tpu.memory_space<vmem>>, vector<1x16xf32>
    tpu.vector_store %arg5[%c106, %c0_637], %1277 {strides = array<i32>} : memref<128x16xf32, #tpu.memory_space<vmem>>, vector<1x16xf32>,
    %c106_i32_638 = arith.constant 106 : i32
    %1279 = arith.addi %0, %c106_i32_638 : i32
    %1280 = arith.index_cast %1279 : i32 to index
    %1281 = memref.load %arg2[%1280] : memref<128xi32, #tpu.memory_space<smem>>
    %1282 = arith.index_cast %1281 : i32 to index
    %c0_639 = arith.constant 0 : index
    %1283 = vector.load %arg3[%1282, %c0_639] : memref<32x16xf32, #tpu.memory_space<vmem>>, vector<1x16xf32>
    %c106_640 = arith.constant 106 : index
    %c0_641 = arith.constant 0 : index
    %1284 = vector.load %arg6[%c106_640, %c0_641] : memref<128x16xf32, #tpu.memory_space<vmem>>, vector<1x16xf32>
    tpu.vector_store %arg6[%c106_640, %c0_641], %1283 {strides = array<i32>} : memref<128x16xf32, #tpu.memory_space<vmem>>, vector<1x16xf32>,
    %c107_i32 = arith.constant 107 : i32
    %1285 = arith.addi %0, %c107_i32 : i32
    %1286 = arith.index_cast %1285 : i32 to index
    %1287 = memref.load %arg1[%1286] : memref<128xi32, #tpu.memory_space<smem>>
    %1288 = arith.index_cast %1287 : i32 to index
    %c0_642 = arith.constant 0 : index
    %1289 = vector.load %arg3[%1288, %c0_642] : memref<32x16xf32, #tpu.memory_space<vmem>>, vector<1x16xf32>
    %c107 = arith.constant 107 : index
    %c0_643 = arith.constant 0 : index
    %1290 = vector.load %arg5[%c107, %c0_643] : memref<128x16xf32, #tpu.memory_space<vmem>>, vector<1x16xf32>
    tpu.vector_store %arg5[%c107, %c0_643], %1289 {strides = array<i32>} : memref<128x16xf32, #tpu.memory_space<vmem>>, vector<1x16xf32>,
    %c107_i32_644 = arith.constant 107 : i32
    %1291 = arith.addi %0, %c107_i32_644 : i32
    %1292 = arith.index_cast %1291 : i32 to index
    %1293 = memref.load %arg2[%1292] : memref<128xi32, #tpu.memory_space<smem>>
    %1294 = arith.index_cast %1293 : i32 to index
    %c0_645 = arith.constant 0 : index
    %1295 = vector.load %arg3[%1294, %c0_645] : memref<32x16xf32, #tpu.memory_space<vmem>>, vector<1x16xf32>
    %c107_646 = arith.constant 107 : index
    %c0_647 = arith.constant 0 : index
    %1296 = vector.load %arg6[%c107_646, %c0_647] : memref<128x16xf32, #tpu.memory_space<vmem>>, vector<1x16xf32>
    tpu.vector_store %arg6[%c107_646, %c0_647], %1295 {strides = array<i32>} : memref<128x16xf32, #tpu.memory_space<vmem>>, vector<1x16xf32>,
    %c108_i32 = arith.constant 108 : i32
    %1297 = arith.addi %0, %c108_i32 : i32
    %1298 = arith.index_cast %1297 : i32 to index
    %1299 = memref.load %arg1[%1298] : memref<128xi32, #tpu.memory_space<smem>>
    %1300 = arith.index_cast %1299 : i32 to index
    %c0_648 = arith.constant 0 : index
    %1301 = vector.load %arg3[%1300, %c0_648] : memref<32x16xf32, #tpu.memory_space<vmem>>, vector<1x16xf32>
    %c108 = arith.constant 108 : index
    %c0_649 = arith.constant 0 : index
    %1302 = vector.load %arg5[%c108, %c0_649] : memref<128x16xf32, #tpu.memory_space<vmem>>, vector<1x16xf32>
    tpu.vector_store %arg5[%c108, %c0_649], %1301 {strides = array<i32>} : memref<128x16xf32, #tpu.memory_space<vmem>>, vector<1x16xf32>,
    %c108_i32_650 = arith.constant 108 : i32
    %1303 = arith.addi %0, %c108_i32_650 : i32
    %1304 = arith.index_cast %1303 : i32 to index
    %1305 = memref.load %arg2[%1304] : memref<128xi32, #tpu.memory_space<smem>>
    %1306 = arith.index_cast %1305 : i32 to index
    %c0_651 = arith.constant 0 : index
    %1307 = vector.load %arg3[%1306, %c0_651] : memref<32x16xf32, #tpu.memory_space<vmem>>, vector<1x16xf32>
    %c108_652 = arith.constant 108 : index
    %c0_653 = arith.constant 0 : index
    %1308 = vector.load %arg6[%c108_652, %c0_653] : memref<128x16xf32, #tpu.memory_space<vmem>>, vector<1x16xf32>
    tpu.vector_store %arg6[%c108_652, %c0_653], %1307 {strides = array<i32>} : memref<128x16xf32, #tpu.memory_space<vmem>>, vector<1x16xf32>,
    %c109_i32 = arith.constant 109 : i32
    %1309 = arith.addi %0, %c109_i32 : i32
    %1310 = arith.index_cast %1309 : i32 to index
    %1311 = memref.load %arg1[%1310] : memref<128xi32, #tpu.memory_space<smem>>
    %1312 = arith.index_cast %1311 : i32 to index
    %c0_654 = arith.constant 0 : index
    %1313 = vector.load %arg3[%1312, %c0_654] : memref<32x16xf32, #tpu.memory_space<vmem>>, vector<1x16xf32>
    %c109 = arith.constant 109 : index
    %c0_655 = arith.constant 0 : index
    %1314 = vector.load %arg5[%c109, %c0_655] : memref<128x16xf32, #tpu.memory_space<vmem>>, vector<1x16xf32>
    tpu.vector_store %arg5[%c109, %c0_655], %1313 {strides = array<i32>} : memref<128x16xf32, #tpu.memory_space<vmem>>, vector<1x16xf32>,
    %c109_i32_656 = arith.constant 109 : i32
    %1315 = arith.addi %0, %c109_i32_656 : i32
    %1316 = arith.index_cast %1315 : i32 to index
    %1317 = memref.load %arg2[%1316] : memref<128xi32, #tpu.memory_space<smem>>
    %1318 = arith.index_cast %1317 : i32 to index
    %c0_657 = arith.constant 0 : index
    %1319 = vector.load %arg3[%1318, %c0_657] : memref<32x16xf32, #tpu.memory_space<vmem>>, vector<1x16xf32>
    %c109_658 = arith.constant 109 : index
    %c0_659 = arith.constant 0 : index
    %1320 = vector.load %arg6[%c109_658, %c0_659] : memref<128x16xf32, #tpu.memory_space<vmem>>, vector<1x16xf32>
    tpu.vector_store %arg6[%c109_658, %c0_659], %1319 {strides = array<i32>} : memref<128x16xf32, #tpu.memory_space<vmem>>, vector<1x16xf32>,
    %c110_i32 = arith.constant 110 : i32
    %1321 = arith.addi %0, %c110_i32 : i32
    %1322 = arith.index_cast %1321 : i32 to index
    %1323 = memref.load %arg1[%1322] : memref<128xi32, #tpu.memory_space<smem>>
    %1324 = arith.index_cast %1323 : i32 to index
    %c0_660 = arith.constant 0 : index
    %1325 = vector.load %arg3[%1324, %c0_660] : memref<32x16xf32, #tpu.memory_space<vmem>>, vector<1x16xf32>
    %c110 = arith.constant 110 : index
    %c0_661 = arith.constant 0 : index
    %1326 = vector.load %arg5[%c110, %c0_661] : memref<128x16xf32, #tpu.memory_space<vmem>>, vector<1x16xf32>
    tpu.vector_store %arg5[%c110, %c0_661], %1325 {strides = array<i32>} : memref<128x16xf32, #tpu.memory_space<vmem>>, vector<1x16xf32>,
    %c110_i32_662 = arith.constant 110 : i32
    %1327 = arith.addi %0, %c110_i32_662 : i32
    %1328 = arith.index_cast %1327 : i32 to index
    %1329 = memref.load %arg2[%1328] : memref<128xi32, #tpu.memory_space<smem>>
    %1330 = arith.index_cast %1329 : i32 to index
    %c0_663 = arith.constant 0 : index
    %1331 = vector.load %arg3[%1330, %c0_663] : memref<32x16xf32, #tpu.memory_space<vmem>>, vector<1x16xf32>
    %c110_664 = arith.constant 110 : index
    %c0_665 = arith.constant 0 : index
    %1332 = vector.load %arg6[%c110_664, %c0_665] : memref<128x16xf32, #tpu.memory_space<vmem>>, vector<1x16xf32>
    tpu.vector_store %arg6[%c110_664, %c0_665], %1331 {strides = array<i32>} : memref<128x16xf32, #tpu.memory_space<vmem>>, vector<1x16xf32>,
    %c111_i32 = arith.constant 111 : i32
    %1333 = arith.addi %0, %c111_i32 : i32
    %1334 = arith.index_cast %1333 : i32 to index
    %1335 = memref.load %arg1[%1334] : memref<128xi32, #tpu.memory_space<smem>>
    %1336 = arith.index_cast %1335 : i32 to index
    %c0_666 = arith.constant 0 : index
    %1337 = vector.load %arg3[%1336, %c0_666] : memref<32x16xf32, #tpu.memory_space<vmem>>, vector<1x16xf32>
    %c111 = arith.constant 111 : index
    %c0_667 = arith.constant 0 : index
    %1338 = vector.load %arg5[%c111, %c0_667] : memref<128x16xf32, #tpu.memory_space<vmem>>, vector<1x16xf32>
    tpu.vector_store %arg5[%c111, %c0_667], %1337 {strides = array<i32>} : memref<128x16xf32, #tpu.memory_space<vmem>>, vector<1x16xf32>,
    %c111_i32_668 = arith.constant 111 : i32
    %1339 = arith.addi %0, %c111_i32_668 : i32
    %1340 = arith.index_cast %1339 : i32 to index
    %1341 = memref.load %arg2[%1340] : memref<128xi32, #tpu.memory_space<smem>>
    %1342 = arith.index_cast %1341 : i32 to index
    %c0_669 = arith.constant 0 : index
    %1343 = vector.load %arg3[%1342, %c0_669] : memref<32x16xf32, #tpu.memory_space<vmem>>, vector<1x16xf32>
    %c111_670 = arith.constant 111 : index
    %c0_671 = arith.constant 0 : index
    %1344 = vector.load %arg6[%c111_670, %c0_671] : memref<128x16xf32, #tpu.memory_space<vmem>>, vector<1x16xf32>
    tpu.vector_store %arg6[%c111_670, %c0_671], %1343 {strides = array<i32>} : memref<128x16xf32, #tpu.memory_space<vmem>>, vector<1x16xf32>,
    %c112_i32 = arith.constant 112 : i32
    %1345 = arith.addi %0, %c112_i32 : i32
    %1346 = arith.index_cast %1345 : i32 to index
    %1347 = memref.load %arg1[%1346] : memref<128xi32, #tpu.memory_space<smem>>
    %1348 = arith.index_cast %1347 : i32 to index
    %c0_672 = arith.constant 0 : index
    %1349 = vector.load %arg3[%1348, %c0_672] : memref<32x16xf32, #tpu.memory_space<vmem>>, vector<1x16xf32>
    %c112 = arith.constant 112 : index
    %c0_673 = arith.constant 0 : index
    %1350 = vector.load %arg5[%c112, %c0_673] : memref<128x16xf32, #tpu.memory_space<vmem>>, vector<1x16xf32>
    tpu.vector_store %arg5[%c112, %c0_673], %1349 {strides = array<i32>} : memref<128x16xf32, #tpu.memory_space<vmem>>, vector<1x16xf32>,
    %c112_i32_674 = arith.constant 112 : i32
    %1351 = arith.addi %0, %c112_i32_674 : i32
    %1352 = arith.index_cast %1351 : i32 to index
    %1353 = memref.load %arg2[%1352] : memref<128xi32, #tpu.memory_space<smem>>
    %1354 = arith.index_cast %1353 : i32 to index
    %c0_675 = arith.constant 0 : index
    %1355 = vector.load %arg3[%1354, %c0_675] : memref<32x16xf32, #tpu.memory_space<vmem>>, vector<1x16xf32>
    %c112_676 = arith.constant 112 : index
    %c0_677 = arith.constant 0 : index
    %1356 = vector.load %arg6[%c112_676, %c0_677] : memref<128x16xf32, #tpu.memory_space<vmem>>, vector<1x16xf32>
    tpu.vector_store %arg6[%c112_676, %c0_677], %1355 {strides = array<i32>} : memref<128x16xf32, #tpu.memory_space<vmem>>, vector<1x16xf32>,
    %c113_i32 = arith.constant 113 : i32
    %1357 = arith.addi %0, %c113_i32 : i32
    %1358 = arith.index_cast %1357 : i32 to index
    %1359 = memref.load %arg1[%1358] : memref<128xi32, #tpu.memory_space<smem>>
    %1360 = arith.index_cast %1359 : i32 to index
    %c0_678 = arith.constant 0 : index
    %1361 = vector.load %arg3[%1360, %c0_678] : memref<32x16xf32, #tpu.memory_space<vmem>>, vector<1x16xf32>
    %c113 = arith.constant 113 : index
    %c0_679 = arith.constant 0 : index
    %1362 = vector.load %arg5[%c113, %c0_679] : memref<128x16xf32, #tpu.memory_space<vmem>>, vector<1x16xf32>
    tpu.vector_store %arg5[%c113, %c0_679], %1361 {strides = array<i32>} : memref<128x16xf32, #tpu.memory_space<vmem>>, vector<1x16xf32>,
    %c113_i32_680 = arith.constant 113 : i32
    %1363 = arith.addi %0, %c113_i32_680 : i32
    %1364 = arith.index_cast %1363 : i32 to index
    %1365 = memref.load %arg2[%1364] : memref<128xi32, #tpu.memory_space<smem>>
    %1366 = arith.index_cast %1365 : i32 to index
    %c0_681 = arith.constant 0 : index
    %1367 = vector.load %arg3[%1366, %c0_681] : memref<32x16xf32, #tpu.memory_space<vmem>>, vector<1x16xf32>
    %c113_682 = arith.constant 113 : index
    %c0_683 = arith.constant 0 : index
    %1368 = vector.load %arg6[%c113_682, %c0_683] : memref<128x16xf32, #tpu.memory_space<vmem>>, vector<1x16xf32>
    tpu.vector_store %arg6[%c113_682, %c0_683], %1367 {strides = array<i32>} : memref<128x16xf32, #tpu.memory_space<vmem>>, vector<1x16xf32>,
    %c114_i32 = arith.constant 114 : i32
    %1369 = arith.addi %0, %c114_i32 : i32
    %1370 = arith.index_cast %1369 : i32 to index
    %1371 = memref.load %arg1[%1370] : memref<128xi32, #tpu.memory_space<smem>>
    %1372 = arith.index_cast %1371 : i32 to index
    %c0_684 = arith.constant 0 : index
    %1373 = vector.load %arg3[%1372, %c0_684] : memref<32x16xf32, #tpu.memory_space<vmem>>, vector<1x16xf32>
    %c114 = arith.constant 114 : index
    %c0_685 = arith.constant 0 : index
    %1374 = vector.load %arg5[%c114, %c0_685] : memref<128x16xf32, #tpu.memory_space<vmem>>, vector<1x16xf32>
    tpu.vector_store %arg5[%c114, %c0_685], %1373 {strides = array<i32>} : memref<128x16xf32, #tpu.memory_space<vmem>>, vector<1x16xf32>,
    %c114_i32_686 = arith.constant 114 : i32
    %1375 = arith.addi %0, %c114_i32_686 : i32
    %1376 = arith.index_cast %1375 : i32 to index
    %1377 = memref.load %arg2[%1376] : memref<128xi32, #tpu.memory_space<smem>>
    %1378 = arith.index_cast %1377 : i32 to index
    %c0_687 = arith.constant 0 : index
    %1379 = vector.load %arg3[%1378, %c0_687] : memref<32x16xf32, #tpu.memory_space<vmem>>, vector<1x16xf32>
    %c114_688 = arith.constant 114 : index
    %c0_689 = arith.constant 0 : index
    %1380 = vector.load %arg6[%c114_688, %c0_689] : memref<128x16xf32, #tpu.memory_space<vmem>>, vector<1x16xf32>
    tpu.vector_store %arg6[%c114_688, %c0_689], %1379 {strides = array<i32>} : memref<128x16xf32, #tpu.memory_space<vmem>>, vector<1x16xf32>,
    %c115_i32 = arith.constant 115 : i32
    %1381 = arith.addi %0, %c115_i32 : i32
    %1382 = arith.index_cast %1381 : i32 to index
    %1383 = memref.load %arg1[%1382] : memref<128xi32, #tpu.memory_space<smem>>
    %1384 = arith.index_cast %1383 : i32 to index
    %c0_690 = arith.constant 0 : index
    %1385 = vector.load %arg3[%1384, %c0_690] : memref<32x16xf32, #tpu.memory_space<vmem>>, vector<1x16xf32>
    %c115 = arith.constant 115 : index
    %c0_691 = arith.constant 0 : index
    %1386 = vector.load %arg5[%c115, %c0_691] : memref<128x16xf32, #tpu.memory_space<vmem>>, vector<1x16xf32>
    tpu.vector_store %arg5[%c115, %c0_691], %1385 {strides = array<i32>} : memref<128x16xf32, #tpu.memory_space<vmem>>, vector<1x16xf32>,
    %c115_i32_692 = arith.constant 115 : i32
    %1387 = arith.addi %0, %c115_i32_692 : i32
    %1388 = arith.index_cast %1387 : i32 to index
    %1389 = memref.load %arg2[%1388] : memref<128xi32, #tpu.memory_space<smem>>
    %1390 = arith.index_cast %1389 : i32 to index
    %c0_693 = arith.constant 0 : index
    %1391 = vector.load %arg3[%1390, %c0_693] : memref<32x16xf32, #tpu.memory_space<vmem>>, vector<1x16xf32>
    %c115_694 = arith.constant 115 : index
    %c0_695 = arith.constant 0 : index
    %1392 = vector.load %arg6[%c115_694, %c0_695] : memref<128x16xf32, #tpu.memory_space<vmem>>, vector<1x16xf32>
    tpu.vector_store %arg6[%c115_694, %c0_695], %1391 {strides = array<i32>} : memref<128x16xf32, #tpu.memory_space<vmem>>, vector<1x16xf32>,
    %c116_i32 = arith.constant 116 : i32
    %1393 = arith.addi %0, %c116_i32 : i32
    %1394 = arith.index_cast %1393 : i32 to index
    %1395 = memref.load %arg1[%1394] : memref<128xi32, #tpu.memory_space<smem>>
    %1396 = arith.index_cast %1395 : i32 to index
    %c0_696 = arith.constant 0 : index
    %1397 = vector.load %arg3[%1396, %c0_696] : memref<32x16xf32, #tpu.memory_space<vmem>>, vector<1x16xf32>
    %c116 = arith.constant 116 : index
    %c0_697 = arith.constant 0 : index
    %1398 = vector.load %arg5[%c116, %c0_697] : memref<128x16xf32, #tpu.memory_space<vmem>>, vector<1x16xf32>
    tpu.vector_store %arg5[%c116, %c0_697], %1397 {strides = array<i32>} : memref<128x16xf32, #tpu.memory_space<vmem>>, vector<1x16xf32>,
    %c116_i32_698 = arith.constant 116 : i32
    %1399 = arith.addi %0, %c116_i32_698 : i32
    %1400 = arith.index_cast %1399 : i32 to index
    %1401 = memref.load %arg2[%1400] : memref<128xi32, #tpu.memory_space<smem>>
    %1402 = arith.index_cast %1401 : i32 to index
    %c0_699 = arith.constant 0 : index
    %1403 = vector.load %arg3[%1402, %c0_699] : memref<32x16xf32, #tpu.memory_space<vmem>>, vector<1x16xf32>
    %c116_700 = arith.constant 116 : index
    %c0_701 = arith.constant 0 : index
    %1404 = vector.load %arg6[%c116_700, %c0_701] : memref<128x16xf32, #tpu.memory_space<vmem>>, vector<1x16xf32>
    tpu.vector_store %arg6[%c116_700, %c0_701], %1403 {strides = array<i32>} : memref<128x16xf32, #tpu.memory_space<vmem>>, vector<1x16xf32>,
    %c117_i32 = arith.constant 117 : i32
    %1405 = arith.addi %0, %c117_i32 : i32
    %1406 = arith.index_cast %1405 : i32 to index
    %1407 = memref.load %arg1[%1406] : memref<128xi32, #tpu.memory_space<smem>>
    %1408 = arith.index_cast %1407 : i32 to index
    %c0_702 = arith.constant 0 : index
    %1409 = vector.load %arg3[%1408, %c0_702] : memref<32x16xf32, #tpu.memory_space<vmem>>, vector<1x16xf32>
    %c117 = arith.constant 117 : index
    %c0_703 = arith.constant 0 : index
    %1410 = vector.load %arg5[%c117, %c0_703] : memref<128x16xf32, #tpu.memory_space<vmem>>, vector<1x16xf32>
    tpu.vector_store %arg5[%c117, %c0_703], %1409 {strides = array<i32>} : memref<128x16xf32, #tpu.memory_space<vmem>>, vector<1x16xf32>,
    %c117_i32_704 = arith.constant 117 : i32
    %1411 = arith.addi %0, %c117_i32_704 : i32
    %1412 = arith.index_cast %1411 : i32 to index
    %1413 = memref.load %arg2[%1412] : memref<128xi32, #tpu.memory_space<smem>>
    %1414 = arith.index_cast %1413 : i32 to index
    %c0_705 = arith.constant 0 : index
    %1415 = vector.load %arg3[%1414, %c0_705] : memref<32x16xf32, #tpu.memory_space<vmem>>, vector<1x16xf32>
    %c117_706 = arith.constant 117 : index
    %c0_707 = arith.constant 0 : index
    %1416 = vector.load %arg6[%c117_706, %c0_707] : memref<128x16xf32, #tpu.memory_space<vmem>>, vector<1x16xf32>
    tpu.vector_store %arg6[%c117_706, %c0_707], %1415 {strides = array<i32>} : memref<128x16xf32, #tpu.memory_space<vmem>>, vector<1x16xf32>,
    %c118_i32 = arith.constant 118 : i32
    %1417 = arith.addi %0, %c118_i32 : i32
    %1418 = arith.index_cast %1417 : i32 to index
    %1419 = memref.load %arg1[%1418] : memref<128xi32, #tpu.memory_space<smem>>
    %1420 = arith.index_cast %1419 : i32 to index
    %c0_708 = arith.constant 0 : index
    %1421 = vector.load %arg3[%1420, %c0_708] : memref<32x16xf32, #tpu.memory_space<vmem>>, vector<1x16xf32>
    %c118 = arith.constant 118 : index
    %c0_709 = arith.constant 0 : index
    %1422 = vector.load %arg5[%c118, %c0_709] : memref<128x16xf32, #tpu.memory_space<vmem>>, vector<1x16xf32>
    tpu.vector_store %arg5[%c118, %c0_709], %1421 {strides = array<i32>} : memref<128x16xf32, #tpu.memory_space<vmem>>, vector<1x16xf32>,
    %c118_i32_710 = arith.constant 118 : i32
    %1423 = arith.addi %0, %c118_i32_710 : i32
    %1424 = arith.index_cast %1423 : i32 to index
    %1425 = memref.load %arg2[%1424] : memref<128xi32, #tpu.memory_space<smem>>
    %1426 = arith.index_cast %1425 : i32 to index
    %c0_711 = arith.constant 0 : index
    %1427 = vector.load %arg3[%1426, %c0_711] : memref<32x16xf32, #tpu.memory_space<vmem>>, vector<1x16xf32>
    %c118_712 = arith.constant 118 : index
    %c0_713 = arith.constant 0 : index
    %1428 = vector.load %arg6[%c118_712, %c0_713] : memref<128x16xf32, #tpu.memory_space<vmem>>, vector<1x16xf32>
    tpu.vector_store %arg6[%c118_712, %c0_713], %1427 {strides = array<i32>} : memref<128x16xf32, #tpu.memory_space<vmem>>, vector<1x16xf32>,
    %c119_i32 = arith.constant 119 : i32
    %1429 = arith.addi %0, %c119_i32 : i32
    %1430 = arith.index_cast %1429 : i32 to index
    %1431 = memref.load %arg1[%1430] : memref<128xi32, #tpu.memory_space<smem>>
    %1432 = arith.index_cast %1431 : i32 to index
    %c0_714 = arith.constant 0 : index
    %1433 = vector.load %arg3[%1432, %c0_714] : memref<32x16xf32, #tpu.memory_space<vmem>>, vector<1x16xf32>
    %c119 = arith.constant 119 : index
    %c0_715 = arith.constant 0 : index
    %1434 = vector.load %arg5[%c119, %c0_715] : memref<128x16xf32, #tpu.memory_space<vmem>>, vector<1x16xf32>
    tpu.vector_store %arg5[%c119, %c0_715], %1433 {strides = array<i32>} : memref<128x16xf32, #tpu.memory_space<vmem>>, vector<1x16xf32>,
    %c119_i32_716 = arith.constant 119 : i32
    %1435 = arith.addi %0, %c119_i32_716 : i32
    %1436 = arith.index_cast %1435 : i32 to index
    %1437 = memref.load %arg2[%1436] : memref<128xi32, #tpu.memory_space<smem>>
    %1438 = arith.index_cast %1437 : i32 to index
    %c0_717 = arith.constant 0 : index
    %1439 = vector.load %arg3[%1438, %c0_717] : memref<32x16xf32, #tpu.memory_space<vmem>>, vector<1x16xf32>
    %c119_718 = arith.constant 119 : index
    %c0_719 = arith.constant 0 : index
    %1440 = vector.load %arg6[%c119_718, %c0_719] : memref<128x16xf32, #tpu.memory_space<vmem>>, vector<1x16xf32>
    tpu.vector_store %arg6[%c119_718, %c0_719], %1439 {strides = array<i32>} : memref<128x16xf32, #tpu.memory_space<vmem>>, vector<1x16xf32>,
    %c120_i32 = arith.constant 120 : i32
    %1441 = arith.addi %0, %c120_i32 : i32
    %1442 = arith.index_cast %1441 : i32 to index
    %1443 = memref.load %arg1[%1442] : memref<128xi32, #tpu.memory_space<smem>>
    %1444 = arith.index_cast %1443 : i32 to index
    %c0_720 = arith.constant 0 : index
    %1445 = vector.load %arg3[%1444, %c0_720] : memref<32x16xf32, #tpu.memory_space<vmem>>, vector<1x16xf32>
    %c120 = arith.constant 120 : index
    %c0_721 = arith.constant 0 : index
    %1446 = vector.load %arg5[%c120, %c0_721] : memref<128x16xf32, #tpu.memory_space<vmem>>, vector<1x16xf32>
    tpu.vector_store %arg5[%c120, %c0_721], %1445 {strides = array<i32>} : memref<128x16xf32, #tpu.memory_space<vmem>>, vector<1x16xf32>,
    %c120_i32_722 = arith.constant 120 : i32
    %1447 = arith.addi %0, %c120_i32_722 : i32
    %1448 = arith.index_cast %1447 : i32 to index
    %1449 = memref.load %arg2[%1448] : memref<128xi32, #tpu.memory_space<smem>>
    %1450 = arith.index_cast %1449 : i32 to index
    %c0_723 = arith.constant 0 : index
    %1451 = vector.load %arg3[%1450, %c0_723] : memref<32x16xf32, #tpu.memory_space<vmem>>, vector<1x16xf32>
    %c120_724 = arith.constant 120 : index
    %c0_725 = arith.constant 0 : index
    %1452 = vector.load %arg6[%c120_724, %c0_725] : memref<128x16xf32, #tpu.memory_space<vmem>>, vector<1x16xf32>
    tpu.vector_store %arg6[%c120_724, %c0_725], %1451 {strides = array<i32>} : memref<128x16xf32, #tpu.memory_space<vmem>>, vector<1x16xf32>,
    %c121_i32 = arith.constant 121 : i32
    %1453 = arith.addi %0, %c121_i32 : i32
    %1454 = arith.index_cast %1453 : i32 to index
    %1455 = memref.load %arg1[%1454] : memref<128xi32, #tpu.memory_space<smem>>
    %1456 = arith.index_cast %1455 : i32 to index
    %c0_726 = arith.constant 0 : index
    %1457 = vector.load %arg3[%1456, %c0_726] : memref<32x16xf32, #tpu.memory_space<vmem>>, vector<1x16xf32>
    %c121 = arith.constant 121 : index
    %c0_727 = arith.constant 0 : index
    %1458 = vector.load %arg5[%c121, %c0_727] : memref<128x16xf32, #tpu.memory_space<vmem>>, vector<1x16xf32>
    tpu.vector_store %arg5[%c121, %c0_727], %1457 {strides = array<i32>} : memref<128x16xf32, #tpu.memory_space<vmem>>, vector<1x16xf32>,
    %c121_i32_728 = arith.constant 121 : i32
    %1459 = arith.addi %0, %c121_i32_728 : i32
    %1460 = arith.index_cast %1459 : i32 to index
    %1461 = memref.load %arg2[%1460] : memref<128xi32, #tpu.memory_space<smem>>
    %1462 = arith.index_cast %1461 : i32 to index
    %c0_729 = arith.constant 0 : index
    %1463 = vector.load %arg3[%1462, %c0_729] : memref<32x16xf32, #tpu.memory_space<vmem>>, vector<1x16xf32>
    %c121_730 = arith.constant 121 : index
    %c0_731 = arith.constant 0 : index
    %1464 = vector.load %arg6[%c121_730, %c0_731] : memref<128x16xf32, #tpu.memory_space<vmem>>, vector<1x16xf32>
    tpu.vector_store %arg6[%c121_730, %c0_731], %1463 {strides = array<i32>} : memref<128x16xf32, #tpu.memory_space<vmem>>, vector<1x16xf32>,
    %c122_i32 = arith.constant 122 : i32
    %1465 = arith.addi %0, %c122_i32 : i32
    %1466 = arith.index_cast %1465 : i32 to index
    %1467 = memref.load %arg1[%1466] : memref<128xi32, #tpu.memory_space<smem>>
    %1468 = arith.index_cast %1467 : i32 to index
    %c0_732 = arith.constant 0 : index
    %1469 = vector.load %arg3[%1468, %c0_732] : memref<32x16xf32, #tpu.memory_space<vmem>>, vector<1x16xf32>
    %c122 = arith.constant 122 : index
    %c0_733 = arith.constant 0 : index
    %1470 = vector.load %arg5[%c122, %c0_733] : memref<128x16xf32, #tpu.memory_space<vmem>>, vector<1x16xf32>
    tpu.vector_store %arg5[%c122, %c0_733], %1469 {strides = array<i32>} : memref<128x16xf32, #tpu.memory_space<vmem>>, vector<1x16xf32>,
    %c122_i32_734 = arith.constant 122 : i32
    %1471 = arith.addi %0, %c122_i32_734 : i32
    %1472 = arith.index_cast %1471 : i32 to index
    %1473 = memref.load %arg2[%1472] : memref<128xi32, #tpu.memory_space<smem>>
    %1474 = arith.index_cast %1473 : i32 to index
    %c0_735 = arith.constant 0 : index
    %1475 = vector.load %arg3[%1474, %c0_735] : memref<32x16xf32, #tpu.memory_space<vmem>>, vector<1x16xf32>
    %c122_736 = arith.constant 122 : index
    %c0_737 = arith.constant 0 : index
    %1476 = vector.load %arg6[%c122_736, %c0_737] : memref<128x16xf32, #tpu.memory_space<vmem>>, vector<1x16xf32>
    tpu.vector_store %arg6[%c122_736, %c0_737], %1475 {strides = array<i32>} : memref<128x16xf32, #tpu.memory_space<vmem>>, vector<1x16xf32>,
    %c123_i32 = arith.constant 123 : i32
    %1477 = arith.addi %0, %c123_i32 : i32
    %1478 = arith.index_cast %1477 : i32 to index
    %1479 = memref.load %arg1[%1478] : memref<128xi32, #tpu.memory_space<smem>>
    %1480 = arith.index_cast %1479 : i32 to index
    %c0_738 = arith.constant 0 : index
    %1481 = vector.load %arg3[%1480, %c0_738] : memref<32x16xf32, #tpu.memory_space<vmem>>, vector<1x16xf32>
    %c123 = arith.constant 123 : index
    %c0_739 = arith.constant 0 : index
    %1482 = vector.load %arg5[%c123, %c0_739] : memref<128x16xf32, #tpu.memory_space<vmem>>, vector<1x16xf32>
    tpu.vector_store %arg5[%c123, %c0_739], %1481 {strides = array<i32>} : memref<128x16xf32, #tpu.memory_space<vmem>>, vector<1x16xf32>,
    %c123_i32_740 = arith.constant 123 : i32
    %1483 = arith.addi %0, %c123_i32_740 : i32
    %1484 = arith.index_cast %1483 : i32 to index
    %1485 = memref.load %arg2[%1484] : memref<128xi32, #tpu.memory_space<smem>>
    %1486 = arith.index_cast %1485 : i32 to index
    %c0_741 = arith.constant 0 : index
    %1487 = vector.load %arg3[%1486, %c0_741] : memref<32x16xf32, #tpu.memory_space<vmem>>, vector<1x16xf32>
    %c123_742 = arith.constant 123 : index
    %c0_743 = arith.constant 0 : index
    %1488 = vector.load %arg6[%c123_742, %c0_743] : memref<128x16xf32, #tpu.memory_space<vmem>>, vector<1x16xf32>
    tpu.vector_store %arg6[%c123_742, %c0_743], %1487 {strides = array<i32>} : memref<128x16xf32, #tpu.memory_space<vmem>>, vector<1x16xf32>,
    %c124_i32 = arith.constant 124 : i32
    %1489 = arith.addi %0, %c124_i32 : i32
    %1490 = arith.index_cast %1489 : i32 to index
    %1491 = memref.load %arg1[%1490] : memref<128xi32, #tpu.memory_space<smem>>
    %1492 = arith.index_cast %1491 : i32 to index
    %c0_744 = arith.constant 0 : index
    %1493 = vector.load %arg3[%1492, %c0_744] : memref<32x16xf32, #tpu.memory_space<vmem>>, vector<1x16xf32>
    %c124 = arith.constant 124 : index
    %c0_745 = arith.constant 0 : index
    %1494 = vector.load %arg5[%c124, %c0_745] : memref<128x16xf32, #tpu.memory_space<vmem>>, vector<1x16xf32>
    tpu.vector_store %arg5[%c124, %c0_745], %1493 {strides = array<i32>} : memref<128x16xf32, #tpu.memory_space<vmem>>, vector<1x16xf32>,
    %c124_i32_746 = arith.constant 124 : i32
    %1495 = arith.addi %0, %c124_i32_746 : i32
    %1496 = arith.index_cast %1495 : i32 to index
    %1497 = memref.load %arg2[%1496] : memref<128xi32, #tpu.memory_space<smem>>
    %1498 = arith.index_cast %1497 : i32 to index
    %c0_747 = arith.constant 0 : index
    %1499 = vector.load %arg3[%1498, %c0_747] : memref<32x16xf32, #tpu.memory_space<vmem>>, vector<1x16xf32>
    %c124_748 = arith.constant 124 : index
    %c0_749 = arith.constant 0 : index
    %1500 = vector.load %arg6[%c124_748, %c0_749] : memref<128x16xf32, #tpu.memory_space<vmem>>, vector<1x16xf32>
    tpu.vector_store %arg6[%c124_748, %c0_749], %1499 {strides = array<i32>} : memref<128x16xf32, #tpu.memory_space<vmem>>, vector<1x16xf32>,
    %c125_i32 = arith.constant 125 : i32
    %1501 = arith.addi %0, %c125_i32 : i32
    %1502 = arith.index_cast %1501 : i32 to index
    %1503 = memref.load %arg1[%1502] : memref<128xi32, #tpu.memory_space<smem>>
    %1504 = arith.index_cast %1503 : i32 to index
    %c0_750 = arith.constant 0 : index
    %1505 = vector.load %arg3[%1504, %c0_750] : memref<32x16xf32, #tpu.memory_space<vmem>>, vector<1x16xf32>
    %c125 = arith.constant 125 : index
    %c0_751 = arith.constant 0 : index
    %1506 = vector.load %arg5[%c125, %c0_751] : memref<128x16xf32, #tpu.memory_space<vmem>>, vector<1x16xf32>
    tpu.vector_store %arg5[%c125, %c0_751], %1505 {strides = array<i32>} : memref<128x16xf32, #tpu.memory_space<vmem>>, vector<1x16xf32>,
    %c125_i32_752 = arith.constant 125 : i32
    %1507 = arith.addi %0, %c125_i32_752 : i32
    %1508 = arith.index_cast %1507 : i32 to index
    %1509 = memref.load %arg2[%1508] : memref<128xi32, #tpu.memory_space<smem>>
    %1510 = arith.index_cast %1509 : i32 to index
    %c0_753 = arith.constant 0 : index
    %1511 = vector.load %arg3[%1510, %c0_753] : memref<32x16xf32, #tpu.memory_space<vmem>>, vector<1x16xf32>
    %c125_754 = arith.constant 125 : index
    %c0_755 = arith.constant 0 : index
    %1512 = vector.load %arg6[%c125_754, %c0_755] : memref<128x16xf32, #tpu.memory_space<vmem>>, vector<1x16xf32>
    tpu.vector_store %arg6[%c125_754, %c0_755], %1511 {strides = array<i32>} : memref<128x16xf32, #tpu.memory_space<vmem>>, vector<1x16xf32>,
    %c126_i32 = arith.constant 126 : i32
    %1513 = arith.addi %0, %c126_i32 : i32
    %1514 = arith.index_cast %1513 : i32 to index
    %1515 = memref.load %arg1[%1514] : memref<128xi32, #tpu.memory_space<smem>>
    %1516 = arith.index_cast %1515 : i32 to index
    %c0_756 = arith.constant 0 : index
    %1517 = vector.load %arg3[%1516, %c0_756] : memref<32x16xf32, #tpu.memory_space<vmem>>, vector<1x16xf32>
    %c126 = arith.constant 126 : index
    %c0_757 = arith.constant 0 : index
    %1518 = vector.load %arg5[%c126, %c0_757] : memref<128x16xf32, #tpu.memory_space<vmem>>, vector<1x16xf32>
    tpu.vector_store %arg5[%c126, %c0_757], %1517 {strides = array<i32>} : memref<128x16xf32, #tpu.memory_space<vmem>>, vector<1x16xf32>,
    %c126_i32_758 = arith.constant 126 : i32
    %1519 = arith.addi %0, %c126_i32_758 : i32
    %1520 = arith.index_cast %1519 : i32 to index
    %1521 = memref.load %arg2[%1520] : memref<128xi32, #tpu.memory_space<smem>>
    %1522 = arith.index_cast %1521 : i32 to index
    %c0_759 = arith.constant 0 : index
    %1523 = vector.load %arg3[%1522, %c0_759] : memref<32x16xf32, #tpu.memory_space<vmem>>, vector<1x16xf32>
    %c126_760 = arith.constant 126 : index
    %c0_761 = arith.constant 0 : index
    %1524 = vector.load %arg6[%c126_760, %c0_761] : memref<128x16xf32, #tpu.memory_space<vmem>>, vector<1x16xf32>
    tpu.vector_store %arg6[%c126_760, %c0_761], %1523 {strides = array<i32>} : memref<128x16xf32, #tpu.memory_space<vmem>>, vector<1x16xf32>,
    %c127_i32 = arith.constant 127 : i32
    %1525 = arith.addi %0, %c127_i32 : i32
    %1526 = arith.index_cast %1525 : i32 to index
    %1527 = memref.load %arg1[%1526] : memref<128xi32, #tpu.memory_space<smem>>
    %1528 = arith.index_cast %1527 : i32 to index
    %c0_762 = arith.constant 0 : index
    %1529 = vector.load %arg3[%1528, %c0_762] : memref<32x16xf32, #tpu.memory_space<vmem>>, vector<1x16xf32>
    %c127 = arith.constant 127 : index
    %c0_763 = arith.constant 0 : index
    %1530 = vector.load %arg5[%c127, %c0_763] : memref<128x16xf32, #tpu.memory_space<vmem>>, vector<1x16xf32>
    tpu.vector_store %arg5[%c127, %c0_763], %1529 {strides = array<i32>} : memref<128x16xf32, #tpu.memory_space<vmem>>, vector<1x16xf32>,
    %c127_i32_764 = arith.constant 127 : i32
    %1531 = arith.addi %0, %c127_i32_764 : i32
    %1532 = arith.index_cast %1531 : i32 to index
    %1533 = memref.load %arg2[%1532] : memref<128xi32, #tpu.memory_space<smem>>
    %1534 = arith.index_cast %1533 : i32 to index
    %c0_765 = arith.constant 0 : index
    %1535 = vector.load %arg3[%1534, %c0_765] : memref<32x16xf32, #tpu.memory_space<vmem>>, vector<1x16xf32>
    %c127_766 = arith.constant 127 : index
    %c0_767 = arith.constant 0 : index
    %1536 = vector.load %arg6[%c127_766, %c0_767] : memref<128x16xf32, #tpu.memory_space<vmem>>, vector<1x16xf32>
    tpu.vector_store %arg6[%c127_766, %c0_767], %1535 {strides = array<i32>} : memref<128x16xf32, #tpu.memory_space<vmem>>, vector<1x16xf32>,
    %c0_768 = arith.constant 0 : index
    %c0_769 = arith.constant 0 : index
    %1537 = vector.load %arg5[%c0_768, %c0_769] : memref<128x16xf32, #tpu.memory_space<vmem>>, vector<128x16xf32>
    %c0_770 = arith.constant 0 : index
    %c0_771 = arith.constant 0 : index
    %1538 = vector.load %arg6[%c0_770, %c0_771] : memref<128x16xf32, #tpu.memory_space<vmem>>, vector<128x16xf32>
    %1539 = arith.mulf %1537, %1538 : vector<128x16xf32>
    %cst = arith.constant dense<0.000000e+00> : vector<128xf32>
    %1540 = vector.multi_reduction <add>, %1539, %cst [1] : vector<128x16xf32> to vector<128xf32>
    %1541 = vector.shape_cast %1540 : vector<128xf32> to vector<128x1xf32>
    %c0_772 = arith.constant 0 : index
    %c0_773 = arith.constant 0 : index
    %1542 = vector.load %arg4[%c0_772, %c0_773] : memref<128x1xf32, #tpu.memory_space<vmem>>, vector<128x1xf32>
    tpu.vector_store %arg4[%c0_772, %c0_773], %1541 {strides = array<i32>} : memref<128x1xf32, #tpu.memory_space<vmem>>, vector<128x1xf32>,
    return
  }
  func.func @transform_0(%arg0: i32, %arg1: memref<128xi32, #tpu.memory_space<smem>>, %arg2: memref<128xi32, #tpu.memory_space<smem>>) -> (i32, i32) {
    %c0_i32 = arith.constant 0 : i32
    %c0_i32_0 = arith.constant 0 : i32
    %c0_i32_1 = arith.constant 0 : i32
    return %c0_i32, %c0_i32_0 : i32, i32
  }
  func.func @transform_1(%arg0: i32, %arg1: memref<128xi32, #tpu.memory_space<smem>>, %arg2: memref<128xi32, #tpu.memory_space<smem>>) -> (i32, i32) {
    %c0_i32 = arith.constant 0 : i32
    %c0_i32_0 = arith.constant 0 : i32
    return %arg0, %c0_i32 : i32, i32
  }
}

</mosaic_0001>

<bundles_post_ra>
// kernel: tpu_custom_call.1
= control target key start
LH: loop header
LB: loop body
LE: loop exit
PB: predicated region body
PF: predicated region fallthrough
CT: control target
= control target key end

     0   :  { %s3309_s0 = inlined_call_operand.vmem [shape: s32[128], index: 0, kind: input, shape index: {}]   ;;  %s3310_s2 = inlined_call_operand.vmem [shape: f32[32,16], index: 2, kind: input, shape index: {}]   ;;  %s3311_s3 = inlined_call_operand.vmem [shape: f32[128,1], index: 3, kind: output, shape index: {}]   ;;  %s3312_s1 = inlined_call_operand.vmem [shape: s32[128], index: 1, kind: input, shape index: {}]  }
   0x1   :  { %s8_s14 = sshll.u32 %s3309_s0, 4  ;;  %s12_s17 = sshll.u32 %s3312_s1, 4  ;;  %s9_s14 = int_to_ptr.vmem [resolvable:$true] %s8_s14  ;;  %s13_s17 = int_to_ptr.vmem [resolvable:$true] %s12_s17 }
   0x2   :  { %s1803_s18 = scalar_lea.vmem %s9_s14, 16  ;;  %p1808_p1 = scmp.lt.s32.totalorder %s9_s14, %s9_s14 }
   0x3   :  { %p1804_p0 = scmp.ne.s32.totalorder %s9_s14, %s1803_s18  ;;  %p1809_p2 = scmp.lt.s32.totalorder %s1803_s18, %s1803_s18 }
   0x5   :  { %p1810_p3 = por %p1809_p2, %p1808_p1 }
   0x7   :  { %p1811_p4 = pnand %p1810_p3, %p1804_p0 }
   0x9   :  { %1814 = shalt.err (!%p1811_p4)  }
   0xa   :  { %s1829_s19 = smov [#allocation5]   ;;  %s1815_s20 = scalar_lea.vmem %s13_s17, 16 }
   0xb   :  { %11 = dma.vmem_to_smem %s9_s14, 16, %s1829_s19, [#allocation4] }
   0xc   :  { %p1816_p5 = scmp.ne.s32.totalorder %s13_s17, %s1815_s20  ;;  %p1820_p6 = scmp.lt.s32.totalorder %s13_s17, %s13_s17 }
   0xd   :  { %p1821_p7 = scmp.lt.s32.totalorder %s1815_s20, %s1815_s20 }
   0xf   :  { %p1822_p8 = por %p1821_p7, %p1820_p6 }
  0x11   :  { %p1823_p9 = pnand %p1822_p8, %p1816_p5 }
  0x13   :  { %1826 = shalt.err (!%p1823_p9)  }
  0x14   :  { %s1830_s0 = smov [#allocation6]  }
  0x15   :  { %15 = dma.vmem_to_smem %s13_s17, 16, %s1830_s0, [#allocation4] }
  0x16   :  { %1827 = dma.done.wait [#allocation4], 32 }
  0x17   :  { %1828 = vsyncadd [#allocation4], 4294967264 }
  0x18   :  { %17 = sfence }
  0x19   :  { %s1577_s1 = sld [smem:[#allocation5 + $0x10]]  ;;  %s1579_s22 = sld [smem:[#allocation5 + $0x11]]  ;;  %vm24_vm0 = vcmask 122880   ;;  %vm1221_vm1 = vcmask 130048   ;;  %vm1270_vm2 = vcmask 7168  }
  0x1a   :  { %s1578_s21 = sld [smem:[#allocation6 + $0x10]]  ;;  %s1580_s23 = sld [smem:[#allocation6 + $0x11]] }
  0x1b   :  { %s1581_s24 = sld [smem:[#allocation5 + $0x12]]  ;;  %s1583_s26 = sld [smem:[#allocation5 + $0x13]] }
  0x1c   :  { %s1582_s25 = sld [smem:[#allocation6 + $0x12]]  ;;  %s1584_s27 = sld [smem:[#allocation6 + $0x13]] }
  0x1d   :  { %s1857_s28 = sld [smem:[#allocation5 + $0x14]]  ;;  %s1861_s30 = sld [smem:[#allocation5 + $0x15]] }
  0x1e   :  { %s1859_s29 = sld [smem:[#allocation6 + $0x14]]  ;;  %s1863_s4 = sld [smem:[#allocation6 + $0x15]] }
  0x1f   :  { %s167_s7 = scalar_lea.vmem %s3310_s2, %s1577_s1  ;;  %s176_s13 = scalar_lea.vmem %s3310_s2, %s1579_s22 }
  0x20   :  { %s171_s10 = scalar_lea.vmem %s3310_s2, %s1578_s21  ;;  %v168_v0 = vld [vmem:[%s167_s7] sm:$0x1]  ;;  %s180_s16 = scalar_lea.vmem %s3310_s2, %s1580_s23 }
  0x21   :  { %v172_v1 = vld [vmem:[%s171_s10] sm:$0x1]  ;;  %169 = vst.msk [vmem:[#allocation2 + $0x10] sm:$0x1] %vm24_vm0, %v168_v0  ;;  %s185_s19 = scalar_lea.vmem %s3310_s2, %s1581_s24  ;;  %s194_s23 = scalar_lea.vmem %s3310_s2, %s1583_s26 }
  0x22   :  { %173 = vst.msk [vmem:[#allocation3 + $0x10] sm:$0x1] %vm24_vm0, %v172_v1  ;;  %v177_v2 = vld [vmem:[%s176_s13] sm:$0x1]  ;;  %s189_s1 = scalar_lea.vmem %s3310_s2, %s1582_s25  ;;  %s198_s24 = scalar_lea.vmem %s3310_s2, %s1584_s27 }
  0x23   :  { %v181_v3 = vld [vmem:[%s180_s16] sm:$0x1]  ;;  %178 = vst.msk [vmem:[#allocation2 + $0x11] sm:$0x1] %vm24_vm0, %v177_v2  ;;  %s203_s8 = scalar_lea.vmem %s3310_s2, %s1857_s28  ;;  %s212_s12 = scalar_lea.vmem %s3310_s2, %s1861_s30 }
  0x24   :  { %182 = vst.msk [vmem:[#allocation3 + $0x11] sm:$0x1] %vm24_vm0, %v181_v3  ;;  %v186_v4 = vld [vmem:[%s185_s19] sm:$0x1]  ;;  %s207_s11 = scalar_lea.vmem %s3310_s2, %s1859_s29  ;;  %s216_s15 = scalar_lea.vmem %s3310_s2, %s1863_s4 }
  0x25   :  { %v190_v5 = vld [vmem:[%s189_s1] sm:$0x1]  ;;  %187 = vst.msk [vmem:[#allocation2 + $0x12] sm:$0x1] %vm24_vm0, %v186_v4  ;;  %s1589_s28 = sld [smem:[#allocation5 + $0x16]]  ;;  %s1591_s16 = sld [smem:[#allocation5 + $0x17]] }
  0x26   :  { %191 = vst.msk [vmem:[#allocation3 + $0x12] sm:$0x1] %vm24_vm0, %v190_v5  ;;  %v195_v6 = vld [vmem:[%s194_s23] sm:$0x1]  ;;  %s1590_s29 = sld [smem:[#allocation6 + $0x16]]  ;;  %s1592_s17 = sld [smem:[#allocation6 + $0x17]] }
  0x27   :  { %v199_v7 = vld [vmem:[%s198_s24] sm:$0x1]  ;;  %196 = vst.msk [vmem:[#allocation2 + $0x13] sm:$0x1] %vm24_vm0, %v195_v6  ;;  %s21_s18 = sld [smem:[#allocation5]]  ;;  %s1547_s19 = sld [smem:[#allocation5 + $0x1]] }
  0x28   :  { %200 = vst.msk [vmem:[#allocation3 + $0x13] sm:$0x1] %vm24_vm0, %v199_v7  ;;  %v204_v8 = vld [vmem:[%s203_s8] sm:$0x1]  ;;  %s26_s30 = sld [smem:[#allocation6]]  ;;  %s1548_s20 = sld [smem:[#allocation6 + $0x1]] }
  0x29   :  { %v208_v9 = vld [vmem:[%s207_s11] sm:$0x1]  ;;  %205 = vst.msk [vmem:[#allocation2 + $0x14] sm:$0x1] %vm24_vm0, %v204_v8  ;;  %s1549_s0 = sld [smem:[#allocation5 + $0x2]]  ;;  %s1919_s1 = sld [smem:[#allocation5 + $0x3]] }
  0x2a   :  { %209 = vst.msk [vmem:[#allocation3 + $0x14] sm:$0x1] %vm24_vm0, %v208_v9  ;;  %v213_v10 = vld [vmem:[%s212_s12] sm:$0x1]  ;;  %s1917_s4 = sld [smem:[#allocation6 + $0x2]]  ;;  %s1924_s5 = sld [smem:[#allocation6 + $0x3]] }
  0x2b   :  { %v217_v11 = vld [vmem:[%s216_s15] sm:$0x1]  ;;  %214 = vst.msk [vmem:[#allocation2 + $0x15] sm:$0x1] %vm24_vm0, %v213_v10  ;;  %s221_s23 = scalar_lea.vmem %s3310_s2, %s1589_s28  ;;  %s230_s9 = scalar_lea.vmem %s3310_s2, %s1591_s16 }
  0x2c   :  { %218 = vst.msk [vmem:[#allocation3 + $0x15] sm:$0x1] %vm24_vm0, %v217_v11  ;;  %v222_v12 = vld [vmem:[%s221_s23] sm:$0x1]  ;;  %s225_s25 = scalar_lea.vmem %s3310_s2, %s1590_s29  ;;  %s234_s26 = scalar_lea.vmem %s3310_s2, %s1592_s17 }
  0x2d   :  { %223 = vst.msk [vmem:[#allocation2 + $0x16] sm:$0x1] %vm24_vm0, %v222_v12  ;;  %v226_v13 = vld [vmem:[%s225_s25] sm:$0x1]  ;;  %s22_s13 = scalar_lea.vmem %s3310_s2, %s21_s18  ;;  %s32_s17 = scalar_lea.vmem %s3310_s2, %s1547_s19 }
  0x2e   :  { %v231_v14 = vld [vmem:[%s230_s9] sm:$0x1]  ;;  %227 = vst.msk [vmem:[#allocation3 + $0x16] sm:$0x1] %vm24_vm0, %v226_v13  ;;  %s27_s28 = scalar_lea.vmem %s3310_s2, %s26_s30  ;;  %s36_s22 = scalar_lea.vmem %s3310_s2, %s1548_s20 }
  0x2f   :  { %232 = vst.msk [vmem:[#allocation2 + $0x17] sm:$0x1] %vm24_vm0, %v231_v14  ;;  %v235_v15 = vld [vmem:[%s234_s26] sm:$0x1]  ;;  %s41_s24 = scalar_lea.vmem %s3310_s2, %s1549_s0  ;;  %s50_s9 = scalar_lea.vmem %s3310_s2, %s1919_s1 }
  0x30   :  { %v23_v16 = vld [vmem:[%s22_s13] sm:$0x1]  ;;  %236 = vst.msk [vmem:[#allocation3 + $0x17] sm:$0x1] %vm24_vm0, %v235_v15  ;;  %s45_s25 = scalar_lea.vmem %s3310_s2, %s1917_s4  ;;  %s54_s10 = scalar_lea.vmem %s3310_s2, %s1924_s5 }
  0x31   :  { %25 = vst.msk [vmem:[#allocation2] sm:$0x1] %vm24_vm0, %v23_v16  ;;  %v28_v17 = vld [vmem:[%s27_s28] sm:$0x1]  ;;  %s1553_s11 = sld [smem:[#allocation5 + $0x4]]  ;;  %s1555_s26 = sld [smem:[#allocation5 + $0x5]] }
  0x32   :  { %v33_v18 = vld [vmem:[%s32_s17] sm:$0x1]  ;;  %29 = vst.msk [vmem:[#allocation3] sm:$0x1] %vm24_vm0, %v28_v17  ;;  %s1554_s4 = sld [smem:[#allocation6 + $0x4]]  ;;  %s1556_s1 = sld [smem:[#allocation6 + $0x5]] }
  0x33   :  { %34 = vst.msk [vmem:[#allocation2 + $0x1] sm:$0x1] %vm24_vm0, %v33_v18  ;;  %v37_v19 = vld [vmem:[%s36_s22] sm:$0x1]  ;;  %s1557_s27 = sld [smem:[#allocation5 + $0x6]]  ;;  %s1976_s13 = sld [smem:[#allocation5 + $0x7]] }
  0x34   :  { %v42_v20 = vld [vmem:[%s41_s24] sm:$0x1]  ;;  %38 = vst.msk [vmem:[#allocation3 + $0x1] sm:$0x1] %vm24_vm0, %v37_v19  ;;  %s1974_s12 = sld [smem:[#allocation6 + $0x6]]  ;;  %s1978_s14 = sld [smem:[#allocation6 + $0x7]] }
  0x35   :  { %43 = vst.msk [vmem:[#allocation2 + $0x2] sm:$0x1] %vm24_vm0, %v42_v20  ;;  %v46_v21 = vld [vmem:[%s45_s25] sm:$0x1]  ;;  %s1980_s5 = sld [smem:[#allocation5 + $0x18]]  ;;  %s1984_s28 = sld [smem:[#allocation5 + $0x19]] }
  0x36   :  { %v51_v22 = vld [vmem:[%s50_s9] sm:$0x1]  ;;  %47 = vst.msk [vmem:[#allocation3 + $0x2] sm:$0x1] %vm24_vm0, %v46_v21  ;;  %v1175_v24 = vld [vmem:[#allocation2 + $0x10] sm:$0xff]  ;;  %s1982_s15 = sld [smem:[#allocation6 + $0x18]] }
  0x37   :  { %52 = vst.msk [vmem:[#allocation2 + $0x3] sm:$0x1] %vm24_vm0, %v51_v22  ;;  %v55_v23 = vld [vmem:[%s54_s10] sm:$0x1]  ;;  %v1191_v25 = vld [vmem:[#allocation3 + $0x10] sm:$0xff]  ;;  %s59_s17 = scalar_lea.vmem %s3310_s2, %s1553_s11  ;;  %s1989_s18 = sld [smem:[#allocation6 + $0x19]] }
  0x38   :  { %56 = vst.msk [vmem:[#allocation3 + $0x3] sm:$0x1] %vm24_vm0, %v55_v23  ;;  %v1207_v26 = vmul.f32 %v1191_v25, %v1175_v24  ;;  %v60_v27 = vld [vmem:[%s59_s17] sm:$0x1]  ;;  %s63_s23 = scalar_lea.vmem %s3310_s2, %s1554_s4  ;;  %s68_s30 = scalar_lea.vmem %s3310_s2, %s1555_s26 }
  0x39   :  { %61 = vst.msk [vmem:[#allocation2 + $0x4] sm:$0x1] %vm24_vm0, %v60_v27  ;;  %v64_v29 = vld [vmem:[%s63_s23] sm:$0x1]  ;;  %s72_s7 = scalar_lea.vmem %s3310_s2, %s1556_s1  ;;  %s77_s20 = scalar_lea.vmem %s3310_s2, %s1557_s27 }
  0x3a   :  { %v1228_v28 = vsel %vm1221_vm1, %v1207_v26, 0.0  ;;  %v69_v30 = vld [vmem:[%s68_s30] sm:$0x1]  ;;  %65 = vst.msk [vmem:[#allocation3 + $0x4] sm:$0x1] %vm24_vm0, %v64_v29  ;;  %s81_s11 = scalar_lea.vmem %s3310_s2, %s1974_s12  ;;  %s86_s1 = scalar_lea.vmem %s3310_s2, %s1976_s13 }
  0x3b   :  { %1229 = vadd.xlane.f32.xlu1 %v1228_v28  ;;  %70 = vst.msk [vmem:[#allocation2 + $0x5] sm:$0x1] %vm24_vm0, %v69_v30  ;;  %v73_v31 = vld [vmem:[%s72_s7] sm:$0x1]  ;;  %s90_s16 = scalar_lea.vmem %s3310_s2, %s1978_s14  ;;  %s239_s22 = scalar_lea.vmem %s3310_s2, %s1980_s5 }
  0x3c   :  { %v78_v32 = vld [vmem:[%s77_s20] sm:$0x1]  ;;  %74 = vst.msk [vmem:[#allocation3 + $0x5] sm:$0x1] %vm24_vm0, %v73_v31  ;;  %s243_s23 = scalar_lea.vmem %s3310_s2, %s1982_s15  ;;  %s248_s30 = scalar_lea.vmem %s3310_s2, %s1984_s28 }
  0x3d   :  { %79 = vst.msk [vmem:[#allocation2 + $0x6] sm:$0x1] %vm24_vm0, %v78_v32  ;;  %v82_v33 = vld [vmem:[%s81_s11] sm:$0x1]  ;;  %s252_s19 = scalar_lea.vmem %s3310_s2, %s1989_s18  ;;  %s1597_s25 = sld [smem:[#allocation5 + $0x1a]] }
  0x3e   :  { %v87_v34 = vld [vmem:[%s86_s1] sm:$0x1]  ;;  %83 = vst.msk [vmem:[#allocation3 + $0x6] sm:$0x1] %vm24_vm0, %v82_v33  ;;  %s1598_s15 = sld [smem:[#allocation6 + $0x1a]]  ;;  %s1599_s7 = sld [smem:[#allocation5 + $0x1b]] }
  0x3f   :  { %88 = vst.msk [vmem:[#allocation2 + $0x7] sm:$0x1] %vm24_vm0, %v87_v34  ;;  %v91_v35 = vld [vmem:[%s90_s16] sm:$0x1]  ;;  %s1600_s28 = sld [smem:[#allocation6 + $0x1b]]  ;;  %s1601_s8 = sld [smem:[#allocation5 + $0x1c]] }
  0x40   :  { %v240_v36 = vld [vmem:[%s239_s22] sm:$0x1]  ;;  %92 = vst.msk [vmem:[#allocation3 + $0x7] sm:$0x1] %vm24_vm0, %v91_v35  ;;  %s1602_s9 = sld [smem:[#allocation6 + $0x1c]]  ;;  %s1603_s20 = sld [smem:[#allocation5 + $0x1d]] }
  0x41   :  { %241 = vst.msk [vmem:[#allocation2 + $0x18] sm:$0x1] %vm24_vm0, %v240_v36  ;;  %v244_v37 = vld [vmem:[%s243_s23] sm:$0x1]  ;;  %s2044_s0 = sld [smem:[#allocation6 + $0x1d]]  ;;  %s2046_s10 = sld [smem:[#allocation5 + $0x1e]] }
  0x42   :  { %v249_v38 = vld [vmem:[%s248_s30] sm:$0x1]  ;;  %245 = vst.msk [vmem:[#allocation3 + $0x18] sm:$0x1] %vm24_vm0, %v244_v37  ;;  %s2048_s11 = sld [smem:[#allocation6 + $0x1e]]  ;;  %s2050_s18 = sld [smem:[#allocation5 + $0x1f]] }
  0x43   :  { %250 = vst.msk [vmem:[#allocation2 + $0x19] sm:$0x1] %vm24_vm0, %v249_v38  ;;  %v253_v39 = vld [vmem:[%s252_s19] sm:$0x1]  ;;  %s257_s1 = scalar_lea.vmem %s3310_s2, %s1597_s25  ;;  %s2055_s27 = sld [smem:[#allocation6 + $0x1f]] }
  0x44   :  { %254 = vst.msk [vmem:[#allocation3 + $0x19] sm:$0x1] %vm24_vm0, %v253_v39  ;;  %v258_v42 = vld [vmem:[%s257_s1] sm:$0x1]  ;;  %s261_s17 = scalar_lea.vmem %s3310_s2, %s1598_s15  ;;  %s266_s12 = scalar_lea.vmem %s3310_s2, %s1599_s7 }
  0x45   :  { %259 = vst.msk [vmem:[#allocation2 + $0x1a] sm:$0x1] %vm24_vm0, %v258_v42  ;;  %v262_v44 = vld [vmem:[%s261_s17] sm:$0x1]  ;;  %s270_s6 = scalar_lea.vmem %s3310_s2, %s1600_s28  ;;  %s275_s14 = scalar_lea.vmem %s3310_s2, %s1601_s8 }
  0x46   :  { %v1173_v40 = vld [vmem:[#allocation2] sm:$0xff]  ;;  %263 = vst.msk [vmem:[#allocation3 + $0x1a] sm:$0x1] %vm24_vm0, %v262_v44  ;;  %s279_s25 = scalar_lea.vmem %s3310_s2, %s1602_s9  ;;  %s284_s28 = scalar_lea.vmem %s3310_s2, %s1603_s20 }
  0x47   :  { %v1189_v41 = vld [vmem:[#allocation3] sm:$0xff]  ;;  %s288_s26 = scalar_lea.vmem %s3310_s2, %s2044_s0  ;;  %s293_s9 = scalar_lea.vmem %s3310_s2, %s2046_s10 }
  0x48   :  { %v1205_v43 = vmul.f32 %v1189_v41, %v1173_v40  ;;  %v267_v45 = vld [vmem:[%s266_s12] sm:$0x1]  ;;  %s297_s17 = scalar_lea.vmem %s3310_s2, %s2048_s11  ;;  %s302_s12 = scalar_lea.vmem %s3310_s2, %s2050_s18 }
  0x49   :  { %268 = vst.msk [vmem:[#allocation2 + $0x1b] sm:$0x1] %vm24_vm0, %v267_v45  ;;  %v271_v46 = vld [vmem:[%s270_s6] sm:$0x1]  ;;  %s306_s13 = scalar_lea.vmem %s3310_s2, %s2055_s27  ;;  %s1561_s23 = sld [smem:[#allocation5 + $0x8]] }
  0x4a   :  { %v276_v47 = vld [vmem:[%s275_s14] sm:$0x1]  ;;  %v1222_v48 = vsel %vm1221_vm1, %v1205_v43, 0.0  ;;  %272 = vst.msk [vmem:[#allocation3 + $0x1b] sm:$0x1] %vm24_vm0, %v271_v46  ;;  %s1562_s11 = sld [smem:[#allocation6 + $0x8]] }
  0x4b   :  { %277 = vst.msk [vmem:[#allocation2 + $0x1c] sm:$0x1] %vm24_vm0, %v276_v47  ;;  %v280_v49 = vld [vmem:[%s279_s25] sm:$0x1]  ;;  %1223 = vadd.xlane.f32.xlu0 %v1222_v48  ;;  %s1563_s6 = sld [smem:[#allocation5 + $0x9]]  ;;  %s1565_s24 = sld [smem:[#allocation5 + $0xa]] }
  0x4c   :  { %v285_v50 = vld [vmem:[%s284_s28] sm:$0x1]  ;;  %281 = vst.msk [vmem:[#allocation3 + $0x1c] sm:$0x1] %vm24_vm0, %v280_v49  ;;  %s1564_s18 = sld [smem:[#allocation6 + $0x9]]  ;;  %s1566_s30 = sld [smem:[#allocation6 + $0xa]] }
  0x4d   :  { %286 = vst.msk [vmem:[#allocation2 + $0x1d] sm:$0x1] %vm24_vm0, %v285_v50  ;;  %v289_v51 = vld [vmem:[%s288_s26] sm:$0x1]  ;;  %s1567_s14 = sld [smem:[#allocation5 + $0xb]]  ;;  %s2110_s19 = sld [smem:[#allocation5 + $0xc]] }
  0x4e   :  { %v294_v52 = vld [vmem:[%s293_s9] sm:$0x1]  ;;  %290 = vst.msk [vmem:[#allocation3 + $0x1d] sm:$0x1] %vm24_vm0, %v289_v51  ;;  %s2108_s5 = sld [smem:[#allocation6 + $0xb]]  ;;  %s2112_s25 = sld [smem:[#allocation6 + $0xc]] }
  0x4f   :  { %295 = vst.msk [vmem:[#allocation2 + $0x1e] sm:$0x1] %vm24_vm0, %v294_v52  ;;  %v298_v53 = vld [vmem:[%s297_s17] sm:$0x1]  ;;  %s2114_s27 = sld [smem:[#allocation5 + $0xd]]  ;;  %s95_s28 = scalar_lea.vmem %s3310_s2, %s1561_s23 }
  0x50   :  { %v303_v54 = vld [vmem:[%s302_s12] sm:$0x1]  ;;  %299 = vst.msk [vmem:[#allocation3 + $0x1e] sm:$0x1] %vm24_vm0, %v298_v53  ;;  %s2119_s8 = sld [smem:[#allocation6 + $0xd]]  ;;  %s99_s1 = scalar_lea.vmem %s3310_s2, %s1562_s11 }
  0x51   :  { %304 = vst.msk [vmem:[#allocation2 + $0x1f] sm:$0x1] %vm24_vm0, %v303_v54  ;;  %v307_v55 = vld [vmem:[%s306_s13] sm:$0x1]  ;;  %s104_s20 = scalar_lea.vmem %s3310_s2, %s1563_s6  ;;  %s113_s0 = scalar_lea.vmem %s3310_s2, %s1565_s24 }
  0x52   :  { %308 = vst.msk [vmem:[#allocation3 + $0x1f] sm:$0x1] %vm24_vm0, %v307_v55  ;;  %v96_v56 = vld [vmem:[%s95_s28] sm:$0x1]  ;;  %s108_s21 = scalar_lea.vmem %s3310_s2, %s1564_s18  ;;  %s117_s23 = scalar_lea.vmem %s3310_s2, %s1566_s30 }
  0x53   :  { %97 = vst.msk [vmem:[#allocation2 + $0x8] sm:$0x1] %vm24_vm0, %v96_v56  ;;  %v100_v58 = vld [vmem:[%s99_s1] sm:$0x1]  ;;  %s122_s18 = scalar_lea.vmem %s3310_s2, %s1567_s14  ;;  %s131_s30 = scalar_lea.vmem %s3310_s2, %s2110_s19 }
  0x54   :  { %v105_v59 = vld [vmem:[%s104_s20] sm:$0x1]  ;;  %101 = vst.msk [vmem:[#allocation3 + $0x8] sm:$0x1] %vm24_vm0, %v100_v58  ;;  %s126_s7 = scalar_lea.vmem %s3310_s2, %s2108_s5  ;;  %s135_s1 = scalar_lea.vmem %s3310_s2, %s2112_s25 }
  0x55   :  { %106 = vst.msk [vmem:[#allocation2 + $0x9] sm:$0x1] %vm24_vm0, %v105_v59  ;;  %v109_v61 = vld [vmem:[%s108_s21] sm:$0x1]  ;;  %s140_s20 = scalar_lea.vmem %s3310_s2, %s2114_s27  ;;  %s1573_s25 = sld [smem:[#allocation5 + $0xe]] }
  0x56   :  { %v114_v62 = vld [vmem:[%s113_s0] sm:$0x1]  ;;  %110 = vst.msk [vmem:[#allocation3 + $0x9] sm:$0x1] %vm24_vm0, %v109_v61  ;;  %s144_s16 = scalar_lea.vmem %s3310_s2, %s2119_s8  ;;  %s1574_s27 = sld [smem:[#allocation6 + $0xe]] }
  0x57   :  { %115 = vst.msk [vmem:[#allocation2 + $0xa] sm:$0x1] %vm24_vm0, %v114_v62  ;;  %v118_v0 = vld [vmem:[%s117_s23] sm:$0x1]  ;;  %s1575_s17 = sld [smem:[#allocation5 + $0xf]]  ;;  %s1625_s22 = sld [smem:[#allocation5 + $0x28]] }
  0x58   :  { %v1176_v57 = vld [vmem:[#allocation2 + $0x18] sm:$0xff]  ;;  %v123_v1 = vld [vmem:[%s122_s18] sm:$0x1]  ;;  %119 = vst.msk [vmem:[#allocation3 + $0xa] sm:$0x1] %vm24_vm0, %v118_v0  ;;  %s1576_s21 = sld [smem:[#allocation6 + $0xf]] }
  0x59   :  { %v1192_v60 = vld [vmem:[#allocation3 + $0x18] sm:$0xff]  ;;  %124 = vst.msk [vmem:[#allocation2 + $0xb] sm:$0x1] %vm24_vm0, %v123_v1  ;;  %v127_v2 = vld [vmem:[%s126_s7] sm:$0x1]  ;;  %s1626_s12 = sld [smem:[#allocation6 + $0x28]] }
  0x5a   :  { %v1208_v63 = vmul.f32 %v1192_v60, %v1176_v57  ;;  %v132_v3 = vld [vmem:[%s131_s30] sm:$0x1]  ;;  %128 = vst.msk [vmem:[#allocation3 + $0xb] sm:$0x1] %vm24_vm0, %v127_v2  ;;  %s1627_s0 = sld [smem:[#allocation5 + $0x29]]  ;;  %s2172_s13 = sld [smem:[#allocation5 + $0x2a]] }
  0x5b   :  { %133 = vst.msk [vmem:[#allocation2 + $0xc] sm:$0x1] %vm24_vm0, %v132_v3  ;;  %v136_v5 = vld [vmem:[%s135_s1] sm:$0x1]  ;;  %s1628_s10 = sld [smem:[#allocation6 + $0x29]]  ;;  %s2174_s23 = sld [smem:[#allocation6 + $0x2a]] }
  0x5c   :  { %v1231_v4 = vsel %vm1221_vm1, %v1208_v63, 0.0  ;;  %v141_v6 = vld [vmem:[%s140_s20] sm:$0x1]  ;;  %137 = vst.msk [vmem:[#allocation3 + $0xc] sm:$0x1] %vm24_vm0, %v136_v5  ;;  %s2176_s8 = sld [smem:[#allocation5 + $0x2b]]  ;;  %s149_s24 = scalar_lea.vmem %s3310_s2, %s1573_s25 }
  0x5d   :  { %1232 = vadd.xlane.f32.xlu1 %v1231_v4  ;;  %142 = vst.msk [vmem:[#allocation2 + $0xd] sm:$0x1] %vm24_vm0, %v141_v6  ;;  %v145_v7 = vld [vmem:[%s144_s16] sm:$0x1]  ;;  %s2178_s11 = sld [smem:[#allocation6 + $0x2b]]  ;;  %s153_s28 = scalar_lea.vmem %s3310_s2, %s1574_s27 }
  0x5e   :  { %146 = vst.msk [vmem:[#allocation3 + $0xd] sm:$0x1] %vm24_vm0, %v145_v7  ;;  %v150_v8 = vld [vmem:[%s149_s24] sm:$0x1]  ;;  %s158_s14 = scalar_lea.vmem %s3310_s2, %s1575_s17  ;;  %s162_s29 = scalar_lea.vmem %s3310_s2, %s1576_s21 }
  0x5f   :  { %v154_v9 = vld [vmem:[%s153_s28] sm:$0x1]  ;;  %151 = vst.msk [vmem:[#allocation2 + $0xe] sm:$0x1] %vm24_vm0, %v150_v8  ;;  %s383_s5 = scalar_lea.vmem %s3310_s2, %s1625_s22  ;;  %s387_s25 = scalar_lea.vmem %s3310_s2, %s1626_s12 }
  0x60   :  { %155 = vst.msk [vmem:[#allocation3 + $0xe] sm:$0x1] %vm24_vm0, %v154_v9  ;;  %v159_v10 = vld [vmem:[%s158_s14] sm:$0x1]  ;;  %s392_s21 = scalar_lea.vmem %s3310_s2, %s1627_s0  ;;  %s401_s15 = scalar_lea.vmem %s3310_s2, %s2172_s13 }
  0x61   :  { %v163_v11 = vld [vmem:[%s162_s29] sm:$0x1]  ;;  %160 = vst.msk [vmem:[#allocation2 + $0xf] sm:$0x1] %vm24_vm0, %v159_v10  ;;  %s396_s22 = scalar_lea.vmem %s3310_s2, %s1628_s10  ;;  %s405_s4 = scalar_lea.vmem %s3310_s2, %s2174_s23 }
  0x62   :  { %164 = vst.msk [vmem:[#allocation3 + $0xf] sm:$0x1] %vm24_vm0, %v163_v11  ;;  %v384_v12 = vld [vmem:[%s383_s5] sm:$0x1]  ;;  %s410_s30 = scalar_lea.vmem %s3310_s2, %s2176_s8  ;;  %s1633_s13 = sld [smem:[#allocation5 + $0x2c]] }
  0x63   :  { %v388_v13 = vld [vmem:[%s387_s25] sm:$0x1]  ;;  %385 = vst.msk [vmem:[#allocation2 + $0x28] sm:$0x1] %vm24_vm0, %v384_v12  ;;  %s414_s1 = scalar_lea.vmem %s3310_s2, %s2178_s11  ;;  %s1634_s23 = sld [smem:[#allocation6 + $0x2c]] }
  0x64   :  { %389 = vst.msk [vmem:[#allocation3 + $0x28] sm:$0x1] %vm24_vm0, %v388_v13  ;;  %v393_v14 = vld [vmem:[%s392_s21] sm:$0x1]  ;;  %s1635_s29 = sld [smem:[#allocation5 + $0x2d]]  ;;  %s1637_s20 = sld [smem:[#allocation5 + $0x2e]] }
  0x65   :  { %v397_v15 = vld [vmem:[%s396_s22] sm:$0x1]  ;;  %394 = vst.msk [vmem:[#allocation2 + $0x29] sm:$0x1] %vm24_vm0, %v393_v14  ;;  %s1636_s9 = sld [smem:[#allocation6 + $0x2d]]  ;;  %s2232_s8 = sld [smem:[#allocation6 + $0x2e]] }
  0x66   :  { %398 = vst.msk [vmem:[#allocation3 + $0x29] sm:$0x1] %vm24_vm0, %v397_v15  ;;  %v402_v16 = vld [vmem:[%s401_s15] sm:$0x1]  ;;  %s2234_s5 = sld [smem:[#allocation5 + $0x2f]]  ;;  %s2238_s19 = sld [smem:[#allocation5 + $0x20]] }
  0x67   :  { %v406_v17 = vld [vmem:[%s405_s4] sm:$0x1]  ;;  %403 = vst.msk [vmem:[#allocation2 + $0x2a] sm:$0x1] %vm24_vm0, %v402_v16  ;;  %s2236_s11 = sld [smem:[#allocation6 + $0x2f]]  ;;  %s2240_s16 = sld [smem:[#allocation6 + $0x20]] }
  0x68   :  { %407 = vst.msk [vmem:[#allocation3 + $0x2a] sm:$0x1] %vm24_vm0, %v406_v17  ;;  %v411_v18 = vld [vmem:[%s410_s30] sm:$0x1]  ;;  %v1174_v20 = vld [vmem:[#allocation2 + $0x8] sm:$0xff]  ;;  %s2242_s25 = sld [smem:[#allocation5 + $0x21]]  ;;  %s419_s21 = scalar_lea.vmem %s3310_s2, %s1633_s13 }
  0x69   :  { %v415_v19 = vld [vmem:[%s414_s1] sm:$0x1]  ;;  %412 = vst.msk [vmem:[#allocation2 + $0x2b] sm:$0x1] %vm24_vm0, %v411_v18  ;;  %v1190_v21 = vld [vmem:[#allocation3 + $0x8] sm:$0xff]  ;;  %s2247_s6 = sld [smem:[#allocation6 + $0x21]]  ;;  %s423_s12 = scalar_lea.vmem %s3310_s2, %s1634_s23 }
  0x6a   :  { %416 = vst.msk [vmem:[#allocation3 + $0x2b] sm:$0x1] %vm24_vm0, %v415_v19  ;;  %v1206_v22 = vmul.f32 %v1190_v21, %v1174_v20  ;;  %v420_v24 = vld [vmem:[%s419_s21] sm:$0x1]  ;;  %s428_s7 = scalar_lea.vmem %s3310_s2, %s1635_s29  ;;  %s437_s14 = scalar_lea.vmem %s3310_s2, %s1637_s20 }
  0x6b   :  { %421 = vst.msk [vmem:[#allocation2 + $0x2c] sm:$0x1] %vm24_vm0, %v420_v24  ;;  %v424_v25 = vld [vmem:[%s423_s12] sm:$0x1]  ;;  %s432_s0 = scalar_lea.vmem %s3310_s2, %s1636_s9  ;;  %s441_s13 = scalar_lea.vmem %s3310_s2, %s2232_s8 }
  0x6c   :  { %v1225_v23 = vsel %vm1221_vm1, %v1206_v22, 0.0  ;;  %v429_v26 = vld [vmem:[%s428_s7] sm:$0x1]  ;;  %425 = vst.msk [vmem:[#allocation3 + $0x2c] sm:$0x1] %vm24_vm0, %v424_v25  ;;  %s446_s9 = scalar_lea.vmem %s3310_s2, %s2234_s5  ;;  %s311_s22 = scalar_lea.vmem %s3310_s2, %s2238_s19 }
  0x6d   :  { %1226 = vadd.xlane.f32.xlu0 %v1225_v23  ;;  %430 = vst.msk [vmem:[#allocation2 + $0x2d] sm:$0x1] %vm24_vm0, %v429_v26  ;;  %v433_v27 = vld [vmem:[%s432_s0] sm:$0x1]  ;;  %s450_s17 = scalar_lea.vmem %s3310_s2, %s2236_s11  ;;  %s315_s12 = scalar_lea.vmem %s3310_s2, %s2240_s16 }
  0x6e   :  { %v438_v28 = vld [vmem:[%s437_s14] sm:$0x1]  ;;  %434 = vst.msk [vmem:[#allocation3 + $0x2d] sm:$0x1] %vm24_vm0, %v433_v27  ;;  %s320_s7 = scalar_lea.vmem %s3310_s2, %s2242_s25  ;;  %s1613_s4 = sld [smem:[#allocation5 + $0x22]] }
  0x6f   :  { %439 = vst.msk [vmem:[#allocation2 + $0x2e] sm:$0x1] %vm24_vm0, %v438_v28  ;;  %v442_v29 = vld [vmem:[%s441_s13] sm:$0x1]  ;;  %s324_s28 = scalar_lea.vmem %s3310_s2, %s2247_s6  ;;  %s1614_s16 = sld [smem:[#allocation6 + $0x22]] }
  0x70   :  { %v447_v30 = vld [vmem:[%s446_s9] sm:$0x1]  ;;  %443 = vst.msk [vmem:[#allocation3 + $0x2e] sm:$0x1] %vm24_vm0, %v442_v29  ;;  %s1615_s0 = sld [smem:[#allocation5 + $0x23]]  ;;  %s1617_s10 = sld [smem:[#allocation5 + $0x24]] }
  0x71   :  { %448 = vst.msk [vmem:[#allocation2 + $0x2f] sm:$0x1] %vm24_vm0, %v447_v30  ;;  %v451_v31 = vld [vmem:[%s450_s17] sm:$0x1]  ;;  %s1616_s25 = sld [smem:[#allocation6 + $0x23]]  ;;  %s1618_s30 = sld [smem:[#allocation6 + $0x24]] }
  0x72   :  { %v312_v32 = vld [vmem:[%s311_s22] sm:$0x1]  ;;  %452 = vst.msk [vmem:[#allocation3 + $0x2f] sm:$0x1] %vm24_vm0, %v451_v31  ;;  %s1619_s14 = sld [smem:[#allocation5 + $0x25]]  ;;  %s2304_s1 = sld [smem:[#allocation5 + $0x26]] }
  0x73   :  { %313 = vst.msk [vmem:[#allocation2 + $0x20] sm:$0x1] %vm24_vm0, %v312_v32  ;;  %v316_v33 = vld [vmem:[%s315_s12] sm:$0x1]  ;;  %s2302_s26 = sld [smem:[#allocation6 + $0x25]]  ;;  %s2306_s13 = sld [smem:[#allocation6 + $0x26]] }
  0x74   :  { %v321_v34 = vld [vmem:[%s320_s7] sm:$0x1]  ;;  %317 = vst.msk [vmem:[#allocation3 + $0x20] sm:$0x1] %vm24_vm0, %v316_v33  ;;  %s2308_s6 = sld [smem:[#allocation5 + $0x27]]  ;;  %s329_s9 = scalar_lea.vmem %s3310_s2, %s1613_s4 }
  0x75   :  { %322 = vst.msk [vmem:[#allocation2 + $0x21] sm:$0x1] %vm24_vm0, %v321_v34  ;;  %v325_v35 = vld [vmem:[%s324_s28] sm:$0x1]  ;;  %s2313_s20 = sld [smem:[#allocation6 + $0x27]]  ;;  %s333_s21 = scalar_lea.vmem %s3310_s2, %s1614_s16 }
  0x76   :  { %326 = vst.msk [vmem:[#allocation3 + $0x21] sm:$0x1] %vm24_vm0, %v325_v35  ;;  %v330_v38 = vld [vmem:[%s329_s9] sm:$0x1]  ;;  %s338_s8 = scalar_lea.vmem %s3310_s2, %s1615_s0  ;;  %s347_s11 = scalar_lea.vmem %s3310_s2, %s1617_s10 }
  0x77   :  { %331 = vst.msk [vmem:[#allocation2 + $0x22] sm:$0x1] %vm24_vm0, %v330_v38  ;;  %v334_v40 = vld [vmem:[%s333_s21] sm:$0x1]  ;;  %s342_s24 = scalar_lea.vmem %s3310_s2, %s1616_s25  ;;  %s351_s4 = scalar_lea.vmem %s3310_s2, %s1618_s30 }
  0x78   :  { %v1178_v36 = vld [vmem:[#allocation2 + $0x28] sm:$0xff]  ;;  %v339_v41 = vld [vmem:[%s338_s8] sm:$0x1]  ;;  %335 = vst.msk [vmem:[#allocation3 + $0x22] sm:$0x1] %vm24_vm0, %v334_v40  ;;  %s356_s25 = scalar_lea.vmem %s3310_s2, %s1619_s14  ;;  %s365_s30 = scalar_lea.vmem %s3310_s2, %s2304_s1 }
  0x79   :  { %v1194_v37 = vld [vmem:[#allocation3 + $0x28] sm:$0xff]  ;;  %340 = vst.msk [vmem:[#allocation2 + $0x23] sm:$0x1] %vm24_vm0, %v339_v41  ;;  %v343_v42 = vld [vmem:[%s342_s24] sm:$0x1]  ;;  %s360_s29 = scalar_lea.vmem %s3310_s2, %s2302_s26  ;;  %s369_s21 = scalar_lea.vmem %s3310_s2, %s2306_s13 }
  0x7a   :  { %v1210_v39 = vmul.f32 %v1194_v37, %v1178_v36  ;;  %v348_v43 = vld [vmem:[%s347_s11] sm:$0x1]  ;;  %344 = vst.msk [vmem:[#allocation3 + $0x23] sm:$0x1] %vm24_vm0, %v343_v42  ;;  %s374_s8 = scalar_lea.vmem %s3310_s2, %s2308_s6  ;;  %s1657_s12 = sld [smem:[#allocation5 + $0x38]] }
  0x7b   :  { %349 = vst.msk [vmem:[#allocation2 + $0x24] sm:$0x1] %vm24_vm0, %v348_v43  ;;  %v352_v45 = vld [vmem:[%s351_s4] sm:$0x1]  ;;  %s378_s5 = scalar_lea.vmem %s3310_s2, %s2313_s20  ;;  %s1658_s13 = sld [smem:[#allocation6 + $0x38]] }
  0x7c   :  { %v1237_v44 = vsel %vm1221_vm1, %v1210_v39, 0.0  ;;  %v357_v46 = vld [vmem:[%s356_s25] sm:$0x1]  ;;  %353 = vst.msk [vmem:[#allocation3 + $0x24] sm:$0x1] %vm24_vm0, %v352_v45  ;;  %s1659_s24 = sld [smem:[#allocation5 + $0x39]] }
  0x7d   :  { %1238 = vadd.xlane.f32.xlu1 %v1237_v44  ;;  %358 = vst.msk [vmem:[#allocation2 + $0x25] sm:$0x1] %vm24_vm0, %v357_v46  ;;  %v361_v47 = vld [vmem:[%s360_s29] sm:$0x1]  ;;  %s1660_s6 = sld [smem:[#allocation6 + $0x39]]  ;;  %s1661_s15 = sld [smem:[#allocation5 + $0x3a]] }
  0x7e   :  { %v366_v48 = vld [vmem:[%s365_s30] sm:$0x1]  ;;  %362 = vst.msk [vmem:[#allocation3 + $0x25] sm:$0x1] %vm24_vm0, %v361_v47  ;;  %s1662_s7 = sld [smem:[#allocation6 + $0x3a]]  ;;  %s1663_s11 = sld [smem:[#allocation5 + $0x3b]] }
  0x7f   :  { %367 = vst.msk [vmem:[#allocation2 + $0x26] sm:$0x1] %vm24_vm0, %v366_v48  ;;  %v370_v49 = vld [vmem:[%s369_s21] sm:$0x1]  ;;  %s2366_s19 = sld [smem:[#allocation6 + $0x3b]]  ;;  %s2368_s28 = sld [smem:[#allocation5 + $0x3c]] }
  0x80   :  { %v375_v50 = vld [vmem:[%s374_s8] sm:$0x1]  ;;  %371 = vst.msk [vmem:[#allocation3 + $0x26] sm:$0x1] %vm24_vm0, %v370_v49  ;;  %s2370_s4 = sld [smem:[#allocation6 + $0x3c]]  ;;  %s2372_s20 = sld [smem:[#allocation5 + $0x3d]] }
  0x81   :  { %376 = vst.msk [vmem:[#allocation2 + $0x27] sm:$0x1] %vm24_vm0, %v375_v50  ;;  %v379_v51 = vld [vmem:[%s378_s5] sm:$0x1]  ;;  %s527_s25 = scalar_lea.vmem %s3310_s2, %s1657_s12  ;;  %s2377_s10 = sld [smem:[#allocation6 + $0x3d]] }
  0x82   :  { %380 = vst.msk [vmem:[#allocation3 + $0x27] sm:$0x1] %vm24_vm0, %v379_v51  ;;  %v528_v52 = vld [vmem:[%s527_s25] sm:$0x1]  ;;  %s531_s9 = scalar_lea.vmem %s3310_s2, %s1658_s13  ;;  %s536_s14 = scalar_lea.vmem %s3310_s2, %s1659_s24 }
  0x83   :  { %529 = vst.msk [vmem:[#allocation2 + $0x38] sm:$0x1] %vm24_vm0, %v528_v52  ;;  %v532_v54 = vld [vmem:[%s531_s9] sm:$0x1]  ;;  %s540_s18 = scalar_lea.vmem %s3310_s2, %s1660_s6  ;;  %s545_s26 = scalar_lea.vmem %s3310_s2, %s1661_s15 }
  0x84   :  { %v537_v55 = vld [vmem:[%s536_s14] sm:$0x1]  ;;  %533 = vst.msk [vmem:[#allocation3 + $0x38] sm:$0x1] %vm24_vm0, %v532_v54  ;;  %s549_s12 = scalar_lea.vmem %s3310_s2, %s1662_s7  ;;  %s554_s6 = scalar_lea.vmem %s3310_s2, %s1663_s11 }
  0x85   :  { %538 = vst.msk [vmem:[#allocation2 + $0x39] sm:$0x1] %vm24_vm0, %v537_v55  ;;  %v541_v57 = vld [vmem:[%s540_s18] sm:$0x1]  ;;  %s558_s0 = scalar_lea.vmem %s3310_s2, %s2366_s19  ;;  %s563_s7 = scalar_lea.vmem %s3310_s2, %s2368_s28 }
  0x86   :  { %v546_v58 = vld [vmem:[%s545_s26] sm:$0x1]  ;;  %542 = vst.msk [vmem:[#allocation3 + $0x39] sm:$0x1] %vm24_vm0, %v541_v57  ;;  %s567_s9 = scalar_lea.vmem %s3310_s2, %s2370_s4  ;;  %s572_s14 = scalar_lea.vmem %s3310_s2, %s2372_s20 }
  0x87   :  { %547 = vst.msk [vmem:[#allocation2 + $0x3a] sm:$0x1] %vm24_vm0, %v546_v58  ;;  %v550_v60 = vld [vmem:[%s549_s12] sm:$0x1]  ;;  %s576_s17 = scalar_lea.vmem %s3310_s2, %s2377_s10  ;;  %s1669_s4 = sld [smem:[#allocation5 + $0x3e]] }
  0x88   :  { %v1177_v53 = vld [vmem:[#allocation2 + $0x20] sm:$0xff]  ;;  %551 = vst.msk [vmem:[#allocation3 + $0x3a] sm:$0x1] %vm24_vm0, %v550_v60  ;;  %s1670_s20 = sld [smem:[#allocation6 + $0x3e]]  ;;  %s1671_s21 = sld [smem:[#allocation5 + $0x3f]] }
  0x89   :  { %v1193_v56 = vld [vmem:[#allocation3 + $0x20] sm:$0xff]  ;;  %s1672_s18 = sld [smem:[#allocation6 + $0x3f]]  ;;  %s1641_s22 = sld [smem:[#allocation5 + $0x30]] }
  0x8a   :  { %v1209_v59 = vmul.f32 %v1193_v56, %v1177_v53  ;;  %v555_v61 = vld [vmem:[%s554_s6] sm:$0x1]  ;;  %s1642_s8 = sld [smem:[#allocation6 + $0x30]]  ;;  %s1643_s26 = sld [smem:[#allocation5 + $0x31]] }
  0x8b   :  { %556 = vst.msk [vmem:[#allocation2 + $0x3b] sm:$0x1] %vm24_vm0, %v555_v61  ;;  %v559_v62 = vld [vmem:[%s558_s0] sm:$0x1]  ;;  %s1644_s1 = sld [smem:[#allocation6 + $0x31]]  ;;  %s2430_s5 = sld [smem:[#allocation5 + $0x32]] }
  0x8c   :  { %v564_v63 = vld [vmem:[%s563_s7] sm:$0x1]  ;;  %v1234_v0 = vsel %vm1221_vm1, %v1209_v59, 0.0  ;;  %560 = vst.msk [vmem:[#allocation3 + $0x3b] sm:$0x1] %vm24_vm0, %v559_v62  ;;  %s2432_s12 = sld [smem:[#allocation6 + $0x32]] }
  0x8d   :  { %565 = vst.msk [vmem:[#allocation2 + $0x3c] sm:$0x1] %vm24_vm0, %v564_v63  ;;  %v568_v1 = vld [vmem:[%s567_s9] sm:$0x1]  ;;  %1235 = vadd.xlane.f32.xlu0 %v1234_v0  ;;  %s2434_s10 = sld [smem:[#allocation5 + $0x33]]  ;;  %s581_s15 = scalar_lea.vmem %s3310_s2, %s1669_s4 }
  0x8e   :  { %v573_v2 = vld [vmem:[%s572_s14] sm:$0x1]  ;;  %569 = vst.msk [vmem:[#allocation3 + $0x3c] sm:$0x1] %vm24_vm0, %v568_v1  ;;  %s2436_s13 = sld [smem:[#allocation6 + $0x33]]  ;;  %s585_s25 = scalar_lea.vmem %s3310_s2, %s1670_s20 }
  0x8f   :  { %574 = vst.msk [vmem:[#allocation2 + $0x3d] sm:$0x1] %vm24_vm0, %v573_v2  ;;  %v577_v3 = vld [vmem:[%s576_s17] sm:$0x1]  ;;  %s590_s11 = scalar_lea.vmem %s3310_s2, %s1671_s21  ;;  %s594_s27 = scalar_lea.vmem %s3310_s2, %s1672_s18 }
  0x90   :  { %578 = vst.msk [vmem:[#allocation3 + $0x3d] sm:$0x1] %vm24_vm0, %v577_v3  ;;  %v582_v4 = vld [vmem:[%s581_s15] sm:$0x1]  ;;  %s455_s19 = scalar_lea.vmem %s3310_s2, %s1641_s22  ;;  %s459_s4 = scalar_lea.vmem %s3310_s2, %s1642_s8 }
  0x91   :  { %v586_v5 = vld [vmem:[%s585_s25] sm:$0x1]  ;;  %583 = vst.msk [vmem:[#allocation2 + $0x3e] sm:$0x1] %vm24_vm0, %v582_v4  ;;  %s464_s18 = scalar_lea.vmem %s3310_s2, %s1643_s26  ;;  %s468_s22 = scalar_lea.vmem %s3310_s2, %s1644_s1 }
  0x92   :  { %587 = vst.msk [vmem:[#allocation3 + $0x3e] sm:$0x1] %vm24_vm0, %v586_v5  ;;  %v591_v6 = vld [vmem:[%s590_s11] sm:$0x1]  ;;  %s473_s16 = scalar_lea.vmem %s3310_s2, %s2430_s5  ;;  %s477_s23 = scalar_lea.vmem %s3310_s2, %s2432_s12 }
  0x93   :  { %v595_v7 = vld [vmem:[%s594_s27] sm:$0x1]  ;;  %592 = vst.msk [vmem:[#allocation2 + $0x3f] sm:$0x1] %vm24_vm0, %v591_v6  ;;  %s482_s7 = scalar_lea.vmem %s3310_s2, %s2434_s10  ;;  %s1649_s5 = sld [smem:[#allocation5 + $0x34]] }
  0x94   :  { %596 = vst.msk [vmem:[#allocation3 + $0x3f] sm:$0x1] %vm24_vm0, %v595_v7  ;;  %v456_v8 = vld [vmem:[%s455_s19] sm:$0x1]  ;;  %s486_s9 = scalar_lea.vmem %s3310_s2, %s2436_s13  ;;  %s1650_s12 = sld [smem:[#allocation6 + $0x34]] }
  0x95   :  { %v460_v9 = vld [vmem:[%s459_s4] sm:$0x1]  ;;  %457 = vst.msk [vmem:[#allocation2 + $0x30] sm:$0x1] %vm24_vm0, %v456_v8  ;;  %s1651_s27 = sld [smem:[#allocation5 + $0x35]]  ;;  %s1653_s14 = sld [smem:[#allocation5 + $0x36]] }
  0x96   :  { %461 = vst.msk [vmem:[#allocation3 + $0x30] sm:$0x1] %vm24_vm0, %v460_v9  ;;  %v465_v10 = vld [vmem:[%s464_s18] sm:$0x1]  ;;  %s1652_s30 = sld [smem:[#allocation6 + $0x35]]  ;;  %s2490_s10 = sld [smem:[#allocation6 + $0x36]] }
  0x97   :  { %v469_v11 = vld [vmem:[%s468_s22] sm:$0x1]  ;;  %466 = vst.msk [vmem:[#allocation2 + $0x31] sm:$0x1] %vm24_vm0, %v465_v10  ;;  %s2492_s19 = sld [smem:[#allocation5 + $0x37]]  ;;  %s2496_s28 = sld [smem:[#allocation5 + $0x48]] }
  0x98   :  { %470 = vst.msk [vmem:[#allocation3 + $0x31] sm:$0x1] %vm24_vm0, %v469_v11  ;;  %v474_v12 = vld [vmem:[%s473_s16] sm:$0x1]  ;;  %s2494_s13 = sld [smem:[#allocation6 + $0x37]]  ;;  %s2498_s17 = sld [smem:[#allocation6 + $0x48]] }
  0x99   :  { %v478_v13 = vld [vmem:[%s477_s23] sm:$0x1]  ;;  %475 = vst.msk [vmem:[#allocation2 + $0x32] sm:$0x1] %vm24_vm0, %v474_v12  ;;  %s2500_s4 = sld [smem:[#allocation5 + $0x49]]  ;;  %s491_s18 = scalar_lea.vmem %s3310_s2, %s1649_s5 }
  0x9a   :  { %479 = vst.msk [vmem:[#allocation3 + $0x32] sm:$0x1] %vm24_vm0, %v478_v13  ;;  %v483_v14 = vld [vmem:[%s482_s7] sm:$0x1]  ;;  %v1180_v16 = vld [vmem:[#allocation2 + $0x38] sm:$0xff]  ;;  %s2505_s24 = sld [smem:[#allocation6 + $0x49]]  ;;  %s495_s8 = scalar_lea.vmem %s3310_s2, %s1650_s12 }
  0x9b   :  { %v487_v15 = vld [vmem:[%s486_s9] sm:$0x1]  ;;  %484 = vst.msk [vmem:[#allocation2 + $0x33] sm:$0x1] %vm24_vm0, %v483_v14  ;;  %v1196_v17 = vld [vmem:[#allocation3 + $0x38] sm:$0xff]  ;;  %s500_s0 = scalar_lea.vmem %s3310_s2, %s1651_s27  ;;  %s509_s11 = scalar_lea.vmem %s3310_s2, %s1653_s14 }
  0x9c   :  { %488 = vst.msk [vmem:[#allocation3 + $0x33] sm:$0x1] %vm24_vm0, %v487_v15  ;;  %v1212_v18 = vmul.f32 %v1196_v17, %v1180_v16  ;;  %v492_v20 = vld [vmem:[%s491_s18] sm:$0x1]  ;;  %s504_s26 = scalar_lea.vmem %s3310_s2, %s1652_s30  ;;  %s513_s5 = scalar_lea.vmem %s3310_s2, %s2490_s10 }
  0x9d   :  { %493 = vst.msk [vmem:[#allocation2 + $0x34] sm:$0x1] %vm24_vm0, %v492_v20  ;;  %v496_v21 = vld [vmem:[%s495_s8] sm:$0x1]  ;;  %s518_s30 = scalar_lea.vmem %s3310_s2, %s2492_s19  ;;  %s671_s22 = scalar_lea.vmem %s3310_s2, %s2496_s28 }
  0x9e   :  { %v1243_v19 = vsel %vm1221_vm1, %v1212_v18, 0.0  ;;  %v501_v22 = vld [vmem:[%s500_s0] sm:$0x1]  ;;  %497 = vst.msk [vmem:[#allocation3 + $0x34] sm:$0x1] %vm24_vm0, %v496_v21  ;;  %s522_s21 = scalar_lea.vmem %s3310_s2, %s2494_s13  ;;  %s675_s8 = scalar_lea.vmem %s3310_s2, %s2498_s17 }
  0x9f   :  { %1244 = vadd.xlane.f32.xlu1 %v1243_v19  ;;  %502 = vst.msk [vmem:[#allocation2 + $0x35] sm:$0x1] %vm24_vm0, %v501_v22  ;;  %v505_v23 = vld [vmem:[%s504_s26] sm:$0x1]  ;;  %s680_s0 = scalar_lea.vmem %s3310_s2, %s2500_s4  ;;  %s1693_s23 = sld [smem:[#allocation5 + $0x4a]] }
  0xa0   :  { %v510_v24 = vld [vmem:[%s509_s11] sm:$0x1]  ;;  %506 = vst.msk [vmem:[#allocation3 + $0x35] sm:$0x1] %vm24_vm0, %v505_v23  ;;  %s684_s25 = scalar_lea.vmem %s3310_s2, %s2505_s24  ;;  %s1694_s17 = sld [smem:[#allocation6 + $0x4a]] }
  0xa1   :  { %511 = vst.msk [vmem:[#allocation2 + $0x36] sm:$0x1] %vm24_vm0, %v510_v24  ;;  %v514_v25 = vld [vmem:[%s513_s5] sm:$0x1]  ;;  %s1695_s26 = sld [smem:[#allocation5 + $0x4b]]  ;;  %s1697_s1 = sld [smem:[#allocation5 + $0x4c]] }
  0xa2   :  { %v519_v26 = vld [vmem:[%s518_s30] sm:$0x1]  ;;  %515 = vst.msk [vmem:[#allocation3 + $0x36] sm:$0x1] %vm24_vm0, %v514_v25  ;;  %s1696_s4 = sld [smem:[#allocation6 + $0x4b]]  ;;  %s1698_s7 = sld [smem:[#allocation6 + $0x4c]] }
  0xa3   :  { %520 = vst.msk [vmem:[#allocation2 + $0x37] sm:$0x1] %vm24_vm0, %v519_v26  ;;  %v523_v27 = vld [vmem:[%s522_s21] sm:$0x1]  ;;  %s1699_s11 = sld [smem:[#allocation5 + $0x4d]]  ;;  %s2562_s9 = sld [smem:[#allocation5 + $0x4e]] }
  0xa4   :  { %v672_v28 = vld [vmem:[%s671_s22] sm:$0x1]  ;;  %524 = vst.msk [vmem:[#allocation3 + $0x37] sm:$0x1] %vm24_vm0, %v523_v27  ;;  %s2560_s29 = sld [smem:[#allocation6 + $0x4d]]  ;;  %s2564_s5 = sld [smem:[#allocation6 + $0x4e]] }
  0xa5   :  { %673 = vst.msk [vmem:[#allocation2 + $0x48] sm:$0x1] %vm24_vm0, %v672_v28  ;;  %v676_v29 = vld [vmem:[%s675_s8] sm:$0x1]  ;;  %s2566_s24 = sld [smem:[#allocation5 + $0x4f]]  ;;  %s689_s30 = scalar_lea.vmem %s3310_s2, %s1693_s23 }
  0xa6   :  { %v681_v30 = vld [vmem:[%s680_s0] sm:$0x1]  ;;  %677 = vst.msk [vmem:[#allocation3 + $0x48] sm:$0x1] %vm24_vm0, %v676_v29  ;;  %s2571_s14 = sld [smem:[#allocation6 + $0x4f]]  ;;  %s693_s18 = scalar_lea.vmem %s3310_s2, %s1694_s17 }
  0xa7   :  { %682 = vst.msk [vmem:[#allocation2 + $0x49] sm:$0x1] %vm24_vm0, %v681_v30  ;;  %v685_v31 = vld [vmem:[%s684_s25] sm:$0x1]  ;;  %s698_s10 = scalar_lea.vmem %s3310_s2, %s1695_s26  ;;  %s707_s13 = scalar_lea.vmem %s3310_s2, %s1697_s1 }
  0xa8   :  { %686 = vst.msk [vmem:[#allocation3 + $0x49] sm:$0x1] %vm24_vm0, %v685_v31  ;;  %v690_v34 = vld [vmem:[%s689_s30] sm:$0x1]  ;;  %s702_s15 = scalar_lea.vmem %s3310_s2, %s1696_s4  ;;  %s711_s23 = scalar_lea.vmem %s3310_s2, %s1698_s7 }
  0xa9   :  { %691 = vst.msk [vmem:[#allocation2 + $0x4a] sm:$0x1] %vm24_vm0, %v690_v34  ;;  %v694_v36 = vld [vmem:[%s693_s18] sm:$0x1]  ;;  %s716_s4 = scalar_lea.vmem %s3310_s2, %s1699_s11  ;;  %s725_s7 = scalar_lea.vmem %s3310_s2, %s2562_s9 }
  0xaa   :  { %v1179_v32 = vld [vmem:[#allocation2 + $0x30] sm:$0xff]  ;;  %v699_v37 = vld [vmem:[%s698_s10] sm:$0x1]  ;;  %695 = vst.msk [vmem:[#allocation3 + $0x4a] sm:$0x1] %vm24_vm0, %v694_v36  ;;  %s720_s27 = scalar_lea.vmem %s3310_s2, %s2560_s29  ;;  %s729_s18 = scalar_lea.vmem %s3310_s2, %s2564_s5 }
  0xab   :  { %v1195_v33 = vld [vmem:[#allocation3 + $0x30] sm:$0xff]  ;;  %700 = vst.msk [vmem:[#allocation2 + $0x4b] sm:$0x1] %vm24_vm0, %v699_v37  ;;  %v703_v38 = vld [vmem:[%s702_s15] sm:$0x1]  ;;  %s734_s10 = scalar_lea.vmem %s3310_s2, %s2566_s24  ;;  %s1673_s8 = sld [smem:[#allocation5 + $0x40]] }
  0xac   :  { %v1211_v35 = vmul.f32 %v1195_v33, %v1179_v32  ;;  %v708_v39 = vld [vmem:[%s707_s13] sm:$0x1]  ;;  %704 = vst.msk [vmem:[#allocation3 + $0x4b] sm:$0x1] %vm24_vm0, %v703_v38  ;;  %s738_s19 = scalar_lea.vmem %s3310_s2, %s2571_s14  ;;  %s1674_s5 = sld [smem:[#allocation6 + $0x40]] }
  0xad   :  { %709 = vst.msk [vmem:[#allocation2 + $0x4c] sm:$0x1] %vm24_vm0, %v708_v39  ;;  %v712_v41 = vld [vmem:[%s711_s23] sm:$0x1]  ;;  %s1675_s15 = sld [smem:[#allocation5 + $0x41]]  ;;  %s1677_s16 = sld [smem:[#allocation5 + $0x42]] }
  0xae   :  { %v1240_v40 = vsel %vm1221_vm1, %v1211_v35, 0.0  ;;  %v717_v42 = vld [vmem:[%s716_s4] sm:$0x1]  ;;  %713 = vst.msk [vmem:[#allocation3 + $0x4c] sm:$0x1] %vm24_vm0, %v712_v41  ;;  %s1676_s24 = sld [smem:[#allocation6 + $0x41]] }
  0xaf   :  { %1241 = vadd.xlane.f32.xlu0 %v1240_v40  ;;  %718 = vst.msk [vmem:[#allocation2 + $0x4d] sm:$0x1] %vm24_vm0, %v717_v42  ;;  %v721_v43 = vld [vmem:[%s720_s27] sm:$0x1]  ;;  %s1678_s0 = sld [smem:[#allocation6 + $0x42]]  ;;  %s1679_s13 = sld [smem:[#allocation5 + $0x43]] }
  0xb0   :  { %v726_v44 = vld [vmem:[%s725_s7] sm:$0x1]  ;;  %722 = vst.msk [vmem:[#allocation3 + $0x4d] sm:$0x1] %vm24_vm0, %v721_v43  ;;  %s2624_s28 = sld [smem:[#allocation6 + $0x43]]  ;;  %s2626_s25 = sld [smem:[#allocation5 + $0x44]] }
  0xb1   :  { %727 = vst.msk [vmem:[#allocation2 + $0x4e] sm:$0x1] %vm24_vm0, %v726_v44  ;;  %v730_v45 = vld [vmem:[%s729_s18] sm:$0x1]  ;;  %s2628_s23 = sld [smem:[#allocation6 + $0x44]]  ;;  %s2630_s14 = sld [smem:[#allocation5 + $0x45]] }
  0xb2   :  { %v735_v46 = vld [vmem:[%s734_s10] sm:$0x1]  ;;  %731 = vst.msk [vmem:[#allocation3 + $0x4e] sm:$0x1] %vm24_vm0, %v730_v45  ;;  %s599_s4 = scalar_lea.vmem %s3310_s2, %s1673_s8  ;;  %s2635_s1 = sld [smem:[#allocation6 + $0x45]] }
  0xb3   :  { %736 = vst.msk [vmem:[#allocation2 + $0x4f] sm:$0x1] %vm24_vm0, %v735_v46  ;;  %v739_v47 = vld [vmem:[%s738_s19] sm:$0x1]  ;;  %s603_s30 = scalar_lea.vmem %s3310_s2, %s1674_s5  ;;  %s608_s11 = scalar_lea.vmem %s3310_s2, %s1675_s15 }
  0xb4   :  { %740 = vst.msk [vmem:[#allocation3 + $0x4f] sm:$0x1] %vm24_vm0, %v739_v47  ;;  %v600_v48 = vld [vmem:[%s599_s4] sm:$0x1]  ;;  %s612_s6 = scalar_lea.vmem %s3310_s2, %s1676_s24  ;;  %s617_s29 = scalar_lea.vmem %s3310_s2, %s1677_s16 }
  0xb5   :  { %601 = vst.msk [vmem:[#allocation2 + $0x40] sm:$0x1] %vm24_vm0, %v600_v48  ;;  %v604_v50 = vld [vmem:[%s603_s30] sm:$0x1]  ;;  %s621_s8 = scalar_lea.vmem %s3310_s2, %s1678_s0  ;;  %s626_s24 = scalar_lea.vmem %s3310_s2, %s1679_s13 }
  0xb6   :  { %v609_v51 = vld [vmem:[%s608_s11] sm:$0x1]  ;;  %605 = vst.msk [vmem:[#allocation3 + $0x40] sm:$0x1] %vm24_vm0, %v604_v50  ;;  %s630_s26 = scalar_lea.vmem %s3310_s2, %s2624_s28  ;;  %s635_s0 = scalar_lea.vmem %s3310_s2, %s2626_s25 }
  0xb7   :  { %610 = vst.msk [vmem:[#allocation2 + $0x41] sm:$0x1] %vm24_vm0, %v609_v51  ;;  %v613_v53 = vld [vmem:[%s612_s6] sm:$0x1]  ;;  %s639_s30 = scalar_lea.vmem %s3310_s2, %s2628_s23  ;;  %s644_s11 = scalar_lea.vmem %s3310_s2, %s2630_s14 }
  0xb8   :  { %v618_v54 = vld [vmem:[%s617_s29] sm:$0x1]  ;;  %614 = vst.msk [vmem:[#allocation3 + $0x41] sm:$0x1] %vm24_vm0, %v613_v53  ;;  %s648_s21 = scalar_lea.vmem %s3310_s2, %s2635_s1  ;;  %s1685_s23 = sld [smem:[#allocation5 + $0x46]] }
  0xb9   :  { %619 = vst.msk [vmem:[#allocation2 + $0x42] sm:$0x1] %vm24_vm0, %v618_v54  ;;  %v622_v56 = vld [vmem:[%s621_s8] sm:$0x1]  ;;  %s1686_s14 = sld [smem:[#allocation6 + $0x46]]  ;;  %s1687_s18 = sld [smem:[#allocation5 + $0x47]] }
  0xba   :  { %v1182_v49 = vld [vmem:[#allocation2 + $0x48] sm:$0xff]  ;;  %v627_v57 = vld [vmem:[%s626_s24] sm:$0x1]  ;;  %623 = vst.msk [vmem:[#allocation3 + $0x42] sm:$0x1] %vm24_vm0, %v622_v56  ;;  %s1688_s6 = sld [smem:[#allocation6 + $0x47]] }
  0xbb   :  { %v1198_v52 = vld [vmem:[#allocation3 + $0x48] sm:$0xff]  ;;  %628 = vst.msk [vmem:[#allocation2 + $0x43] sm:$0x1] %vm24_vm0, %v627_v57  ;;  %v631_v58 = vld [vmem:[%s630_s26] sm:$0x1]  ;;  %s1721_s22 = sld [smem:[#allocation5 + $0x58]] }
  0xbc   :  { %v1214_v55 = vmul.f32 %v1198_v52, %v1182_v49  ;;  %v636_v59 = vld [vmem:[%s635_s0] sm:$0x1]  ;;  %632 = vst.msk [vmem:[#allocation3 + $0x43] sm:$0x1] %vm24_vm0, %v631_v58  ;;  %s1722_s10 = sld [smem:[#allocation6 + $0x58]]  ;;  %s1723_s29 = sld [smem:[#allocation5 + $0x59]] }
  0xbd   :  { %637 = vst.msk [vmem:[#allocation2 + $0x44] sm:$0x1] %vm24_vm0, %v636_v59  ;;  %v640_v61 = vld [vmem:[%s639_s30] sm:$0x1]  ;;  %s1724_s9 = sld [smem:[#allocation6 + $0x59]]  ;;  %s2688_s19 = sld [smem:[#allocation5 + $0x5a]] }
  0xbe   :  { %v1249_v60 = vsel %vm1221_vm1, %v1214_v55, 0.0  ;;  %v645_v62 = vld [vmem:[%s644_s11] sm:$0x1]  ;;  %641 = vst.msk [vmem:[#allocation3 + $0x44] sm:$0x1] %vm24_vm0, %v640_v61  ;;  %s2690_s8 = sld [smem:[#allocation6 + $0x5a]]  ;;  %s653_s16 = scalar_lea.vmem %s3310_s2, %s1685_s23 }
  0xbf   :  { %1250 = vadd.xlane.f32.xlu1 %v1249_v60  ;;  %646 = vst.msk [vmem:[#allocation2 + $0x45] sm:$0x1] %vm24_vm0, %v645_v62  ;;  %v649_v63 = vld [vmem:[%s648_s21] sm:$0x1]  ;;  %s2692_s1 = sld [smem:[#allocation5 + $0x5b]]  ;;  %s657_s4 = scalar_lea.vmem %s3310_s2, %s1686_s14 }
  0xc0   :  { %650 = vst.msk [vmem:[#allocation3 + $0x45] sm:$0x1] %vm24_vm0, %v649_v63  ;;  %s2694_s5 = sld [smem:[#allocation6 + $0x5b]]  ;;  %v654_v0 = vld [vmem:[%s653_s16] sm:$0x1]  ;;  %s662_s13 = scalar_lea.vmem %s3310_s2, %s1687_s18 }
  0xc1   :  { %v658_v1 = vld [vmem:[%s657_s4] sm:$0x1]  ;;  %s666_s20 = scalar_lea.vmem %s3310_s2, %s1688_s6  ;;  %655 = vst.msk [vmem:[#allocation2 + $0x46] sm:$0x1] %vm24_vm0, %v654_v0  ;;  %s815_s28 = scalar_lea.vmem %s3310_s2, %s1721_s22 }
  0xc2   :  { %659 = vst.msk [vmem:[#allocation3 + $0x46] sm:$0x1] %vm24_vm0, %v658_v1  ;;  %v663_v2 = vld [vmem:[%s662_s13] sm:$0x1]  ;;  %s819_s23 = scalar_lea.vmem %s3310_s2, %s1722_s10  ;;  %s824_s6 = scalar_lea.vmem %s3310_s2, %s1723_s29 }
  0xc3   :  { %v667_v3 = vld [vmem:[%s666_s20] sm:$0x1]  ;;  %664 = vst.msk [vmem:[#allocation2 + $0x47] sm:$0x1] %vm24_vm0, %v663_v2  ;;  %s828_s22 = scalar_lea.vmem %s3310_s2, %s1724_s9  ;;  %s833_s17 = scalar_lea.vmem %s3310_s2, %s2688_s19 }
  0xc4   :  { %668 = vst.msk [vmem:[#allocation3 + $0x47] sm:$0x1] %vm24_vm0, %v667_v3  ;;  %v816_v4 = vld [vmem:[%s815_s28] sm:$0x1]  ;;  %s837_s12 = scalar_lea.vmem %s3310_s2, %s2690_s8  ;;  %s1729_s19 = sld [smem:[#allocation5 + $0x5c]] }
  0xc5   :  { %v820_v5 = vld [vmem:[%s819_s23] sm:$0x1]  ;;  %817 = vst.msk [vmem:[#allocation2 + $0x58] sm:$0x1] %vm24_vm0, %v816_v4  ;;  %s842_s0 = scalar_lea.vmem %s3310_s2, %s2692_s1  ;;  %s1730_s8 = sld [smem:[#allocation6 + $0x5c]] }
  0xc6   :  { %821 = vst.msk [vmem:[#allocation3 + $0x58] sm:$0x1] %vm24_vm0, %v820_v5  ;;  %v825_v6 = vld [vmem:[%s824_s6] sm:$0x1]  ;;  %s846_s30 = scalar_lea.vmem %s3310_s2, %s2694_s5  ;;  %s1731_s20 = sld [smem:[#allocation5 + $0x5d]] }
  0xc7   :  { %v829_v7 = vld [vmem:[%s828_s22] sm:$0x1]  ;;  %826 = vst.msk [vmem:[#allocation2 + $0x59] sm:$0x1] %vm24_vm0, %v825_v6  ;;  %s1732_s7 = sld [smem:[#allocation6 + $0x5d]]  ;;  %s1733_s1 = sld [smem:[#allocation5 + $0x5e]] }
  0xc8   :  { %830 = vst.msk [vmem:[#allocation3 + $0x59] sm:$0x1] %vm24_vm0, %v829_v7  ;;  %v834_v8 = vld [vmem:[%s833_s17] sm:$0x1]  ;;  %s2748_s11 = sld [smem:[#allocation6 + $0x5e]]  ;;  %s2750_s28 = sld [smem:[#allocation5 + $0x5f]]  ;;  %v1230_v12 = vpop.xlane.xlu1 %1229 }
  0xc9   :  { %v838_v9 = vld [vmem:[%s837_s12] sm:$0x1]  ;;  %835 = vst.msk [vmem:[#allocation2 + $0x5a] sm:$0x1] %vm24_vm0, %v834_v8  ;;  %s2752_s5 = sld [smem:[#allocation6 + $0x5f]]  ;;  %s2754_s25 = sld [smem:[#allocation5 + $0x50]] }
  0xca   :  { %839 = vst.msk [vmem:[#allocation3 + $0x5a] sm:$0x1] %vm24_vm0, %v838_v9  ;;  %v843_v10 = vld [vmem:[%s842_s0] sm:$0x1]  ;;  %s2760_s14 = sld [smem:[#allocation6 + $0x50]]  ;;  %s2762_s18 = sld [smem:[#allocation5 + $0x51]] }
  0xcb   :  { %v847_v11 = vld [vmem:[%s846_s30] sm:$0x1]  ;;  %844 = vst.msk [vmem:[#allocation2 + $0x5b] sm:$0x1] %vm24_vm0, %v843_v10  ;;  %s851_s24 = scalar_lea.vmem %s3310_s2, %s1729_s19  ;;  %s2767_s22 = sld [smem:[#allocation6 + $0x51]] }
  0xcc   :  { %848 = vst.msk [vmem:[#allocation3 + $0x5b] sm:$0x1] %vm24_vm0, %v847_v11  ;;  %v1181_v13 = vld [vmem:[#allocation2 + $0x40] sm:$0xff]  ;;  %s855_s17 = scalar_lea.vmem %s3310_s2, %s1730_s8  ;;  %s860_s12 = scalar_lea.vmem %s3310_s2, %s1731_s20 }
  0xcd   :  { %v1197_v14 = vld [vmem:[#allocation3 + $0x40] sm:$0xff]  ;;  %1273 = vst.msk [vmem:[%s3311_s3 + $0x10] sm:$0xff] %vm1270_vm2, %v1230_v12  ;;  %s864_s0 = scalar_lea.vmem %s3310_s2, %s1732_s7  ;;  %s869_s30 = scalar_lea.vmem %s3310_s2, %s1733_s1 }
  0xce   :  { %v1213_v15 = vmul.f32 %v1197_v14, %v1181_v13  ;;  %v852_v17 = vld [vmem:[%s851_s24] sm:$0x1]  ;;  %s873_s20 = scalar_lea.vmem %s3310_s2, %s2748_s11  ;;  %s878_s7 = scalar_lea.vmem %s3310_s2, %s2750_s28 }
  0xcf   :  { %853 = vst.msk [vmem:[#allocation2 + $0x5c] sm:$0x1] %vm24_vm0, %v852_v17  ;;  %v856_v18 = vld [vmem:[%s855_s17] sm:$0x1]  ;;  %s882_s15 = scalar_lea.vmem %s3310_s2, %s2752_s5  ;;  %s743_s16 = scalar_lea.vmem %s3310_s2, %s2754_s25 }
  0xd0   :  { %v1246_v16 = vsel %vm1221_vm1, %v1213_v15, 0.0  ;;  %v861_v19 = vld [vmem:[%s860_s12] sm:$0x1]  ;;  %857 = vst.msk [vmem:[#allocation3 + $0x5c] sm:$0x1] %vm24_vm0, %v856_v18  ;;  %s747_s17 = scalar_lea.vmem %s3310_s2, %s2760_s14  ;;  %s752_s12 = scalar_lea.vmem %s3310_s2, %s2762_s18 }
  0xd1   :  { %1247 = vadd.xlane.f32.xlu0 %v1246_v16  ;;  %862 = vst.msk [vmem:[#allocation2 + $0x5d] sm:$0x1] %vm24_vm0, %v861_v19  ;;  %v865_v20 = vld [vmem:[%s864_s0] sm:$0x1]  ;;  %s756_s29 = scalar_lea.vmem %s3310_s2, %s2767_s22  ;;  %s1709_s9 = sld [smem:[#allocation5 + $0x52]] }
  0xd2   :  { %v870_v21 = vld [vmem:[%s869_s30] sm:$0x1]  ;;  %866 = vst.msk [vmem:[#allocation3 + $0x5d] sm:$0x1] %vm24_vm0, %v865_v20  ;;  %s1710_s14 = sld [smem:[#allocation6 + $0x52]]  ;;  %s1711_s0 = sld [smem:[#allocation5 + $0x53]] }
  0xd3   :  { %871 = vst.msk [vmem:[#allocation2 + $0x5e] sm:$0x1] %vm24_vm0, %v870_v21  ;;  %v874_v22 = vld [vmem:[%s873_s20] sm:$0x1]  ;;  %s1712_s18 = sld [smem:[#allocation6 + $0x53]]  ;;  %s1713_s13 = sld [smem:[#allocation5 + $0x54]] }
  0xd4   :  { %v879_v23 = vld [vmem:[%s878_s7] sm:$0x1]  ;;  %875 = vst.msk [vmem:[#allocation3 + $0x5e] sm:$0x1] %vm24_vm0, %v874_v22  ;;  %s2822_s27 = sld [smem:[#allocation6 + $0x54]]  ;;  %s2824_s30 = sld [smem:[#allocation5 + $0x55]] }
  0xd5   :  { %880 = vst.msk [vmem:[#allocation2 + $0x5f] sm:$0x1] %vm24_vm0, %v879_v23  ;;  %v883_v24 = vld [vmem:[%s882_s15] sm:$0x1]  ;;  %s2826_s19 = sld [smem:[#allocation6 + $0x55]]  ;;  %s2828_s8 = sld [smem:[#allocation5 + $0x56]] }
  0xd6   :  { %v744_v25 = vld [vmem:[%s743_s16] sm:$0x1]  ;;  %884 = vst.msk [vmem:[#allocation3 + $0x5f] sm:$0x1] %vm24_vm0, %v883_v24  ;;  %s2830_s22 = sld [smem:[#allocation6 + $0x56]]  ;;  %s2832_s20 = sld [smem:[#allocation5 + $0x57]] }
  0xd7   :  { %745 = vst.msk [vmem:[#allocation2 + $0x50] sm:$0x1] %vm24_vm0, %v744_v25  ;;  %v748_v26 = vld [vmem:[%s747_s17] sm:$0x1]  ;;  %s761_s7 = scalar_lea.vmem %s3310_s2, %s1709_s9  ;;  %s2837_s1 = sld [smem:[#allocation6 + $0x57]] }
  0xd8   :  { %v753_v27 = vld [vmem:[%s752_s12] sm:$0x1]  ;;  %749 = vst.msk [vmem:[#allocation3 + $0x50] sm:$0x1] %vm24_vm0, %v748_v26  ;;  %v1224_v29 = vpop.xlane.xlu0 %1223  ;;  %s765_s16 = scalar_lea.vmem %s3310_s2, %s1710_s14  ;;  %s770_s17 = scalar_lea.vmem %s3310_s2, %s1711_s0 }
  0xd9   :  { %754 = vst.msk [vmem:[#allocation2 + $0x51] sm:$0x1] %vm24_vm0, %v753_v27  ;;  %v757_v28 = vld [vmem:[%s756_s29] sm:$0x1]  ;;  %s774_s12 = scalar_lea.vmem %s3310_s2, %s1712_s18  ;;  %s779_s29 = scalar_lea.vmem %s3310_s2, %s1713_s13 }
  0xda   :  { %758 = vst.msk [vmem:[#allocation3 + $0x51] sm:$0x1] %vm24_vm0, %v757_v28  ;;  %v762_v32 = vld [vmem:[%s761_s7] sm:$0x1]  ;;  %s783_s0 = scalar_lea.vmem %s3310_s2, %s2822_s27  ;;  %s788_s18 = scalar_lea.vmem %s3310_s2, %s2824_s30 }
  0xdb   :  { %1271 = vst.msk [vmem:[%s3311_s3] sm:$0xff] %vm1270_vm2, %v1224_v29  ;;  %v766_v34 = vld [vmem:[%s765_s16] sm:$0x1]  ;;  %s792_s6 = scalar_lea.vmem %s3310_s2, %s2826_s19  ;;  %s797_s27 = scalar_lea.vmem %s3310_s2, %s2828_s8 }
  0xdc   :  { %v1184_v30 = vld [vmem:[#allocation2 + $0x58] sm:$0xff]  ;;  %763 = vst.msk [vmem:[#allocation2 + $0x52] sm:$0x1] %vm24_vm0, %v762_v32  ;;  %v771_v35 = vld [vmem:[%s770_s17] sm:$0x1]  ;;  %s801_s16 = scalar_lea.vmem %s3310_s2, %s2830_s22  ;;  %s806_s17 = scalar_lea.vmem %s3310_s2, %s2832_s20 }
  0xdd   :  { %v1200_v31 = vld [vmem:[#allocation3 + $0x58] sm:$0xff]  ;;  %767 = vst.msk [vmem:[#allocation3 + $0x52] sm:$0x1] %vm24_vm0, %v766_v34  ;;  %772 = vst.msk [vmem:[#allocation2 + $0x53] sm:$0x1] %vm24_vm0, %v771_v35  ;;  %s810_s26 = scalar_lea.vmem %s3310_s2, %s2837_s1  ;;  %s1753_s4 = sld [smem:[#allocation5 + $0x68]] }
  0xde   :  { %v1216_v33 = vmul.f32 %v1200_v31, %v1184_v30  ;;  %v775_v36 = vld [vmem:[%s774_s12] sm:$0x1]  ;;  %s1754_s22 = sld [smem:[#allocation6 + $0x68]]  ;;  %s1755_s12 = sld [smem:[#allocation5 + $0x69]] }
  0xdf   :  { %v780_v37 = vld [vmem:[%s779_s29] sm:$0x1]  ;;  %776 = vst.msk [vmem:[#allocation3 + $0x53] sm:$0x1] %vm24_vm0, %v775_v36  ;;  %s1756_s20 = sld [smem:[#allocation6 + $0x69]]  ;;  %s1757_s5 = sld [smem:[#allocation5 + $0x6a]] }
  0xe0   :  { %v1255_v38 = vsel %vm1221_vm1, %v1216_v33, 0.0  ;;  %781 = vst.msk [vmem:[#allocation2 + $0x54] sm:$0x1] %vm24_vm0, %v780_v37  ;;  %v784_v39 = vld [vmem:[%s783_s0] sm:$0x1]  ;;  %s2896_s25 = sld [smem:[#allocation6 + $0x6a]] }
  0xe1   :  { %v789_v40 = vld [vmem:[%s788_s18] sm:$0x1]  ;;  %1256 = vadd.xlane.f32.xlu1 %v1255_v38  ;;  %785 = vst.msk [vmem:[#allocation3 + $0x54] sm:$0x1] %vm24_vm0, %v784_v39  ;;  %s2898_s29 = sld [smem:[#allocation5 + $0x6b]]  ;;  %s2902_s14 = sld [smem:[#allocation5 + $0x6c]] }
  0xe2   :  { %790 = vst.msk [vmem:[#allocation2 + $0x55] sm:$0x1] %vm24_vm0, %v789_v40  ;;  %v793_v41 = vld [vmem:[%s792_s6] sm:$0x1]  ;;  %s2900_s9 = sld [smem:[#allocation6 + $0x6b]]  ;;  %s2904_s1 = sld [smem:[#allocation6 + $0x6c]] }
  0xe3   :  { %v798_v42 = vld [vmem:[%s797_s27] sm:$0x1]  ;;  %794 = vst.msk [vmem:[#allocation3 + $0x55] sm:$0x1] %vm24_vm0, %v793_v41  ;;  %s2906_s0 = sld [smem:[#allocation5 + $0x6d]]  ;;  %s959_s18 = scalar_lea.vmem %s3310_s2, %s1753_s4 }
  0xe4   :  { %799 = vst.msk [vmem:[#allocation2 + $0x56] sm:$0x1] %vm24_vm0, %v798_v42  ;;  %v802_v43 = vld [vmem:[%s801_s16] sm:$0x1]  ;;  %s2911_s13 = sld [smem:[#allocation6 + $0x6d]]  ;;  %s963_s15 = scalar_lea.vmem %s3310_s2, %s1754_s22 }
  0xe5   :  { %v807_v44 = vld [vmem:[%s806_s17] sm:$0x1]  ;;  %803 = vst.msk [vmem:[#allocation3 + $0x56] sm:$0x1] %vm24_vm0, %v802_v43  ;;  %s968_s30 = scalar_lea.vmem %s3310_s2, %s1755_s12  ;;  %s972_s11 = scalar_lea.vmem %s3310_s2, %s1756_s20 }
  0xe6   :  { %808 = vst.msk [vmem:[#allocation2 + $0x57] sm:$0x1] %vm24_vm0, %v807_v44  ;;  %v811_v45 = vld [vmem:[%s810_s26] sm:$0x1]  ;;  %s977_s19 = scalar_lea.vmem %s3310_s2, %s1757_s5  ;;  %s981_s12 = scalar_lea.vmem %s3310_s2, %s2896_s25 }
  0xe7   :  { %812 = vst.msk [vmem:[#allocation3 + $0x57] sm:$0x1] %vm24_vm0, %v811_v45  ;;  %v960_v46 = vld [vmem:[%s959_s18] sm:$0x1]  ;;  %s986_s21 = scalar_lea.vmem %s3310_s2, %s2898_s29  ;;  %s995_s25 = scalar_lea.vmem %s3310_s2, %s2902_s14 }
  0xe8   :  { %961 = vst.msk [vmem:[#allocation2 + $0x68] sm:$0x1] %vm24_vm0, %v960_v46  ;;  %v964_v49 = vld [vmem:[%s963_s15] sm:$0x1]  ;;  %s990_s7 = scalar_lea.vmem %s3310_s2, %s2900_s9  ;;  %s999_s27 = scalar_lea.vmem %s3310_s2, %s2904_s1 }
  0xe9   :  { %v969_v50 = vld [vmem:[%s968_s30] sm:$0x1]  ;;  %965 = vst.msk [vmem:[#allocation3 + $0x68] sm:$0x1] %vm24_vm0, %v964_v49  ;;  %s1004_s16 = scalar_lea.vmem %s3310_s2, %s2906_s0  ;;  %s1765_s1 = sld [smem:[#allocation5 + $0x6e]] }
  0xea   :  { %v1233_v47 = vpop.xlane.xlu1 %1232  ;;  %970 = vst.msk [vmem:[#allocation2 + $0x69] sm:$0x1] %vm24_vm0, %v969_v50  ;;  %v973_v52 = vld [vmem:[%s972_s11] sm:$0x1]  ;;  %s1008_s11 = scalar_lea.vmem %s3310_s2, %s2911_s13  ;;  %s1766_s0 = sld [smem:[#allocation6 + $0x6e]] }
  0xeb   :  { %1274 = vst.msk [vmem:[%s3311_s3 + $0x18] sm:$0xff] %vm1270_vm2, %v1233_v47  ;;  %v978_v53 = vld [vmem:[%s977_s19] sm:$0x1]  ;;  %s1767_s28 = sld [smem:[#allocation5 + $0x6f]]  ;;  %s1737_s19 = sld [smem:[#allocation5 + $0x60]] }
  0xec   :  { %974 = vst.msk [vmem:[#allocation3 + $0x69] sm:$0x1] %vm24_vm0, %v973_v52  ;;  %979 = vst.msk [vmem:[#allocation2 + $0x6a] sm:$0x1] %vm24_vm0, %v978_v53  ;;  %v982_v55 = vld [vmem:[%s981_s12] sm:$0x1] }
  0xed   :  { %v1183_v48 = vld [vmem:[#allocation2 + $0x50] sm:$0xff]  ;;  %v987_v56 = vld [vmem:[%s986_s21] sm:$0x1]  ;;  %983 = vst.msk [vmem:[#allocation3 + $0x6a] sm:$0x1] %vm24_vm0, %v982_v55  ;;  %s1768_s17 = sld [smem:[#allocation6 + $0x6f]] }
  0xee   :  { %v1199_v51 = vld [vmem:[#allocation3 + $0x50] sm:$0xff]  ;;  %988 = vst.msk [vmem:[#allocation2 + $0x6b] sm:$0x1] %vm24_vm0, %v987_v56  ;;  %v991_v57 = vld [vmem:[%s990_s7] sm:$0x1]  ;;  %s1738_s8 = sld [smem:[#allocation6 + $0x60]] }
  0xef   :  { %v1215_v54 = vmul.f32 %v1199_v51, %v1183_v48  ;;  %v996_v58 = vld [vmem:[%s995_s25] sm:$0x1]  ;;  %992 = vst.msk [vmem:[#allocation3 + $0x6b] sm:$0x1] %vm24_vm0, %v991_v57  ;;  %s1739_s26 = sld [smem:[#allocation5 + $0x61]]  ;;  %s2970_s22 = sld [smem:[#allocation5 + $0x62]] }
  0xf0   :  { %997 = vst.msk [vmem:[#allocation2 + $0x6c] sm:$0x1] %vm24_vm0, %v996_v58  ;;  %v1000_v60 = vld [vmem:[%s999_s27] sm:$0x1]  ;;  %s1740_s4 = sld [smem:[#allocation6 + $0x61]]  ;;  %s2972_s12 = sld [smem:[#allocation6 + $0x62]] }
  0xf1   :  { %v1252_v59 = vsel %vm1221_vm1, %v1215_v54, 0.0  ;;  %v1005_v61 = vld [vmem:[%s1004_s16] sm:$0x1]  ;;  %1001 = vst.msk [vmem:[#allocation3 + $0x6c] sm:$0x1] %vm24_vm0, %v1000_v60  ;;  %s2974_s13 = sld [smem:[#allocation5 + $0x63]]  ;;  %s1013_s23 = scalar_lea.vmem %s3310_s2, %s1765_s1 }
  0xf2   :  { %1253 = vadd.xlane.f32.xlu0 %v1252_v59  ;;  %1006 = vst.msk [vmem:[#allocation2 + $0x6d] sm:$0x1] %vm24_vm0, %v1005_v61  ;;  %v1009_v62 = vld [vmem:[%s1008_s11] sm:$0x1]  ;;  %s2976_s20 = sld [smem:[#allocation6 + $0x63]]  ;;  %s1017_s6 = scalar_lea.vmem %s3310_s2, %s1766_s0 }
  0xf3   :  { %1010 = vst.msk [vmem:[#allocation3 + $0x6d] sm:$0x1] %vm24_vm0, %v1009_v62  ;;  %v1014_v63 = vld [vmem:[%s1013_s23] sm:$0x1]  ;;  %s1022_s29 = scalar_lea.vmem %s3310_s2, %s1767_s28  ;;  %s1026_s30 = scalar_lea.vmem %s3310_s2, %s1768_s17 }
  0xf4   :  { %v1018_v0 = vld [vmem:[%s1017_s6] sm:$0x1]  ;;  %1015 = vst.msk [vmem:[#allocation2 + $0x6e] sm:$0x1] %vm24_vm0, %v1014_v63  ;;  %s887_s9 = scalar_lea.vmem %s3310_s2, %s1737_s19  ;;  %s891_s1 = scalar_lea.vmem %s3310_s2, %s1738_s8 }
  0xf5   :  { %1019 = vst.msk [vmem:[#allocation3 + $0x6e] sm:$0x1] %vm24_vm0, %v1018_v0  ;;  %v1023_v1 = vld [vmem:[%s1022_s29] sm:$0x1]  ;;  %s896_s17 = scalar_lea.vmem %s3310_s2, %s1739_s26  ;;  %s905_s18 = scalar_lea.vmem %s3310_s2, %s2970_s22 }
  0xf6   :  { %v1027_v2 = vld [vmem:[%s1026_s30] sm:$0x1]  ;;  %1024 = vst.msk [vmem:[#allocation2 + $0x6f] sm:$0x1] %vm24_vm0, %v1023_v1  ;;  %s900_s19 = scalar_lea.vmem %s3310_s2, %s1740_s4  ;;  %s909_s15 = scalar_lea.vmem %s3310_s2, %s2972_s12 }
  0xf7   :  { %1028 = vst.msk [vmem:[#allocation3 + $0x6f] sm:$0x1] %vm24_vm0, %v1027_v2  ;;  %v888_v3 = vld [vmem:[%s887_s9] sm:$0x1]  ;;  %s914_s25 = scalar_lea.vmem %s3310_s2, %s2974_s13  ;;  %s1745_s22 = sld [smem:[#allocation5 + $0x64]] }
  0xf8   :  { %v892_v4 = vld [vmem:[%s891_s1] sm:$0x1]  ;;  %889 = vst.msk [vmem:[#allocation2 + $0x60] sm:$0x1] %vm24_vm0, %v888_v3  ;;  %s918_s27 = scalar_lea.vmem %s3310_s2, %s2976_s20  ;;  %s1746_s12 = sld [smem:[#allocation6 + $0x64]] }
  0xf9   :  { %893 = vst.msk [vmem:[#allocation3 + $0x60] sm:$0x1] %vm24_vm0, %v892_v4  ;;  %v897_v5 = vld [vmem:[%s896_s17] sm:$0x1]  ;;  %s1747_s30 = sld [smem:[#allocation5 + $0x65]]  ;;  %s1749_s16 = sld [smem:[#allocation5 + $0x66]] }
  0xfa   :  { %v901_v6 = vld [vmem:[%s900_s19] sm:$0x1]  ;;  %898 = vst.msk [vmem:[#allocation2 + $0x61] sm:$0x1] %vm24_vm0, %v897_v5  ;;  %s1748_s10 = sld [smem:[#allocation6 + $0x65]]  ;;  %v1227_v11 = vpop.xlane.xlu0 %1226  ;;  %s3030_s13 = sld [smem:[#allocation6 + $0x66]] }
  0xfb   :  { %902 = vst.msk [vmem:[#allocation3 + $0x61] sm:$0x1] %vm24_vm0, %v901_v6  ;;  %v906_v7 = vld [vmem:[%s905_s18] sm:$0x1]  ;;  %s3032_s9 = sld [smem:[#allocation5 + $0x67]]  ;;  %s3040_s1 = sld [smem:[#allocation5 + $0x78]] }
  0xfc   :  { %v910_v8 = vld [vmem:[%s909_s15] sm:$0x1]  ;;  %907 = vst.msk [vmem:[#allocation2 + $0x62] sm:$0x1] %vm24_vm0, %v906_v7  ;;  %s3038_s11 = sld [smem:[#allocation6 + $0x67]]  ;;  %s3042_s0 = sld [smem:[#allocation6 + $0x78]] }
  0xfd   :  { %911 = vst.msk [vmem:[#allocation3 + $0x62] sm:$0x1] %vm24_vm0, %v910_v8  ;;  %v915_v9 = vld [vmem:[%s914_s25] sm:$0x1]  ;;  %v1186_v12 = vld [vmem:[#allocation2 + $0x68] sm:$0xff]  ;;  %s3044_s28 = sld [smem:[#allocation5 + $0x79]]  ;;  %s923_s21 = scalar_lea.vmem %s3310_s2, %s1745_s22 }
  0xfe   :  { %v919_v10 = vld [vmem:[%s918_s27] sm:$0x1]  ;;  %916 = vst.msk [vmem:[#allocation2 + $0x63] sm:$0x1] %vm24_vm0, %v915_v9  ;;  %v1202_v13 = vld [vmem:[#allocation3 + $0x68] sm:$0xff]  ;;  %s3049_s19 = sld [smem:[#allocation6 + $0x79]]  ;;  %s927_s18 = scalar_lea.vmem %s3310_s2, %s1746_s12 }
  0xff   :  { %920 = vst.msk [vmem:[#allocation3 + $0x63] sm:$0x1] %vm24_vm0, %v919_v10  ;;  %v1218_v14 = vmul.f32 %v1202_v13, %v1186_v12  ;;  %v924_v16 = vld [vmem:[%s923_s21] sm:$0x1]  ;;  %s932_s15 = scalar_lea.vmem %s3310_s2, %s1747_s30  ;;  %s941_s27 = scalar_lea.vmem %s3310_s2, %s1749_s16 }
 0x100   :  { %1272 = vst.msk [vmem:[%s3311_s3 + $0x8] sm:$0xff] %vm1270_vm2, %v1227_v11  ;;  %v928_v17 = vld [vmem:[%s927_s18] sm:$0x1]  ;;  %s936_s25 = scalar_lea.vmem %s3310_s2, %s1748_s10  ;;  %s945_s30 = scalar_lea.vmem %s3310_s2, %s3030_s13 }
 0x101   :  { %v1261_v15 = vsel %vm1221_vm1, %v1218_v14, 0.0  ;;  %925 = vst.msk [vmem:[#allocation2 + $0x64] sm:$0x1] %vm24_vm0, %v924_v16  ;;  %v933_v18 = vld [vmem:[%s932_s15] sm:$0x1]  ;;  %s950_s10 = scalar_lea.vmem %s3310_s2, %s3032_s9  ;;  %s1103_s23 = scalar_lea.vmem %s3310_s2, %s3040_s1 }
 0x102   :  { %1262 = vadd.xlane.f32.xlu1 %v1261_v15  ;;  %929 = vst.msk [vmem:[#allocation3 + $0x64] sm:$0x1] %vm24_vm0, %v928_v17  ;;  %934 = vst.msk [vmem:[#allocation2 + $0x65] sm:$0x1] %vm24_vm0, %v933_v18  ;;  %v937_v19 = vld [vmem:[%s936_s25] sm:$0x1]  ;;  %s954_s5 = scalar_lea.vmem %s3310_s2, %s3038_s11  ;;  %s1107_s18 = scalar_lea.vmem %s3310_s2, %s3042_s0 }
 0x103   :  { %v942_v20 = vld [vmem:[%s941_s27] sm:$0x1]  ;;  %938 = vst.msk [vmem:[#allocation3 + $0x65] sm:$0x1] %vm24_vm0, %v937_v19  ;;  %s1112_s15 = scalar_lea.vmem %s3310_s2, %s3044_s28  ;;  %s1789_s4 = sld [smem:[#allocation5 + $0x7a]] }
 0x104   :  { %943 = vst.msk [vmem:[#allocation2 + $0x66] sm:$0x1] %vm24_vm0, %v942_v20  ;;  %v946_v21 = vld [vmem:[%s945_s30] sm:$0x1]  ;;  %s1116_s26 = scalar_lea.vmem %s3310_s2, %s3049_s19  ;;  %s1790_s0 = sld [smem:[#allocation6 + $0x7a]] }
 0x105   :  { %v951_v22 = vld [vmem:[%s950_s10] sm:$0x1]  ;;  %947 = vst.msk [vmem:[#allocation3 + $0x66] sm:$0x1] %vm24_vm0, %v946_v21  ;;  %s1791_s25 = sld [smem:[#allocation5 + $0x7b]]  ;;  %s1793_s29 = sld [smem:[#allocation5 + $0x7c]] }
 0x106   :  { %952 = vst.msk [vmem:[#allocation2 + $0x67] sm:$0x1] %vm24_vm0, %v951_v22  ;;  %v955_v23 = vld [vmem:[%s954_s5] sm:$0x1]  ;;  %s1792_s28 = sld [smem:[#allocation6 + $0x7b]]  ;;  %s3104_s24 = sld [smem:[#allocation6 + $0x7c]] }
 0x107   :  { %v1104_v24 = vld [vmem:[%s1103_s23] sm:$0x1]  ;;  %956 = vst.msk [vmem:[#allocation3 + $0x67] sm:$0x1] %vm24_vm0, %v955_v23  ;;  %s3106_s27 = sld [smem:[#allocation5 + $0x7d]]  ;;  %s3110_s12 = sld [smem:[#allocation5 + $0x7e]] }
 0x108   :  { %1105 = vst.msk [vmem:[#allocation2 + $0x78] sm:$0x1] %vm24_vm0, %v1104_v24  ;;  %v1108_v25 = vld [vmem:[%s1107_s18] sm:$0x1]  ;;  %s3108_s22 = sld [smem:[#allocation6 + $0x7d]]  ;;  %s3112_s19 = sld [smem:[#allocation6 + $0x7e]] }
 0x109   :  { %v1113_v26 = vld [vmem:[%s1112_s15] sm:$0x1]  ;;  %1109 = vst.msk [vmem:[#allocation3 + $0x78] sm:$0x1] %vm24_vm0, %v1108_v25  ;;  %s3114_s30 = sld [smem:[#allocation5 + $0x7f]]  ;;  %s1121_s10 = scalar_lea.vmem %s3310_s2, %s1789_s4 }
 0x10a   :  { %1114 = vst.msk [vmem:[#allocation2 + $0x79] sm:$0x1] %vm24_vm0, %v1113_v26  ;;  %v1117_v27 = vld [vmem:[%s1116_s26] sm:$0x1]  ;;  %v1239_v28 = vpop.xlane.xlu1 %1238  ;;  %s3119_s16 = sld [smem:[#allocation6 + $0x7f]]  ;;  %s1125_s23 = scalar_lea.vmem %s3310_s2, %s1790_s0 }
 0x10b   :  { %1118 = vst.msk [vmem:[#allocation3 + $0x79] sm:$0x1] %vm24_vm0, %v1117_v27  ;;  %v1122_v31 = vld [vmem:[%s1121_s10] sm:$0x1]  ;;  %s1130_s18 = scalar_lea.vmem %s3310_s2, %s1791_s25  ;;  %s1139_s26 = scalar_lea.vmem %s3310_s2, %s1793_s29 }
 0x10c   :  { %1276 = vst.msk [vmem:[%s3311_s3 + $0x28] sm:$0xff] %vm1270_vm2, %v1239_v28  ;;  %v1126_v33 = vld [vmem:[%s1125_s23] sm:$0x1]  ;;  %s1134_s15 = scalar_lea.vmem %s3310_s2, %s1792_s28  ;;  %s1143_s25 = scalar_lea.vmem %s3310_s2, %s3104_s24 }
 0x10d   :  { %v1185_v29 = vld [vmem:[#allocation2 + $0x60] sm:$0xff]  ;;  %1123 = vst.msk [vmem:[#allocation2 + $0x7a] sm:$0x1] %vm24_vm0, %v1122_v31  ;;  %1127 = vst.msk [vmem:[#allocation3 + $0x7a] sm:$0x1] %vm24_vm0, %v1126_v33  ;;  %s1148_s28 = scalar_lea.vmem %s3310_s2, %s3106_s27  ;;  %s1157_s24 = scalar_lea.vmem %s3310_s2, %s3110_s12 }
 0x10e   :  { %v1201_v30 = vld [vmem:[#allocation3 + $0x60] sm:$0xff]  ;;  %s1152_s17 = scalar_lea.vmem %s3310_s2, %s3108_s22  ;;  %s1161_s23 = scalar_lea.vmem %s3310_s2, %s3112_s19 }
 0x10f   :  { %v1217_v32 = vmul.f32 %v1201_v30, %v1185_v29  ;;  %v1131_v34 = vld [vmem:[%s1130_s18] sm:$0x1]  ;;  %s1166_s18 = scalar_lea.vmem %s3310_s2, %s3114_s30  ;;  %s1769_s6 = sld [smem:[#allocation5 + $0x70]] }
 0x110   :  { %1132 = vst.msk [vmem:[#allocation2 + $0x7b] sm:$0x1] %vm24_vm0, %v1131_v34  ;;  %v1135_v35 = vld [vmem:[%s1134_s15] sm:$0x1]  ;;  %s1170_s7 = scalar_lea.vmem %s3310_s2, %s3119_s16  ;;  %s1770_s19 = sld [smem:[#allocation6 + $0x70]] }
 0x111   :  { %v1140_v36 = vld [vmem:[%s1139_s26] sm:$0x1]  ;;  %v1258_v37 = vsel %vm1221_vm1, %v1217_v32, 0.0  ;;  %1136 = vst.msk [vmem:[#allocation3 + $0x7b] sm:$0x1] %vm24_vm0, %v1135_v35  ;;  %s1771_s15 = sld [smem:[#allocation5 + $0x71]] }
 0x112   :  { %1141 = vst.msk [vmem:[#allocation2 + $0x7c] sm:$0x1] %vm24_vm0, %v1140_v36  ;;  %v1144_v38 = vld [vmem:[%s1143_s25] sm:$0x1]  ;;  %1259 = vadd.xlane.f32.xlu0 %v1258_v37  ;;  %s1772_s30 = sld [smem:[#allocation6 + $0x71]]  ;;  %s1773_s11 = sld [smem:[#allocation5 + $0x72]] }
 0x113   :  { %v1149_v39 = vld [vmem:[%s1148_s28] sm:$0x1]  ;;  %1145 = vst.msk [vmem:[#allocation3 + $0x7c] sm:$0x1] %vm24_vm0, %v1144_v38  ;;  %s3178_s1 = sld [smem:[#allocation6 + $0x72]]  ;;  %s3180_s26 = sld [smem:[#allocation5 + $0x73]] }
 0x114   :  { %1150 = vst.msk [vmem:[#allocation2 + $0x7d] sm:$0x1] %vm24_vm0, %v1149_v39  ;;  %v1153_v40 = vld [vmem:[%s1152_s17] sm:$0x1]  ;;  %s3182_s4 = sld [smem:[#allocation6 + $0x73]]  ;;  %s3184_s0 = sld [smem:[#allocation5 + $0x74]] }
 0x115   :  { %v1158_v41 = vld [vmem:[%s1157_s24] sm:$0x1]  ;;  %1154 = vst.msk [vmem:[#allocation3 + $0x7d] sm:$0x1] %vm24_vm0, %v1153_v40  ;;  %s3186_s16 = sld [smem:[#allocation6 + $0x74]]  ;;  %s3188_s25 = sld [smem:[#allocation5 + $0x75]] }
 0x116   :  { %1159 = vst.msk [vmem:[#allocation2 + $0x7e] sm:$0x1] %vm24_vm0, %v1158_v41  ;;  %v1162_v42 = vld [vmem:[%s1161_s23] sm:$0x1]  ;;  %s1031_s28 = scalar_lea.vmem %s3310_s2, %s1769_s6  ;;  %s3193_s29 = sld [smem:[#allocation6 + $0x75]] }
 0x117   :  { %v1167_v43 = vld [vmem:[%s1166_s18] sm:$0x1]  ;;  %1163 = vst.msk [vmem:[#allocation3 + $0x7e] sm:$0x1] %vm24_vm0, %v1162_v42  ;;  %s1035_s5 = scalar_lea.vmem %s3310_s2, %s1770_s19  ;;  %s1040_s27 = scalar_lea.vmem %s3310_s2, %s1771_s15 }
 0x118   :  { %1168 = vst.msk [vmem:[#allocation2 + $0x7f] sm:$0x1] %vm24_vm0, %v1167_v43  ;;  %v1171_v44 = vld [vmem:[%s1170_s7] sm:$0x1]  ;;  %s1044_s13 = scalar_lea.vmem %s3310_s2, %s1772_s30  ;;  %s1049_s22 = scalar_lea.vmem %s3310_s2, %s1773_s11 }
 0x119   :  { %1172 = vst.msk [vmem:[#allocation3 + $0x7f] sm:$0x1] %vm24_vm0, %v1171_v44  ;;  %v1032_v45 = vld [vmem:[%s1031_s28] sm:$0x1]  ;;  %s1053_s15 = scalar_lea.vmem %s3310_s2, %s3178_s1  ;;  %s1058_s20 = scalar_lea.vmem %s3310_s2, %s3180_s26 }
 0x11a   :  { %v1236_v46 = vpop.xlane.xlu0 %1235  ;;  %1033 = vst.msk [vmem:[#allocation2 + $0x70] sm:$0x1] %vm24_vm0, %v1032_v45  ;;  %v1036_v48 = vld [vmem:[%s1035_s5] sm:$0x1]  ;;  %s1062_s10 = scalar_lea.vmem %s3310_s2, %s3182_s4  ;;  %s1067_s1 = scalar_lea.vmem %s3310_s2, %s3184_s0 }
 0x11b   :  { %v1041_v49 = vld [vmem:[%s1040_s27] sm:$0x1]  ;;  %1275 = vst.msk [vmem:[%s3311_s3 + $0x20] sm:$0xff] %vm1270_vm2, %v1236_v46  ;;  %s1071_s24 = scalar_lea.vmem %s3310_s2, %s3186_s16  ;;  %s1076_s23 = scalar_lea.vmem %s3310_s2, %s3188_s25 }
 0x11c   :  { %1037 = vst.msk [vmem:[#allocation3 + $0x70] sm:$0x1] %vm24_vm0, %v1036_v48  ;;  %1042 = vst.msk [vmem:[#allocation2 + $0x71] sm:$0x1] %vm24_vm0, %v1041_v49  ;;  %v1045_v51 = vld [vmem:[%s1044_s13] sm:$0x1]  ;;  %s1080_s13 = scalar_lea.vmem %s3310_s2, %s3193_s29 }
 0x11d   :  { %v1050_v52 = vld [vmem:[%s1049_s22] sm:$0x1]  ;;  %1046 = vst.msk [vmem:[#allocation3 + $0x71] sm:$0x1] %vm24_vm0, %v1045_v51  ;;  %s1781_s16 = sld [smem:[#allocation5 + $0x76]]  ;;  %s1783_s9 = sld [smem:[#allocation5 + $0x77]] }
 0x11e   :  { %1051 = vst.msk [vmem:[#allocation2 + $0x72] sm:$0x1] %vm24_vm0, %v1050_v52  ;;  %v1054_v54 = vld [vmem:[%s1053_s15] sm:$0x1]  ;;  %s1782_s25 = sld [smem:[#allocation6 + $0x76]]  ;;  %s1784_s18 = sld [smem:[#allocation6 + $0x77]] }
 0x11f   :  { %v1188_v47 = vld [vmem:[#allocation2 + $0x78] sm:$0xff]  ;;  %v1059_v55 = vld [vmem:[%s1058_s20] sm:$0x1]  ;;  %1055 = vst.msk [vmem:[#allocation3 + $0x72] sm:$0x1] %vm24_vm0, %v1054_v54 }
 0x120   :  { %v1204_v50 = vld [vmem:[#allocation3 + $0x78] sm:$0xff]  ;;  %1060 = vst.msk [vmem:[#allocation2 + $0x73] sm:$0x1] %vm24_vm0, %v1059_v55  ;;  %v1063_v56 = vld [vmem:[%s1062_s10] sm:$0x1] }
 0x121   :  { %v1220_v53 = vmul.f32 %v1204_v50, %v1188_v47  ;;  %v1068_v57 = vld [vmem:[%s1067_s1] sm:$0x1]  ;;  %1064 = vst.msk [vmem:[#allocation3 + $0x73] sm:$0x1] %vm24_vm0, %v1063_v56 }
 0x122   :  { %1069 = vst.msk [vmem:[#allocation2 + $0x74] sm:$0x1] %vm24_vm0, %v1068_v57  ;;  %v1072_v59 = vld [vmem:[%s1071_s24] sm:$0x1] }
 0x123   :  { %v1267_v58 = vsel %vm1221_vm1, %v1220_v53, 0.0  ;;  %v1077_v60 = vld [vmem:[%s1076_s23] sm:$0x1]  ;;  %1073 = vst.msk [vmem:[#allocation3 + $0x74] sm:$0x1] %vm24_vm0, %v1072_v59  ;;  %s1085_s7 = scalar_lea.vmem %s3310_s2, %s1781_s16  ;;  %s1094_s11 = scalar_lea.vmem %s3310_s2, %s1783_s9 }
 0x124   :  { %1268 = vadd.xlane.f32.xlu1 %v1267_v58  ;;  %1078 = vst.msk [vmem:[#allocation2 + $0x75] sm:$0x1] %vm24_vm0, %v1077_v60  ;;  %v1081_v61 = vld [vmem:[%s1080_s13] sm:$0x1]  ;;  %s1089_s29 = scalar_lea.vmem %s3310_s2, %s1782_s25  ;;  %s1098_s28 = scalar_lea.vmem %s3310_s2, %s1784_s18 }
 0x125   :  { %1082 = vst.msk [vmem:[#allocation3 + $0x75] sm:$0x1] %vm24_vm0, %v1081_v61  ;;  %v1086_v62 = vld [vmem:[%s1085_s7] sm:$0x1] }
 0x126   :  { %v1090_v63 = vld [vmem:[%s1089_s29] sm:$0x1]  ;;  %1087 = vst.msk [vmem:[#allocation2 + $0x76] sm:$0x1] %vm24_vm0, %v1086_v62 }
 0x127   :  { %1091 = vst.msk [vmem:[#allocation3 + $0x76] sm:$0x1] %vm24_vm0, %v1090_v63  ;;  %v1095_v0 = vld [vmem:[%s1094_s11] sm:$0x1] }
 0x128   :  { %v1099_v1 = vld [vmem:[%s1098_s28] sm:$0x1]  ;;  %1096 = vst.msk [vmem:[#allocation2 + $0x77] sm:$0x1] %vm24_vm0, %v1095_v0 }
 0x129   :  { %1100 = vst.msk [vmem:[#allocation3 + $0x77] sm:$0x1] %vm24_vm0, %v1099_v1 }
 0x12c   :  { %v1245_v2 = vpop.xlane.xlu1 %1244 }
 0x12d   :  { %1278 = vst.msk [vmem:[%s3311_s3 + $0x38] sm:$0xff] %vm1270_vm2, %v1245_v2 }
 0x12f   :  { %v1187_v3 = vld [vmem:[#allocation2 + $0x70] sm:$0xff] }
 0x130   :  { %v1203_v4 = vld [vmem:[#allocation3 + $0x70] sm:$0xff] }
 0x131   :  { %v1219_v5 = vmul.f32 %v1203_v4, %v1187_v3 }
 0x133   :  { %v1264_v6 = vsel %vm1221_vm1, %v1219_v5, 0.0 }
 0x134   :  { %1265 = vadd.xlane.f32.xlu0 %v1264_v6 }
 0x13c   :  { %v1242_v7 = vpop.xlane.xlu0 %1241 }
 0x13d   :  { %1277 = vst.msk [vmem:[%s3311_s3 + $0x30] sm:$0xff] %vm1270_vm2, %v1242_v7 }
 0x14c   :  { %v1251_v8 = vpop.xlane.xlu1 %1250 }
 0x14d   :  { %1280 = vst.msk [vmem:[%s3311_s3 + $0x48] sm:$0xff] %vm1270_vm2, %v1251_v8 }
 0x15e   :  { %v1248_v9 = vpop.xlane.xlu0 %1247 }
 0x15f   :  { %1279 = vst.msk [vmem:[%s3311_s3 + $0x40] sm:$0xff] %vm1270_vm2, %v1248_v9 }
 0x16e   :  { %v1257_v10 = vpop.xlane.xlu1 %1256 }
 0x16f   :  { %1282 = vst.msk [vmem:[%s3311_s3 + $0x58] sm:$0xff] %vm1270_vm2, %v1257_v10 }
 0x17f   :  { %v1254_v11 = vpop.xlane.xlu0 %1253 }
 0x180   :  { %1281 = vst.msk [vmem:[%s3311_s3 + $0x50] sm:$0xff] %vm1270_vm2, %v1254_v11 }
 0x18f   :  { %v1263_v12 = vpop.xlane.xlu1 %1262 }
 0x190   :  { %1284 = vst.msk [vmem:[%s3311_s3 + $0x68] sm:$0xff] %vm1270_vm2, %v1263_v12 }
 0x19f   :  { %v1260_v13 = vpop.xlane.xlu0 %1259 }
 0x1a0   :  { %1283 = vst.msk [vmem:[%s3311_s3 + $0x60] sm:$0xff] %vm1270_vm2, %v1260_v13 }
 0x1b1   :  { %v1269_v14 = vpop.xlane.xlu1 %1268 }
 0x1b2   :  { %1286 = vst.msk [vmem:[%s3311_s3 + $0x78] sm:$0xff] %vm1270_vm2, %v1269_v14 }
 0x1c1   :  { %v1266_v15 = vpop.xlane.xlu0 %1265 }
 0x1c2   :  { %1285 = vst.msk [vmem:[%s3311_s3 + $0x70] sm:$0xff] %vm1270_vm2, %v1266_v15 }

</bundles_post_ra>
